<compile_context>
chip_gen: v5e
topology: v5e:2x2
jax: 0.10.0
libtpu: 0.0.40
codegen_flags: <defaults>
</compile_context>

<pallas_src>
import functools

import jax
import jax.numpy as jnp
from jax.experimental import pallas as pl
from jax.experimental.pallas import tpu as pltpu

HIDDEN = 128
BN_EPS = 1e-5
LANE = 128


def _round_up(n, m):
    return ((n + m - 1) // m) * m


# ---------------------------------------------------------------------------
# Fused single-kernel path (batch-resident activation in VMEM)
# ---------------------------------------------------------------------------

def _fused_kernel(x_ref, w1_ref, w2_ref, w3_ref, b3_ref,
                  g1_ref, be1_ref, g2_ref, be2_ref,
                  out_ref,
                  act_ref, sum_ref, ssq_ref, sc_ref, sh_ref,
                  *, true_b, tb, need_mask):
    p = pl.program_id(0)          # phase: 0 -> layer1, 1 -> layer2, 2 -> layer3
    i = pl.program_id(1)          # batch tile
    row0 = pl.multiple_of(i * tb, 8)

    # Reset the stats accumulators at the very first grid step.
    @pl.when((p == 0) & (i == 0))
    def _init():
        sum_ref[...] = jnp.zeros_like(sum_ref)
        ssq_ref[...] = jnp.zeros_like(ssq_ref)

    # Phase boundary: finalize the fused BN scale/shift of the layer that just
    # finished accumulating, then reset the accumulators for the next layer.
    # (Single-pass E[h^2]-mean^2 variance; biases are dropped so means stay
    # small and cancellation is benign at 1e-4 tolerance.)
    @pl.when((p >= 1) & (i == 0))
    def _finalize_bn():
        inv_b = jnp.float32(1.0 / true_b)
        mean = sum_ref[...] * inv_b                                  # (1, H)
        var = jnp.maximum(ssq_ref[...] * inv_b - mean * mean, 0.0)
        is_l1 = p == 1
        gamma = jnp.where(is_l1, g1_ref[...], g2_ref[...])
        beta = jnp.where(is_l1, be1_ref[...], be2_ref[...])
        scale = gamma * jax.lax.rsqrt(var + BN_EPS)
        sc_ref[...] = scale
        sh_ref[...] = beta - mean * scale
        sum_ref[...] = jnp.zeros_like(sum_ref)
        ssq_ref[...] = jnp.zeros_like(ssq_ref)

    # Phase 0: h1 = x @ W1 (bias omitted -- BN cancels it).  Zero-padded batch
    # rows of x give zero rows of h1, so no stats mask is needed here.
    @pl.when(p == 0)
    def _phase0():
        h1 = jnp.dot(x_ref[...], w1_ref[...],
                     preferred_element_type=jnp.float32)
        act_ref[pl.ds(row0, tb), :] = h1
        sum_ref[...] += jnp.sum(h1, axis=0, keepdims=True)
        ssq_ref[...] += jnp.sum(h1 * h1, axis=0, keepdims=True)

    # Phase 1: a1 = sigmoid(BN1(h1)); h2 = a1 @ W2 (bias omitted).
    @pl.when(p == 1)
    def _phase1():
        h1 = act_ref[pl.ds(row0, tb), :]
        a1 = jax.nn.sigmoid(h1 * sc_ref[...] + sh_ref[...])
        h2 = jnp.dot(a1, w2_ref[...], preferred_element_type=jnp.float32)
        act_ref[pl.ds(row0, tb), :] = h2
        if need_mask:
            rows = row0 + jax.lax.broadcasted_iota(jnp.int32, (tb, 1), 0)
            h2 = jnp.where(rows < true_b, h2, 0.0)   # mask padded rows (stats)
        sum_ref[...] += jnp.sum(h2, axis=0, keepdims=True)
        ssq_ref[...] += jnp.sum(h2 * h2, axis=0, keepdims=True)

    # Phase 2: a2 = sigmoid(BN2(h2)); y = a2 @ W3 + b3 (lane-dense store).
    @pl.when(p == 2)
    def _phase2():
        h2 = act_ref[pl.ds(row0, tb), :]
        a2 = jax.nn.sigmoid(h2 * sc_ref[...] + sh_ref[...])
        out_ref[...] = (jnp.dot(a2, w3_ref[...],
                                preferred_element_type=jnp.float32)
                        + b3_ref[...]).astype(out_ref.dtype)


def _forward_fused(x, params, TB, est_bytes):
    B, in_dim = x.shape
    H = HIDDEN
    out_dim = params["w3"].shape[1]
    f32 = jnp.float32
    N_pad = _round_up(out_dim, LANE)
    B_pad = _round_up(B, TB)
    nb = B_pad // TB
    need_mask = B_pad != B

    x_p = x.astype(f32)
    if need_mask:
        x_p = jnp.pad(x_p, ((0, B_pad - B), (0, 0)))   # zero rows -> zero stats

    w1 = params["w1"].astype(f32)
    w2 = params["w2"].astype(f32)
    w3 = jnp.pad(params["w3"].astype(f32), ((0, 0), (0, N_pad - out_dim)))
    b3 = jnp.pad(params["b3"].reshape(1, out_dim).astype(f32),
                 ((0, 0), (0, N_pad - out_dim)))
    g1 = params["g1"].reshape(1, H).astype(f32)
    be1 = params["be1"].reshape(1, H).astype(f32)
    g2 = params["g2"].reshape(1, H).astype(f32)
    be2 = params["be2"].reshape(1, H).astype(f32)

    vmem_limit = int(max(32 << 20, min(60 << 20, est_bytes * 3 // 2)))

    out_p = pl.pallas_call(
        functools.partial(_fused_kernel, true_b=B, tb=TB, need_mask=need_mask),
        out_shape=jax.ShapeDtypeStruct((B_pad, N_pad), f32),
        grid=(3, nb),
        in_specs=[
            # x: streamed only during phase 0 (constant index otherwise).
            pl.BlockSpec((TB, in_dim), lambda p, i: (jnp.where(p == 0, i, 0), 0)),
            pl.BlockSpec((in_dim, H), lambda p, i: (0, 0)),   # W1 (resident)
            pl.BlockSpec((H, H), lambda p, i: (0, 0)),        # W2
            pl.BlockSpec((H, N_pad), lambda p, i: (0, 0)),    # W3 (col-padded)
            pl.BlockSpec((1, N_pad), lambda p, i: (0, 0)),    # b3
            pl.BlockSpec((1, H), lambda p, i: (0, 0)),        # gamma1
            pl.BlockSpec((1, H), lambda p, i: (0, 0)),        # beta1
            pl.BlockSpec((1, H), lambda p, i: (0, 0)),        # gamma2
            pl.BlockSpec((1, H), lambda p, i: (0, 0)),        # beta2
        ],
        # Output only advances (and is written back) during phase 2.
        out_specs=pl.BlockSpec((TB, N_pad),
                               lambda p, i: (jnp.where(p == 2, i, 0), 0)),
        scratch_shapes=[
            pltpu.VMEM((B_pad, H), f32),   # persistent activation (h1 then h2)
            pltpu.VMEM((1, H), f32),       # running sum
            pltpu.VMEM((1, H), f32),       # running sum of squares
            pltpu.VMEM((1, H), f32),       # fused BN scale
            pltpu.VMEM((1, H), f32),       # fused BN shift
        ],
        compiler_params=pltpu.CompilerParams(
            dimension_semantics=("arbitrary", "arbitrary"),
            vmem_limit_bytes=vmem_limit),
    )(x_p, w1, w2, w3, b3, g1, be1, g2, be2)

    if B_pad != B or N_pad != out_dim:
        out_p = out_p[:B, :out_dim]
    return out_p


# ---------------------------------------------------------------------------
# Three-pass streaming fallback (batch too large for a VMEM-resident scratch)
# ---------------------------------------------------------------------------

def _linear_stats_kernel(x_ref, w_ref, h_ref, stats_ref):
    h = jnp.dot(x_ref[...], w_ref[...], preferred_element_type=jnp.float32)
    h_ref[...] = h
    stats_ref[...] = jnp.concatenate(
        [jnp.sum(h, axis=0, keepdims=True),
         jnp.sum(h * h, axis=0, keepdims=True)], axis=0)[None]


def _bn_sig_linear_stats_kernel(h_ref, sc_ref, sh_ref, w_ref,
                                h2_ref, stats_ref, *, true_b, tb, need_mask):
    a = jax.nn.sigmoid(h_ref[...] * sc_ref[...] + sh_ref[...])
    h2 = jnp.dot(a, w_ref[...], preferred_element_type=jnp.float32)
    h2_ref[...] = h2
    if need_mask:
        rows = pl.program_id(0) * tb + jax.lax.broadcasted_iota(
            jnp.int32, (tb, 1), 0)
        h2 = jnp.where(rows < true_b, h2, 0.0)
    stats_ref[...] = jnp.concatenate(
        [jnp.sum(h2, axis=0, keepdims=True),
         jnp.sum(h2 * h2, axis=0, keepdims=True)], axis=0)[None]


def _bn_sig_linear_kernel(h_ref, sc_ref, sh_ref, w_ref, b_ref, out_ref):
    a = jax.nn.sigmoid(h_ref[...] * sc_ref[...] + sh_ref[...])
    out_ref[...] = (jnp.dot(a, w_ref[...], preferred_element_type=jnp.float32)
                    + b_ref[...]).astype(out_ref.dtype)


def _bn_scale_shift(stats, gamma, beta, true_b):
    total = jnp.sum(stats, axis=0)                        # (2, F)
    mean = total[0] / true_b
    var = jnp.maximum(total[1] / true_b - mean * mean, 0.0)
    gamma = gamma.reshape(1, -1).astype(jnp.float32)
    beta = beta.reshape(1, -1).astype(jnp.float32)
    scale = gamma * jax.lax.rsqrt(var + BN_EPS)[None, :]
    shift = beta - mean[None, :] * scale
    return scale, shift


def _forward_three_pass(x, params, TB):
    B, in_dim = x.shape
    H = HIDDEN
    out_dim = params["w3"].shape[1]
    f32 = jnp.float32
    N_pad = _round_up(out_dim, LANE)
    B_pad = _round_up(B, TB)
    nb = B_pad // TB
    need_mask = B_pad != B

    x_p = x.astype(f32)
    if need_mask:
        x_p = jnp.pad(x_p, ((0, B_pad - B), (0, 0)))

    w1 = params["w1"].astype(f32)
    w2 = params["w2"].astype(f32)
    w3 = jnp.pad(params["w3"].astype(f32), ((0, 0), (0, N_pad - out_dim)))
    b3 = jnp.pad(params["b3"].reshape(1, out_dim).astype(f32),
                 ((0, 0), (0, N_pad - out_dim)))

    cparams = pltpu.CompilerParams(dimension_semantics=("parallel",),
                                   vmem_limit_bytes=64 * 1024 * 1024)
    stats_shape = jax.ShapeDtypeStruct((nb, 2, H), f32)
    stats_spec = pl.BlockSpec((1, 2, H), lambda i: (i, 0, 0))

    # Pass 1: h1 = x @ W1 (+ per-tile partial BN1 stats; bias cancels in BN).
    h1, st1 = pl.pallas_call(
        _linear_stats_kernel,
        out_shape=(jax.ShapeDtypeStruct((B_pad, H), f32), stats_shape),
        grid=(nb,),
        in_specs=[pl.BlockSpec((TB, in_dim), lambda i: (i, 0)),
                  pl.BlockSpec((in_dim, H), lambda i: (0, 0))],
        out_specs=(pl.BlockSpec((TB, H), lambda i: (i, 0)), stats_spec),
        compiler_params=cparams,
    )(x_p, w1)
    sc1, sh1 = _bn_scale_shift(st1, params["g1"], params["be1"], B)

    # Pass 2: a1 = sigmoid(BN1(h1)); h2 = a1 @ W2 (+ partial BN2 stats).
    h2, st2 = pl.pallas_call(
        functools.partial(_bn_sig_linear_stats_kernel,
                          true_b=B, tb=TB, need_mask=need_mask),
        out_shape=(jax.ShapeDtypeStruct((B_pad, H), f32), stats_shape),
        grid=(nb,),
        in_specs=[pl.BlockSpec((TB, H), lambda i: (i, 0)),
                  pl.BlockSpec((1, H), lambda i: (0, 0)),
                  pl.BlockSpec((1, H), lambda i: (0, 0)),
                  pl.BlockSpec((H, H), lambda i: (0, 0))],
        out_specs=(pl.BlockSpec((TB, H), lambda i: (i, 0)), stats_spec),
        compiler_params=cparams,
    )(h1, sc1, sh1, w2)
    sc2, sh2 = _bn_scale_shift(st2, params["g2"], params["be2"], B)

    # Pass 3: a2 = sigmoid(BN2(h2)); y = a2 @ W3 + b3.
    out_p = pl.pallas_call(
        _bn_sig_linear_kernel,
        out_shape=jax.ShapeDtypeStruct((B_pad, N_pad), f32),
        grid=(nb,),
        in_specs=[pl.BlockSpec((TB, H), lambda i: (i, 0)),
                  pl.BlockSpec((1, H), lambda i: (0, 0)),
                  pl.BlockSpec((1, H), lambda i: (0, 0)),
                  pl.BlockSpec((H, N_pad), lambda i: (0, 0)),
                  pl.BlockSpec((1, N_pad), lambda i: (0, 0))],
        out_specs=pl.BlockSpec((TB, N_pad), lambda i: (i, 0)),
        compiler_params=cparams,
    )(h2, sc2, sh2, w3, b3)

    if B_pad != B or N_pad != out_dim:
        out_p = out_p[:B, :out_dim]
    return out_p


# ---------------------------------------------------------------------------
# Dispatch
# ---------------------------------------------------------------------------

def _choose_tb(B, width_a, width_b, target=1024, stream_budget=8 << 20):
    tb = min(target, _round_up(max(B, 1), 8))
    for w in (width_a, width_b):           # cap the double-buffered streams
        tb = min(tb, max(8, stream_budget // max(1, 2 * 4 * w)))
    return max(8, (tb // 8) * 8)


def ann_forward(x, params, *, batch_tile=None, force_three_pass=False):
    """Forward pass of `Ann` (training-mode BatchNorm). x: (B, in_dim) f32."""
    B, in_dim = x.shape
    out_dim = params["w3"].shape[1]
    N_pad = _round_up(out_dim, LANE)

    TB = batch_tile if batch_tile is not None else _choose_tb(B, in_dim, N_pad)
    TB = max(8, (min(TB, _round_up(B, 8)) // 8) * 8)
    B_pad = _round_up(B, TB)

    # Rough fused-path VMEM estimate (activation scratch + streams + weights).
    est = 4 * (B_pad * HIDDEN + 2 * TB * in_dim + 2 * TB * N_pad
               + in_dim * HIDDEN + HIDDEN * HIDDEN + HIDDEN * N_pad
               + 16 * HIDDEN)

    if force_three_pass or est > (40 << 20):
        return _forward_three_pass(x, params, TB)
    return _forward_fused(x, params, TB, est)


# ---------------------------------------------------------------------------
# Parameters / reference
# ---------------------------------------------------------------------------

def init_params(key, in_dim, out_dim):
    """Deterministic synthetic parameters (PyTorch-like uniform fan-in init)."""
    ks = jax.random.split(key, 6)

    def lin(kw, kb, fan_in, fan_out):
        bound = 1.0 / jnp.sqrt(fan_in)
        w = jax.random.uniform(kw, (fan_in, fan_out), jnp.float32, -bound, bound)
        b = jax.random.uniform(kb, (1, fan_out), jnp.float32, -bound, bound)
        return w, b

    w1, b1 = lin(ks[0], ks[1], in_dim, HIDDEN)
    w2, b2 = lin(ks[2], ks[3], HIDDEN, HIDDEN)
    w3, b3 = lin(ks[4], ks[5], HIDDEN, out_dim)
    return {
        "w1": w1, "b1": b1,
        "g1": jnp.ones((1, HIDDEN), jnp.float32),
        "be1": jnp.zeros((1, HIDDEN), jnp.float32),
        "w2": w2, "b2": b2,
        "g2": jnp.ones((1, HIDDEN), jnp.float32),
        "be2": jnp.zeros((1, HIDDEN), jnp.float32),
        "w3": w3, "b3": b3,
    }


def ann_reference(x, p):
    """Pure-JAX reference mirroring the PyTorch forward (training-mode BN)."""
    def bn_sig(h, g, b):
        m = jnp.mean(h, axis=0, keepdims=True)
        v = jnp.mean((h - m) ** 2, axis=0, keepdims=True)
        return jax.nn.sigmoid((h - m) / jnp.sqrt(v + BN_EPS) * g + b)

    h = x @ p["w1"] + p["b1"]          # kernels drop b1/b2: BN cancels them
    h = bn_sig(h, p["g1"], p["be1"])
    h = h @ p["w2"] + p["b2"]
    h = bn_sig(h, p["g2"], p["be2"])
    return h @ p["w3"] + p["b3"]


# TODO(synk): BatchNorm1d's running_mean/running_var buffer updates (a
# training-time side effect that does not change the forward output) are not
# modeled.

if __name__ == "__main__":
    key = jax.random.PRNGKey(0)
    k_x, k_p = jax.random.split(key)

    # Small demo shape: exercises batch-row masking and out_dim lane padding.
    B, in_dim, out_dim = 300, 32, 8
    x = jax.random.normal(k_x, (B, in_dim), jnp.float32)
    params = init_params(k_p, in_dim, out_dim)

    ref = ann_reference(x, params)

    # Fused single-kernel path (default dispatch at this size).
    fused = jax.jit(ann_forward)
    out = jax.block_until_ready(fused(x, params))
    assert out.shape == (B, out_dim)
    err = float(jnp.max(jnp.abs(out - ref)))
    assert jnp.allclose(out, ref, atol=1e-4, rtol=1e-4), f"fused max err {err}"

    # Streaming three-pass fallback (used when the batch won't fit in VMEM).
    three = jax.jit(functools.partial(ann_forward, force_three_pass=True))
    out3 = jax.block_until_ready(three(x, params))
    err3 = float(jnp.max(jnp.abs(out3 - ref)))
    assert jnp.allclose(out3, ref, atol=1e-4, rtol=1e-4), f"3-pass max err {err3}"

    print("KERNEL_OK")
</pallas_src>

<mosaic_0001>
module attributes {stable_mosaic.version = 11 : i64} {
  func.func @_fused_kernel(%arg0: i32, %arg1: i32, %arg2: memref<304x32xf32, #tpu.memory_space<vmem>>, %arg3: memref<32x128xf32, #tpu.memory_space<vmem>>, %arg4: memref<128x128xf32, #tpu.memory_space<vmem>>, %arg5: memref<128x128xf32, #tpu.memory_space<vmem>>, %arg6: memref<1x128xf32, #tpu.memory_space<vmem>>, %arg7: memref<1x128xf32, #tpu.memory_space<vmem>>, %arg8: memref<1x128xf32, #tpu.memory_space<vmem>>, %arg9: memref<1x128xf32, #tpu.memory_space<vmem>>, %arg10: memref<1x128xf32, #tpu.memory_space<vmem>>, %arg11: memref<304x128xf32, #tpu.memory_space<vmem>>, %arg12: memref<304x128xf32, #tpu.memory_space<vmem>>, %arg13: memref<1x128xf32, #tpu.memory_space<vmem>>, %arg14: memref<1x128xf32, #tpu.memory_space<vmem>>, %arg15: memref<1x128xf32, #tpu.memory_space<vmem>>, %arg16: memref<1x128xf32, #tpu.memory_space<vmem>>) attributes {dimension_semantics = [#tpu.dimension_semantics<arbitrary>, #tpu.dimension_semantics<arbitrary>], iteration_bounds = array<i64: 3, 1>, scalar_prefetch = 0 : i64, scratch_operands = 5 : i64, tpu.core_type = #tpu.core_type<tc>, window_params = [{transform_indices = @transform_0, window_bounds = array<i64: 304, 32>}, {pipeline_mode = #tpu.pipeline_mode<synchronous>, transform_indices = @transform_1, window_bounds = array<i64: 32, 128>}, {pipeline_mode = #tpu.pipeline_mode<synchronous>, transform_indices = @transform_2, window_bounds = array<i64: 128, 128>}, {pipeline_mode = #tpu.pipeline_mode<synchronous>, transform_indices = @transform_3, window_bounds = array<i64: 128, 128>}, {pipeline_mode = #tpu.pipeline_mode<synchronous>, transform_indices = @transform_4, window_bounds = array<i64: 1, 128>}, {pipeline_mode = #tpu.pipeline_mode<synchronous>, transform_indices = @transform_5, window_bounds = array<i64: 1, 128>}, {pipeline_mode = #tpu.pipeline_mode<synchronous>, transform_indices = @transform_6, window_bounds = array<i64: 1, 128>}, {pipeline_mode = #tpu.pipeline_mode<synchronous>, transform_indices = @transform_7, window_bounds = array<i64: 1, 128>}, {pipeline_mode = #tpu.pipeline_mode<synchronous>, transform_indices = @transform_8, window_bounds = array<i64: 1, 128>}, {transform_indices = @transform_9, window_bounds = array<i64: 304, 128>}]} {
    %c304_i32 = arith.constant 304 : i32
    %0 = arith.muli %arg1, %c304_i32 : i32
    %1 = tpu.assume_multiple %0, 8 : i32
    %c0_i32 = arith.constant 0 : i32
    %2 = arith.cmpi eq, %arg0, %c0_i32 : i32
    %c0_i32_0 = arith.constant 0 : i32
    %3 = arith.cmpi eq, %arg1, %c0_i32_0 : i32
    %4 = arith.andi %2, %3 : i1
    %5 = arith.extui %4 : i1 to i32
    %c0_i32_1 = arith.constant 0 : i32
    %6 = arith.cmpi ne, %5, %c0_i32_1 : i32
    scf.if %6 {
      %cst = arith.constant 0.000000e+00 : f32
      %21 = vector.broadcast %cst : f32 to vector<1x128xf32>
      %c0 = arith.constant 0 : index
      %c0_9 = arith.constant 0 : index
      %22 = vector.load %arg13[%c0, %c0_9] : memref<1x128xf32, #tpu.memory_space<vmem>>, vector<1x128xf32>
      tpu.vector_store %arg13[%c0, %c0_9], %21 {strides = array<i32>} : memref<1x128xf32, #tpu.memory_space<vmem>>, vector<1x128xf32>,
      %cst_10 = arith.constant 0.000000e+00 : f32
      %23 = vector.broadcast %cst_10 : f32 to vector<1x128xf32>
      %c0_11 = arith.constant 0 : index
      %c0_12 = arith.constant 0 : index
      %24 = vector.load %arg14[%c0_11, %c0_12] : memref<1x128xf32, #tpu.memory_space<vmem>>, vector<1x128xf32>
      tpu.vector_store %arg14[%c0_11, %c0_12], %23 {strides = array<i32>} : memref<1x128xf32, #tpu.memory_space<vmem>>, vector<1x128xf32>,
    } else {
    }
    %c1_i32 = arith.constant 1 : i32
    %7 = arith.cmpi sge, %arg0, %c1_i32 : i32
    %c0_i32_2 = arith.constant 0 : i32
    %8 = arith.cmpi eq, %arg1, %c0_i32_2 : i32
    %9 = arith.andi %7, %8 : i1
    %10 = arith.extui %9 : i1 to i32
    %c0_i32_3 = arith.constant 0 : i32
    %11 = arith.cmpi ne, %10, %c0_i32_3 : i32
    scf.if %11 {
      %c0 = arith.constant 0 : index
      %c0_9 = arith.constant 0 : index
      %21 = vector.load %arg13[%c0, %c0_9] : memref<1x128xf32, #tpu.memory_space<vmem>>, vector<1x128xf32>
      %cst = arith.constant 0.00333333341 : f32
      %22 = vector.broadcast %cst : f32 to vector<1x128xf32>
      %23 = arith.mulf %21, %22 : vector<1x128xf32>
      %c0_10 = arith.constant 0 : index
      %c0_11 = arith.constant 0 : index
      %24 = vector.load %arg14[%c0_10, %c0_11] : memref<1x128xf32, #tpu.memory_space<vmem>>, vector<1x128xf32>
      %cst_12 = arith.constant 0.00333333341 : f32
      %25 = vector.broadcast %cst_12 : f32 to vector<1x128xf32>
      %26 = arith.mulf %24, %25 : vector<1x128xf32>
      %27 = arith.mulf %23, %23 : vector<1x128xf32>
      %28 = arith.subf %26, %27 : vector<1x128xf32>
      %cst_13 = arith.constant 0.000000e+00 : f32
      %29 = vector.broadcast %cst_13 : f32 to vector<1x128xf32>
      %30 = arith.maximumf %28, %29 : vector<1x128xf32>
      %c1_i32_14 = arith.constant 1 : i32
      %31 = arith.cmpi eq, %arg0, %c1_i32_14 : i32
      %c0_15 = arith.constant 0 : index
      %c0_16 = arith.constant 0 : index
      %32 = vector.load %arg7[%c0_15, %c0_16] : memref<1x128xf32, #tpu.memory_space<vmem>>, vector<1x128xf32>
      %c0_17 = arith.constant 0 : index
      %c0_18 = arith.constant 0 : index
      %33 = vector.load %arg9[%c0_17, %c0_18] : memref<1x128xf32, #tpu.memory_space<vmem>>, vector<1x128xf32>
      %34 = arith.select %31, %32, %33 : vector<1x128xf32>
      %c0_19 = arith.constant 0 : index
      %c0_20 = arith.constant 0 : index
      %35 = vector.load %arg8[%c0_19, %c0_20] : memref<1x128xf32, #tpu.memory_space<vmem>>, vector<1x128xf32>
      %c0_21 = arith.constant 0 : index
      %c0_22 = arith.constant 0 : index
      %36 = vector.load %arg10[%c0_21, %c0_22] : memref<1x128xf32, #tpu.memory_space<vmem>>, vector<1x128xf32>
      %37 = arith.select %31, %35, %36 : vector<1x128xf32>
      %cst_23 = arith.constant 9.99999974E-6 : f32
      %38 = vector.broadcast %cst_23 : f32 to vector<1x128xf32>
      %39 = arith.addf %30, %38 : vector<1x128xf32>
      %40 = math.rsqrt %39 : vector<1x128xf32>
      %41 = arith.mulf %34, %40 : vector<1x128xf32>
      %c0_24 = arith.constant 0 : index
      %c0_25 = arith.constant 0 : index
      %42 = vector.load %arg15[%c0_24, %c0_25] : memref<1x128xf32, #tpu.memory_space<vmem>>, vector<1x128xf32>
      tpu.vector_store %arg15[%c0_24, %c0_25], %41 {strides = array<i32>} : memref<1x128xf32, #tpu.memory_space<vmem>>, vector<1x128xf32>,
      %43 = arith.mulf %23, %41 : vector<1x128xf32>
      %44 = arith.subf %37, %43 : vector<1x128xf32>
      %c0_26 = arith.constant 0 : index
      %c0_27 = arith.constant 0 : index
      %45 = vector.load %arg16[%c0_26, %c0_27] : memref<1x128xf32, #tpu.memory_space<vmem>>, vector<1x128xf32>
      tpu.vector_store %arg16[%c0_26, %c0_27], %44 {strides = array<i32>} : memref<1x128xf32, #tpu.memory_space<vmem>>, vector<1x128xf32>,
      %cst_28 = arith.constant 0.000000e+00 : f32
      %46 = vector.broadcast %cst_28 : f32 to vector<1x128xf32>
      %c0_29 = arith.constant 0 : index
      %c0_30 = arith.constant 0 : index
      %47 = vector.load %arg13[%c0_29, %c0_30] : memref<1x128xf32, #tpu.memory_space<vmem>>, vector<1x128xf32>
      tpu.vector_store %arg13[%c0_29, %c0_30], %46 {strides = array<i32>} : memref<1x128xf32, #tpu.memory_space<vmem>>, vector<1x128xf32>,
      %cst_31 = arith.constant 0.000000e+00 : f32
      %48 = vector.broadcast %cst_31 : f32 to vector<1x128xf32>
      %c0_32 = arith.constant 0 : index
      %c0_33 = arith.constant 0 : index
      %49 = vector.load %arg14[%c0_32, %c0_33] : memref<1x128xf32, #tpu.memory_space<vmem>>, vector<1x128xf32>
      tpu.vector_store %arg14[%c0_32, %c0_33], %48 {strides = array<i32>} : memref<1x128xf32, #tpu.memory_space<vmem>>, vector<1x128xf32>,
    } else {
    }
    %c0_i32_4 = arith.constant 0 : i32
    %12 = arith.cmpi eq, %arg0, %c0_i32_4 : i32
    %13 = arith.extui %12 : i1 to i32
    %c0_i32_5 = arith.constant 0 : i32
    %14 = arith.cmpi ne, %13, %c0_i32_5 : i32
    scf.if %14 {
      %c0 = arith.constant 0 : index
      %c0_9 = arith.constant 0 : index
      %21 = vector.load %arg2[%c0, %c0_9] : memref<304x32xf32, #tpu.memory_space<vmem>>, vector<304x32xf32>
      %c0_10 = arith.constant 0 : index
      %c0_11 = arith.constant 0 : index
      %22 = vector.load %arg3[%c0_10, %c0_11] : memref<32x128xf32, #tpu.memory_space<vmem>>, vector<32x128xf32>
      %cst = arith.constant dense<0.000000e+00> : vector<304x128xf32>
      %23 = tpu.matmul %21, %22, %cst {dimension_numbers = #tpu.dot_dimension_numbers<[1], [0], [0], [1], [0, 0, 1, 1], [], []>} : vector<304x32xf32>, vector<32x128xf32>, vector<304x128xf32> -> vector<304x128xf32>
      %24 = arith.index_cast %1 : i32 to index
      %c0_12 = arith.constant 0 : index
      %25 = vector.load %arg12[%24, %c0_12] : memref<304x128xf32, #tpu.memory_space<vmem>>, vector<304x128xf32>
      tpu.vector_store %arg12[%24, %c0_12], %23 {strides = array<i32>} : memref<304x128xf32, #tpu.memory_space<vmem>>, vector<304x128xf32>,
      %c0_13 = arith.constant 0 : index
      %c0_14 = arith.constant 0 : index
      %26 = vector.load %arg13[%c0_13, %c0_14] : memref<1x128xf32, #tpu.memory_space<vmem>>, vector<1x128xf32>
      %cst_15 = arith.constant dense<0.000000e+00> : vector<128xf32>
      %27 = vector.multi_reduction <add>, %23, %cst_15 [0] : vector<304x128xf32> to vector<128xf32>
      %28 = vector.shape_cast %27 : vector<128xf32> to vector<1x128xf32>
      %29 = arith.addf %26, %28 : vector<1x128xf32>
      %c0_16 = arith.constant 0 : index
      %c0_17 = arith.constant 0 : index
      %30 = vector.load %arg13[%c0_16, %c0_17] : memref<1x128xf32, #tpu.memory_space<vmem>>, vector<1x128xf32>
      tpu.vector_store %arg13[%c0_16, %c0_17], %29 {strides = array<i32>} : memref<1x128xf32, #tpu.memory_space<vmem>>, vector<1x128xf32>,
      %c0_18 = arith.constant 0 : index
      %c0_19 = arith.constant 0 : index
      %31 = vector.load %arg14[%c0_18, %c0_19] : memref<1x128xf32, #tpu.memory_space<vmem>>, vector<1x128xf32>
      %32 = arith.mulf %23, %23 : vector<304x128xf32>
      %cst_20 = arith.constant dense<0.000000e+00> : vector<128xf32>
      %33 = vector.multi_reduction <add>, %32, %cst_20 [0] : vector<304x128xf32> to vector<128xf32>
      %34 = vector.shape_cast %33 : vector<128xf32> to vector<1x128xf32>
      %35 = arith.addf %31, %34 : vector<1x128xf32>
      %c0_21 = arith.constant 0 : index
      %c0_22 = arith.constant 0 : index
      %36 = vector.load %arg14[%c0_21, %c0_22] : memref<1x128xf32, #tpu.memory_space<vmem>>, vector<1x128xf32>
      tpu.vector_store %arg14[%c0_21, %c0_22], %35 {strides = array<i32>} : memref<1x128xf32, #tpu.memory_space<vmem>>, vector<1x128xf32>,
    } else {
    }
    %c1_i32_6 = arith.constant 1 : i32
    %15 = arith.cmpi eq, %arg0, %c1_i32_6 : i32
    %16 = arith.extui %15 : i1 to i32
    %c0_i32_7 = arith.constant 0 : i32
    %17 = arith.cmpi ne, %16, %c0_i32_7 : i32
    scf.if %17 {
      %21 = arith.index_cast %1 : i32 to index
      %c0 = arith.constant 0 : index
      %22 = vector.load %arg12[%21, %c0] : memref<304x128xf32, #tpu.memory_space<vmem>>, vector<304x128xf32>
      %c0_9 = arith.constant 0 : index
      %c0_10 = arith.constant 0 : index
      %23 = vector.load %arg15[%c0_9, %c0_10] : memref<1x128xf32, #tpu.memory_space<vmem>>, vector<1x128xf32>
      %24 = vector.broadcast %23 : vector<1x128xf32> to vector<304x128xf32>
      %25 = arith.mulf %22, %24 : vector<304x128xf32>
      %c0_11 = arith.constant 0 : index
      %c0_12 = arith.constant 0 : index
      %26 = vector.load %arg16[%c0_11, %c0_12] : memref<1x128xf32, #tpu.memory_space<vmem>>, vector<1x128xf32>
      %27 = vector.broadcast %26 : vector<1x128xf32> to vector<304x128xf32>
      %28 = arith.addf %25, %27 : vector<304x128xf32>
      %29 = arith.negf %28 : vector<304x128xf32>
      %30 = math.exp %29 : vector<304x128xf32>
      %cst = arith.constant 1.000000e+00 : f32
      %31 = vector.broadcast %cst : f32 to vector<304x128xf32>
      %32 = arith.addf %31, %30 : vector<304x128xf32>
      %33 = arith.divf %31, %32 : vector<304x128xf32>
      %c0_13 = arith.constant 0 : index
      %c0_14 = arith.constant 0 : index
      %34 = vector.load %arg4[%c0_13, %c0_14] : memref<128x128xf32, #tpu.memory_space<vmem>>, vector<128x128xf32>
      %cst_15 = arith.constant dense<0.000000e+00> : vector<304x128xf32>
      %35 = tpu.matmul %33, %34, %cst_15 {dimension_numbers = #tpu.dot_dimension_numbers<[1], [0], [0], [1], [0, 0, 1, 1], [], []>} : vector<304x128xf32>, vector<128x128xf32>, vector<304x128xf32> -> vector<304x128xf32>
      %36 = arith.index_cast %1 : i32 to index
      %c0_16 = arith.constant 0 : index
      %37 = vector.load %arg12[%36, %c0_16] : memref<304x128xf32, #tpu.memory_space<vmem>>, vector<304x128xf32>
      tpu.vector_store %arg12[%36, %c0_16], %35 {strides = array<i32>} : memref<304x128xf32, #tpu.memory_space<vmem>>, vector<304x128xf32>,
      %38 = tpu.iota {dimensions = array<i32: 0>} : vector<304x1xi32>
      %39 = vector.broadcast %1 : i32 to vector<304x1xi32>
      %40 = arith.addi %39, %38 : vector<304x1xi32>
      %c300_i32 = arith.constant 300 : i32
      %41 = vector.broadcast %c300_i32 : i32 to vector<304x1xi32>
      %42 = arith.cmpi slt, %40, %41 : vector<304x1xi32>
      %cst_17 = arith.constant 0.000000e+00 : f32
      %43 = vector.shape_cast %42 : vector<304x1xi1> to vector<304x1xi1>
      %44 = vector.broadcast %43 : vector<304x1xi1> to vector<304x128xi1>
      %45 = vector.broadcast %cst_17 : f32 to vector<304x128xf32>
      %46 = arith.select %44, %35, %45 : vector<304x128xi1>, vector<304x128xf32>
      %c0_18 = arith.constant 0 : index
      %c0_19 = arith.constant 0 : index
      %47 = vector.load %arg13[%c0_18, %c0_19] : memref<1x128xf32, #tpu.memory_space<vmem>>, vector<1x128xf32>
      %cst_20 = arith.constant dense<0.000000e+00> : vector<128xf32>
      %48 = vector.multi_reduction <add>, %46, %cst_20 [0] : vector<304x128xf32> to vector<128xf32>
      %49 = vector.shape_cast %48 : vector<128xf32> to vector<1x128xf32>
      %50 = arith.addf %47, %49 : vector<1x128xf32>
      %c0_21 = arith.constant 0 : index
      %c0_22 = arith.constant 0 : index
      %51 = vector.load %arg13[%c0_21, %c0_22] : memref<1x128xf32, #tpu.memory_space<vmem>>, vector<1x128xf32>
      tpu.vector_store %arg13[%c0_21, %c0_22], %50 {strides = array<i32>} : memref<1x128xf32, #tpu.memory_space<vmem>>, vector<1x128xf32>,
      %c0_23 = arith.constant 0 : index
      %c0_24 = arith.constant 0 : index
      %52 = vector.load %arg14[%c0_23, %c0_24] : memref<1x128xf32, #tpu.memory_space<vmem>>, vector<1x128xf32>
      %53 = arith.mulf %46, %46 : vector<304x128xf32>
      %cst_25 = arith.constant dense<0.000000e+00> : vector<128xf32>
      %54 = vector.multi_reduction <add>, %53, %cst_25 [0] : vector<304x128xf32> to vector<128xf32>
      %55 = vector.shape_cast %54 : vector<128xf32> to vector<1x128xf32>
      %56 = arith.addf %52, %55 : vector<1x128xf32>
      %c0_26 = arith.constant 0 : index
      %c0_27 = arith.constant 0 : index
      %57 = vector.load %arg14[%c0_26, %c0_27] : memref<1x128xf32, #tpu.memory_space<vmem>>, vector<1x128xf32>
      tpu.vector_store %arg14[%c0_26, %c0_27], %56 {strides = array<i32>} : memref<1x128xf32, #tpu.memory_space<vmem>>, vector<1x128xf32>,
    } else {
    }
    %c2_i32 = arith.constant 2 : i32
    %18 = arith.cmpi eq, %arg0, %c2_i32 : i32
    %19 = arith.extui %18 : i1 to i32
    %c0_i32_8 = arith.constant 0 : i32
    %20 = arith.cmpi ne, %19, %c0_i32_8 : i32
    scf.if %20 {
      %21 = arith.index_cast %1 : i32 to index
      %c0 = arith.constant 0 : index
      %22 = vector.load %arg12[%21, %c0] : memref<304x128xf32, #tpu.memory_space<vmem>>, vector<304x128xf32>
      %c0_9 = arith.constant 0 : index
      %c0_10 = arith.constant 0 : index
      %23 = vector.load %arg15[%c0_9, %c0_10] : memref<1x128xf32, #tpu.memory_space<vmem>>, vector<1x128xf32>
      %24 = vector.broadcast %23 : vector<1x128xf32> to vector<304x128xf32>
      %25 = arith.mulf %22, %24 : vector<304x128xf32>
      %c0_11 = arith.constant 0 : index
      %c0_12 = arith.constant 0 : index
      %26 = vector.load %arg16[%c0_11, %c0_12] : memref<1x128xf32, #tpu.memory_space<vmem>>, vector<1x128xf32>
      %27 = vector.broadcast %26 : vector<1x128xf32> to vector<304x128xf32>
      %28 = arith.addf %25, %27 : vector<304x128xf32>
      %29 = arith.negf %28 : vector<304x128xf32>
      %30 = math.exp %29 : vector<304x128xf32>
      %cst = arith.constant 1.000000e+00 : f32
      %31 = vector.broadcast %cst : f32 to vector<304x128xf32>
      %32 = arith.addf %31, %30 : vector<304x128xf32>
      %33 = arith.divf %31, %32 : vector<304x128xf32>
      %c0_13 = arith.constant 0 : index
      %c0_14 = arith.constant 0 : index
      %34 = vector.load %arg5[%c0_13, %c0_14] : memref<128x128xf32, #tpu.memory_space<vmem>>, vector<128x128xf32>
      %cst_15 = arith.constant dense<0.000000e+00> : vector<304x128xf32>
      %35 = tpu.matmul %33, %34, %cst_15 {dimension_numbers = #tpu.dot_dimension_numbers<[1], [0], [0], [1], [0, 0, 1, 1], [], []>} : vector<304x128xf32>, vector<128x128xf32>, vector<304x128xf32> -> vector<304x128xf32>
      %c0_16 = arith.constant 0 : index
      %c0_17 = arith.constant 0 : index
      %36 = vector.load %arg6[%c0_16, %c0_17] : memref<1x128xf32, #tpu.memory_space<vmem>>, vector<1x128xf32>
      %37 = vector.broadcast %36 : vector<1x128xf32> to vector<304x128xf32>
      %38 = arith.addf %35, %37 : vector<304x128xf32>
      %c0_18 = arith.constant 0 : index
      %c0_19 = arith.constant 0 : index
      %39 = vector.load %arg11[%c0_18, %c0_19] : memref<304x128xf32, #tpu.memory_space<vmem>>, vector<304x128xf32>
      tpu.vector_store %arg11[%c0_18, %c0_19], %38 {strides = array<i32>} : memref<304x128xf32, #tpu.memory_space<vmem>>, vector<304x128xf32>,
    } else {
    }
    return
  }
  func.func @transform_0(%arg0: i32, %arg1: i32) -> (i32, i32) {
    %c0_i32 = arith.constant 0 : i32
    %0 = arith.cmpi eq, %arg0, %c0_i32 : i32
    %c0_i32_0 = arith.constant 0 : i32
    %1 = arith.select %0, %arg1, %c0_i32_0 : i32
    %c0_i32_1 = arith.constant 0 : i32
    %c0_i32_2 = arith.constant 0 : i32
    return %1, %c0_i32_1 : i32, i32
  }
  func.func @transform_1(%arg0: i32, %arg1: i32) -> (i32, i32) {
    %c0_i32 = arith.constant 0 : i32
    %c0_i32_0 = arith.constant 0 : i32
    %c0_i32_1 = arith.constant 0 : i32
    return %c0_i32, %c0_i32_0 : i32, i32
  }
  func.func @transform_2(%arg0: i32, %arg1: i32) -> (i32, i32) {
    %c0_i32 = arith.constant 0 : i32
    %c0_i32_0 = arith.constant 0 : i32
    %c0_i32_1 = arith.constant 0 : i32
    return %c0_i32, %c0_i32_0 : i32, i32
  }
  func.func @transform_3(%arg0: i32, %arg1: i32) -> (i32, i32) {
    %c0_i32 = arith.constant 0 : i32
    %c0_i32_0 = arith.constant 0 : i32
    %c0_i32_1 = arith.constant 0 : i32
    return %c0_i32, %c0_i32_0 : i32, i32
  }
  func.func @transform_4(%arg0: i32, %arg1: i32) -> (i32, i32) {
    %c0_i32 = arith.constant 0 : i32
    %c0_i32_0 = arith.constant 0 : i32
    %c0_i32_1 = arith.constant 0 : i32
    return %c0_i32, %c0_i32_0 : i32, i32
  }
  func.func @transform_5(%arg0: i32, %arg1: i32) -> (i32, i32) {
    %c0_i32 = arith.constant 0 : i32
    %c0_i32_0 = arith.constant 0 : i32
    %c0_i32_1 = arith.constant 0 : i32
    return %c0_i32, %c0_i32_0 : i32, i32
  }
  func.func @transform_6(%arg0: i32, %arg1: i32) -> (i32, i32) {
    %c0_i32 = arith.constant 0 : i32
    %c0_i32_0 = arith.constant 0 : i32
    %c0_i32_1 = arith.constant 0 : i32
    return %c0_i32, %c0_i32_0 : i32, i32
  }
  func.func @transform_7(%arg0: i32, %arg1: i32) -> (i32, i32) {
    %c0_i32 = arith.constant 0 : i32
    %c0_i32_0 = arith.constant 0 : i32
    %c0_i32_1 = arith.constant 0 : i32
    return %c0_i32, %c0_i32_0 : i32, i32
  }
  func.func @transform_8(%arg0: i32, %arg1: i32) -> (i32, i32) {
    %c0_i32 = arith.constant 0 : i32
    %c0_i32_0 = arith.constant 0 : i32
    %c0_i32_1 = arith.constant 0 : i32
    return %c0_i32, %c0_i32_0 : i32, i32
  }
  func.func @transform_9(%arg0: i32, %arg1: i32) -> (i32, i32) {
    %c2_i32 = arith.constant 2 : i32
    %0 = arith.cmpi eq, %arg0, %c2_i32 : i32
    %c0_i32 = arith.constant 0 : i32
    %1 = arith.select %0, %arg1, %c0_i32 : i32
    %c0_i32_0 = arith.constant 0 : i32
    %c0_i32_1 = arith.constant 0 : i32
    return %1, %c0_i32_0 : i32, i32
  }
}

</mosaic_0001>

<bundles_post_ra>
// kernel: ann_forward.1
= control target key start
LH: loop header
LB: loop body
LE: loop exit
PB: predicated region body
PF: predicated region fallthrough
CT: control target
= control target key end

     0   :  { %s4046_s30 = smov 0   ;;  %s4048_s10 = smov 0   ;;  %s6503_s0 = inlined_call_operand.vmem [shape: f32[304,32], index: 0, kind: input, shape index: {}]   ;;  %s6504_s1 = inlined_call_operand.vmem [shape: f32[32,128], index: 1, kind: input, shape index: {}]   ;;  %s6505_s2 = inlined_call_operand.vmem [shape: f32[128,128], index: 2, kind: input, shape index: {}]   ;;  %s6506_s3 = inlined_call_operand.vmem [shape: f32[128,128], index: 3, kind: input, shape index: {}]   ;;  %s6507_s4 = inlined_call_operand.vmem [shape: f32[1,128], index: 4, kind: input, shape index: {}]   ;;  %s6508_s5 = inlined_call_operand.vmem [shape: f32[1,128], index: 5, kind: input, shape index: {}]   ;;  %s6509_s6 = inlined_call_operand.vmem [shape: f32[1,128], index: 6, kind: input, shape index: {}]   ;;  %s6510_s7 = inlined_call_operand.vmem [shape: f32[1,128], index: 7, kind: input, shape index: {}]   ;;  %s6511_s8 = inlined_call_operand.vmem [shape: f32[1,128], index: 8, kind: input, shape index: {}]   ;;  %s6512_s9 = inlined_call_operand.vmem [shape: f32[304,128], index: 9, kind: output, shape index: {}]  }
   0x1   :  { %s4050_s11 = smov 0  }
   0x2 LB: > { %s31_s12 = sadd.s32 1, %s3988_s10  ;;  %p3395_p0 = scmp.ge.s32.totalorder %s3992_s11, 1  ;;  %s3992_s11 = sphi %s4050_s11, %s19_s11   ;;  %s3988_s10 = sphi %s4048_s10, %s6780_s10   ;;  %s3984_s30 = sphi %s4046_s30, %s6779_s30  }
   0x3   : > { %p33_p1 = scmp.ge.s32.totalorder %s31_s12, 3  ;;  %p312_p2 = scmp.lt.s32.totalorder %s3992_s11, 4 }
   0x5   : > { %s6782_s12 = smov (%p33_p1, %s31_s12), 0  ;;  %p313_p3 = pnand %p3395_p0, %p312_p2 }
   0x6   : > { %p373_p4 = scmp.eq.s32.totalorder (!%p313_p3), %s3984_s30, 0 }
   0x7   : > { %316 = sbr.rel (%p313_p3) target bundleno = 1020 (0x3fc), region = 56 }
   0xc   : > { %378 = sbr.rel (!%p373_p4) target bundleno = 17 (0x11), region = 60  ;;  %v3994_v0 = vmov (%p373_p4), 0.0  }
   0xd   : > { %379 = vst [vmem:[#allocation3] sm:$0x1] (%p373_p4), %v3994_v0 }
   0xe   : > { %380 = vst [vmem:[#allocation4] sm:$0x1] (%p373_p4), %v3994_v0 }
  0x11 PF: > { %p381_p5 = scmp.ge.s32.totalorder %s3984_s30, 1 }
  0x12   : > { %v3995_v6 = vmov (%p381_p5), 0.0   ;;  %p393_p6 = scmp.eq.s32.totalorder (%p381_p5), %s3984_s30, 1  ;;  %v394_v15 = vld [vmem:[%s6508_s5] sm:$0x1] (%p381_p5) }
  0x13   : > { %385 = sbr.rel (!%p381_p5) target bundleno = 56 (0x38), region = 64  ;;  %v395_v16 = vld [vmem:[%s6510_s7] sm:$0x1] (%p381_p5) }
  0x14   : > { %v386_v1 = vld [vmem:[#allocation3] sm:$0x1] (%p381_p5)  ;;  %v400_v20 = vld [vmem:[%s6509_s6] sm:$0x1] (%p381_p5) }
  0x15   : > { %v388_v2 = vld [vmem:[#allocation4] sm:$0x1] (%p381_p5)  ;;  %v387_v3 = vmul.f32 (%p381_p5), 0.0033333334, %v386_v1  ;;  %419 = vst [vmem:[#allocation3] sm:$0x1] (%p381_p5), %v3995_v6 }
  0x16   : > { %v389_v4 = vmul.f32 (%p381_p5), 0.0033333334, %v388_v2  ;;  %420 = vst [vmem:[#allocation4] sm:$0x1] (%p381_p5), %v3995_v6  ;;  %v401_v21 = vld [vmem:[%s6511_s8] sm:$0x1] (%p381_p5) }
  0x17   : > { %v390_v5 = vmul.f32 (%p381_p5), %v387_v3, %v387_v3 }
  0x18   : > { %s396_s13 = scalar_select %p393_p6, 1, 0 }
  0x19   : > { %v391_v7 = vsub.f32 %v389_v4, %v390_v5 }
  0x1a   : > { %v397_v12 = vstv %s396_s13 }
  0x1b   : > { %v392_v8 = vmax.f32 %v391_v7, 0.0  ;;  %vm398_vm2 = vcmp.eq.s32.totalorder %v397_v12, 1 }
  0x1c   : > { %v399_v18 = vsel %vm398_vm2, %v394_v15, %v395_v16  ;;  %v402_v24 = vsel %vm398_vm2, %v400_v20, %v401_v21 }
  0x1d   : > { %v403_v9 = vadd.f32 1e-05, %v392_v8 }
  0x1f   : > { %3655 = vrsqrt.f32 %v403_v9  ;;  %vm410_vm0 = vweird.f32 %v403_v9 }
  0x25   : > { %v3656_v10 = vpop.eup %3655 }
  0x26   : > { %v405_v11 = vmul.f32 %v3656_v10, %v403_v9  ;;  %vm411_vm1 = vweird.f32 %v3656_v10 }
  0x27   : > { %vm412_vm3 = vmor %vm410_vm0, %vm411_vm1 }
  0x28   : > { %v406_v13 = vmul.f32 %v3656_v10, %v405_v11 }
  0x2a   : > { %v407_v14 = vmul.f32 0.5, %v406_v13 }
  0x2c   : > { %v408_v17 = vsub.f32 1.5, %v407_v14 }
  0x2e   : > { %v409_v19 = vmul.f32 %v3656_v10, %v408_v17 }
  0x30   : > { %v413_v22 = vsel %vm412_vm3, %v3656_v10, %v409_v19 }
  0x31   : > { %v414_v23 = vmul.f32 %v413_v22, %v399_v18 }
  0x33   : > { %415 = vst [vmem:[#allocation5] sm:$0x1] %v414_v23  ;;  %v416_v25 = vmul.f32 %v414_v23, %v387_v3 }
  0x35   : > { %v417_v26 = vsub.f32 %v402_v24, %v416_v25 }
  0x37   : > { %418 = vst [vmem:[#allocation6] sm:$0x1] %v417_v26 }
  0x38 PF: > { %p3398_p7 = scmp.ne.s32.totalorder %s3984_s30, 0 }
  0x3a   : > { %423 = sbr.rel (%p3398_p7) target bundleno = 338 (0x152), region = 68 }
  0x3f   : > { %v465_v27 = vld [vmem:[%s6504_s1 + $0x18] sm:$0xff]  ;;  %v464_v28 = vld [vmem:[%s6504_s1 + $0x10] sm:$0xff]  ;;  %v463_v29 = vld [vmem:[%s6504_s1 + $0x8] sm:$0xff]  ;;  %vm466_vm4 = vcmask 261120  }
  0x40   : > { %593 = vmatpush.msra.mxu0 %v465_v27  ;;  %3521 = vmatpush.msra.mxu1 %v465_v27  ;;  %v462_v30 = vld [vmem:[%s6504_s1] sm:$0xff]  ;;  %v433_v32 = vld [vmem:[%s6503_s0 + $0x48] sm:$0xff]  ;;  %v443_v33 = vld [vmem:[%s6503_s0 + $0x98] sm:$0xff] }
  0x41   : > { %3522 = vmatpush.msra.mxu2 %v465_v27  ;;  %3523 = vmatpush.msra.mxu3 %v465_v27  ;;  %v424_v31 = vld [vmem:[%s6503_s0] sm:$0xff]  ;;  %v425_v34 = vld [vmem:[%s6503_s0 + $0x8] sm:$0xff]  ;;  %v434_v35 = vld [vmem:[%s6503_s0 + $0x50] sm:$0xff] }
  0x42   : > { %594 = vmatpush.msra.mxu0 %v464_v28  ;;  %3524 = vmatpush.msra.mxu1 %v464_v28  ;;  %v444_v36 = vld [vmem:[%s6503_s0 + $0xa0] sm:$0xff]  ;;  %v426_v37 = vld [vmem:[%s6503_s0 + $0x10] sm:$0xff]  ;;  %v435_v38 = vld [vmem:[%s6503_s0 + $0x58] sm:$0xff] }
  0x43   : > { %3525 = vmatpush.msra.mxu2 %v464_v28  ;;  %3526 = vmatpush.msra.mxu3 %v464_v28  ;;  %v445_v39 = vld [vmem:[%s6503_s0 + $0xa8] sm:$0xff]  ;;  %v427_v41 = vld [vmem:[%s6503_s0 + $0x18] sm:$0xff]  ;;  %v436_v42 = vld [vmem:[%s6503_s0 + $0x60] sm:$0xff] }
  0x44   : > { %595 = vmatpush.msra.mxu0 %v463_v29  ;;  %3527 = vmatpush.msra.mxu1 %v463_v29  ;;  %v453_v40 = vld [vmem:[%s6503_s0 + $0xe8] sm:$0xff]  ;;  %v446_v43 = vld [vmem:[%s6503_s0 + $0xb0] sm:$0xff]  ;;  %v428_v45 = vld [vmem:[%s6503_s0 + $0x20] sm:$0xff] }
  0x45   : > { %3528 = vmatpush.msra.mxu2 %v463_v29  ;;  %3529 = vmatpush.msra.mxu3 %v463_v29  ;;  %v454_v44 = vld [vmem:[%s6503_s0 + $0xf0] sm:$0xff]  ;;  %v437_v46 = vld [vmem:[%s6503_s0 + $0x68] sm:$0xff]  ;;  %v447_v47 = vld [vmem:[%s6503_s0 + $0xb8] sm:$0xff] }
  0x46   : > { %596 = vmatpush.msra.mxu0 %v462_v30  ;;  %3530 = vmatpush.msra.mxu1 %v462_v30  ;;  %v455_v48 = vld [vmem:[%s6503_s0 + $0xf8] sm:$0xff]  ;;  %v429_v49 = vld [vmem:[%s6503_s0 + $0x28] sm:$0xff]  ;;  %v438_v50 = vld [vmem:[%s6503_s0 + $0x70] sm:$0xff] }
  0x47   : > { %3399 = vmatmul.msk.f32.vlgmr.msra.gmra.mxu0 %vm466_vm4, %v424_v31  ;;  %3408 = vmatmul.msk.f32.vlgmr.msra.gmra.mxu1 %vm466_vm4, %v433_v32  ;;  %v456_v51 = vld [vmem:[%s6503_s0 + $0x100] sm:$0xff]  ;;  %v430_v53 = vld [vmem:[%s6503_s0 + $0x30] sm:$0xff]  ;;  %v439_v54 = vld [vmem:[%s6503_s0 + $0x78] sm:$0xff] }
  0x48   : > { %3531 = vmatpush.msra.mxu2 %v462_v30  ;;  %3532 = vmatpush.msra.mxu3 %v462_v30  ;;  %v448_v52 = vld [vmem:[%s6503_s0 + $0xc0] sm:$0xff]  ;;  %v457_v55 = vld [vmem:[%s6503_s0 + $0x108] sm:$0xff]  ;;  %v431_v57 = vld [vmem:[%s6503_s0 + $0x38] sm:$0xff] }
  0x49   : > { %3418 = vmatmul.msk.f32.vlgmr.msra.gmra.mxu2 %vm466_vm4, %v443_v33  ;;  %3428 = vmatmul.msk.f32.vlgmr.msra.gmra.mxu3 %vm466_vm4, %v453_v40  ;;  %v449_v56 = vld [vmem:[%s6503_s0 + $0xc8] sm:$0xff]  ;;  %v440_v58 = vld [vmem:[%s6503_s0 + $0x80] sm:$0xff]  ;;  %v458_v59 = vld [vmem:[%s6503_s0 + $0x110] sm:$0xff] }
  0x4a   : > { %v450_v60 = vld [vmem:[%s6503_s0 + $0xd0] sm:$0xff]  ;;  %v432_v61 = vld [vmem:[%s6503_s0 + $0x40] sm:$0xff]  ;;  %v441_v62 = vld [vmem:[%s6503_s0 + $0x88] sm:$0xff] }
  0x4b   : > { %v459_v63 = vld [vmem:[%s6503_s0 + $0x118] sm:$0xff]  ;;  %v442_v1 = vld [vmem:[%s6503_s0 + $0x90] sm:$0xff]  ;;  %v460_v2 = vld [vmem:[%s6503_s0 + $0x120] sm:$0xff] }
  0x4c   : > { %v451_v0 = vld [vmem:[%s6503_s0 + $0xd8] sm:$0xff]  ;;  %v452_v3 = vld [vmem:[%s6503_s0 + $0xe0] sm:$0xff]  ;;  %v461_v4 = vld [vmem:[%s6503_s0 + $0x128] sm:$0xff] }
  0x4f   : > { %3400 = vmatmul.msk.f32.gmra.mxu0 %vm466_vm4, %v425_v34  ;;  %3409 = vmatmul.msk.f32.gmra.mxu1 %vm466_vm4, %v434_v35 }
  0x51   : > { %3419 = vmatmul.msk.f32.gmra.mxu2 %vm466_vm4, %v444_v36  ;;  %3429 = vmatmul.msk.f32.gmra.mxu3 %vm466_vm4, %v454_v44 }
  0x57   : > { %3401 = vmatmul.msk.f32.gmra.mxu0 %vm466_vm4, %v426_v37  ;;  %3410 = vmatmul.msk.f32.gmra.mxu1 %vm466_vm4, %v435_v38 }
  0x59   : > { %3420 = vmatmul.msk.f32.gmra.mxu2 %vm466_vm4, %v445_v39  ;;  %3430 = vmatmul.msk.f32.gmra.mxu3 %vm466_vm4, %v455_v48 }
  0x5f   : > { %3402 = vmatmul.msk.f32.gmra.mxu0 %vm466_vm4, %v427_v41  ;;  %3411 = vmatmul.msk.f32.gmra.mxu1 %vm466_vm4, %v436_v42 }
  0x61   : > { %3421 = vmatmul.msk.f32.gmra.mxu2 %vm466_vm4, %v446_v43  ;;  %3431 = vmatmul.msk.f32.gmra.mxu3 %vm466_vm4, %v456_v51 }
  0x67   : > { %3403 = vmatmul.msk.f32.gmra.mxu0 %vm466_vm4, %v428_v45  ;;  %3412 = vmatmul.msk.f32.gmra.mxu1 %vm466_vm4, %v437_v46 }
  0x69   : > { %3422 = vmatmul.msk.f32.gmra.mxu2 %vm466_vm4, %v447_v47  ;;  %3432 = vmatmul.msk.f32.gmra.mxu3 %vm466_vm4, %v457_v55 }
  0x6f   : > { %3404 = vmatmul.msk.f32.gmra.mxu0 %vm466_vm4, %v429_v49  ;;  %3413 = vmatmul.msk.f32.gmra.mxu1 %vm466_vm4, %v438_v50 }
  0x71   : > { %3423 = vmatmul.msk.f32.gmra.mxu2 %vm466_vm4, %v448_v52  ;;  %3433 = vmatmul.msk.f32.gmra.mxu3 %vm466_vm4, %v458_v59 }
  0x77   : > { %3405 = vmatmul.msk.f32.gmra.mxu0 %vm466_vm4, %v430_v53  ;;  %3414 = vmatmul.msk.f32.gmra.mxu1 %vm466_vm4, %v439_v54 }
  0x79   : > { %3424 = vmatmul.msk.f32.gmra.mxu2 %vm466_vm4, %v449_v56  ;;  %3434 = vmatmul.msk.f32.gmra.mxu3 %vm466_vm4, %v459_v63 }
  0x7f   : > { %3406 = vmatmul.msk.f32.gmra.mxu0 %vm466_vm4, %v431_v57  ;;  %3415 = vmatmul.msk.f32.gmra.mxu1 %vm466_vm4, %v440_v58 }
  0x81   : > { %3425 = vmatmul.msk.f32.gmra.mxu2 %vm466_vm4, %v450_v60  ;;  %3435 = vmatmul.msk.f32.gmra.mxu3 %vm466_vm4, %v460_v2 }
  0x87   : > { %3407 = vmatmul.msk.f32.gmra.mxu0 %vm466_vm4, %v432_v61  ;;  %3416 = vmatmul.msk.f32.gmra.mxu1 %vm466_vm4, %v441_v62 }
  0x89   : > { %3426 = vmatmul.msk.f32.gmra.mxu2 %vm466_vm4, %v451_v0  ;;  %3436 = vmatmul.msk.f32.gmra.mxu3 %vm466_vm4, %v461_v4 }
  0x8f   : > { %3417 = vmatmul.msk.f32.gmra.mxu1 %vm466_vm4, %v442_v1 }
  0x91   : > { %3427 = vmatmul.msk.f32.gmra.mxu2 %vm466_vm4, %v452_v3 }
  0xc4   : > { %v598_v5 = vpop.f32.mrf.mxu0  ;;  %v4246_v6 = vpop.f32.mrf.mxu1 }
  0xc5   : > { %713 = vst [vmem:[#allocation2 + $0xb0] sm:$0xff] %v598_v5  ;;  %v798_v30 = vmul.f32 %v598_v5, %v598_v5  ;;  %v807_v61 = vmul.f32 %v4246_v6, %v4246_v6 }
  0xc6   : > { %722 = vst [vmem:[#allocation2 + $0x88] sm:$0xff] %v4246_v6 }
  0xcc   : > { %v601_v7 = vpop.f32.mrf.mxu0  ;;  %v4249_v8 = vpop.f32.mrf.mxu1 }
  0xcd   : > { %714 = vst [vmem:[#allocation2 + $0xd0] sm:$0xff] %v601_v7  ;;  %v4251_v9 = vpop.f32.mrf.mxu2  ;;  %v4266_v16 = vpop.f32.mrf.mxu3  ;;  %v799_v27 = vmul.f32 %v601_v7, %v601_v7  ;;  %v752_v31 = vadd.f32 %v601_v7, %v598_v5  ;;  %v808_v0 = vmul.f32 %v4249_v8, %v4249_v8 }
  0xce   : > { %723 = vst [vmem:[#allocation2 + $0x110] sm:$0xff] %v4249_v8 }
  0xcf   : > { %732 = vst [vmem:[#allocation2 + $0x98] sm:$0xff] %v4251_v9  ;;  %v836_v33 = vadd.f32 %v799_v27, %v798_v30 }
  0xd0   : > { %742 = vst [vmem:[#allocation2] sm:$0xff] %v4266_v16 }
  0xd4   : > { %v604_v10 = vpop.f32.mrf.mxu0  ;;  %v4255_v11 = vpop.f32.mrf.mxu1 }
  0xd5   : > { %715 = vst [vmem:[#allocation2 + $0x10] sm:$0xff] %v604_v10  ;;  %v4257_v12 = vpop.f32.mrf.mxu2  ;;  %v4275_v20 = vpop.f32.mrf.mxu3  ;;  %v800_v32 = vmul.f32 %v604_v10, %v604_v10  ;;  %v753_v34 = vadd.f32 %v752_v31, %v604_v10  ;;  %v809_v3 = vmul.f32 %v4255_v11, %v4255_v11 }
  0xd6   : > { %724 = vst [vmem:[#allocation2 + $0xf0] sm:$0xff] %v4255_v11 }
  0xd7   : > { %733 = vst [vmem:[#allocation2 + $0xa8] sm:$0xff] %v4257_v12  ;;  %v837_v36 = vadd.f32 %v836_v33, %v800_v32 }
  0xd8   : > { %743 = vst [vmem:[#allocation2 + $0xd8] sm:$0xff] %v4275_v20 }
  0xdc   : > { %v607_v13 = vpop.f32.mrf.mxu0  ;;  %v4261_v14 = vpop.f32.mrf.mxu1 }
  0xdd   : > { %716 = vst [vmem:[#allocation2 + $0x48] sm:$0xff] %v607_v13  ;;  %v4263_v15 = vpop.f32.mrf.mxu2  ;;  %v4284_v24 = vpop.f32.mrf.mxu3  ;;  %v801_v35 = vmul.f32 %v607_v13, %v607_v13  ;;  %v754_v37 = vadd.f32 %v753_v34, %v607_v13 }
  0xde   : > { %725 = vst [vmem:[#allocation2 + $0x40] sm:$0xff] %v4261_v14 }
  0xdf   : > { %734 = vst [vmem:[#allocation2 + $0x90] sm:$0xff] %v4263_v15  ;;  %v838_v41 = vadd.f32 %v837_v36, %v801_v35 }
  0xe0   : > { %744 = vst [vmem:[#allocation2 + $0x28] sm:$0xff] %v4284_v24 }
  0xe4   : > { %v610_v17 = vpop.f32.mrf.mxu0  ;;  %v4270_v18 = vpop.f32.mrf.mxu1 }
  0xe5   : > { %717 = vst [vmem:[#allocation2 + $0x120] sm:$0xff] %v610_v17  ;;  %v4272_v19 = vpop.f32.mrf.mxu2  ;;  %v4293_v29 = vpop.f32.mrf.mxu3  ;;  %v802_v38 = vmul.f32 %v610_v17, %v610_v17  ;;  %v755_v42 = vadd.f32 %v754_v37, %v610_v17 }
  0xe6   : > { %726 = vst [vmem:[#allocation2 + $0xc8] sm:$0xff] %v4270_v18 }
  0xe7   : > { %735 = vst [vmem:[#allocation2 + $0xe0] sm:$0xff] %v4272_v19  ;;  %v839_v46 = vadd.f32 %v838_v41, %v802_v38 }
  0xe8   : > { %745 = vst [vmem:[#allocation2 + $0x60] sm:$0xff] %v4293_v29 }
  0xec   : > { %v613_v21 = vpop.f32.mrf.mxu0  ;;  %v4279_v22 = vpop.f32.mrf.mxu1 }
  0xed   : > { %718 = vst [vmem:[#allocation2 + $0x38] sm:$0xff] %v613_v21  ;;  %v4281_v23 = vpop.f32.mrf.mxu2  ;;  %v803_v43 = vmul.f32 %v613_v21, %v613_v21  ;;  %v4299_v45 = vpop.f32.mrf.mxu3  ;;  %v756_v47 = vadd.f32 %v755_v42, %v613_v21 }
  0xee   : > { %727 = vst [vmem:[#allocation2 + $0x30] sm:$0xff] %v4279_v22 }
  0xef   : > { %736 = vst [vmem:[#allocation2 + $0xf8] sm:$0xff] %v4281_v23  ;;  %v840_v49 = vadd.f32 %v839_v46, %v803_v43  ;;  %v817_v46 = vmul.f32 %v4251_v9, %v4251_v9 }
  0xf0   : > { %746 = vst [vmem:[#allocation2 + $0x68] sm:$0xff] %v4299_v45 }
  0xf4   : > { %v616_v25 = vpop.f32.mrf.mxu0  ;;  %v4288_v26 = vpop.f32.mrf.mxu1 }
  0xf5   : > { %719 = vst [vmem:[#allocation2 + $0x70] sm:$0xff] %v616_v25  ;;  %v4290_v28 = vpop.f32.mrf.mxu2  ;;  %v804_v48 = vmul.f32 %v616_v25, %v616_v25  ;;  %v757_v50 = vadd.f32 %v756_v47, %v616_v25  ;;  %v4305_v60 = vpop.f32.mrf.mxu3  ;;  %v813_v31 = vmul.f32 %v4288_v26, %v4288_v26 }
  0xf6   : > { %728 = vst [vmem:[#allocation2 + $0x20] sm:$0xff] %v4288_v26 }
  0xf7   : > { %737 = vst [vmem:[#allocation2 + $0xa0] sm:$0xff] %v4290_v28  ;;  %v841_v52 = vadd.f32 %v840_v49, %v804_v48 }
  0xf8   : > { %747 = vst [vmem:[#allocation2 + $0x18] sm:$0xff] %v4305_v60 }
  0xfc   : > { %v619_v39 = vpop.f32.mrf.mxu0  ;;  %v646_v40 = vpop.f32.mrf.mxu1 }
  0xfd   : > { %720 = vst [vmem:[#allocation2 + $0x100] sm:$0xff] %v619_v39  ;;  %v4297_v44 = vpop.f32.mrf.mxu2  ;;  %v805_v51 = vmul.f32 %v619_v39, %v619_v39  ;;  %v758_v53 = vadd.f32 %v757_v50, %v619_v39  ;;  %v4321_v21 = vpop.f32.mrf.mxu3  ;;  %v814_v35 = vmul.f32 %v646_v40, %v646_v40 }
  0xfe   : > { %729 = vst [vmem:[#allocation2 + $0x128] sm:$0xff] %v646_v40 }
  0xff   : > { %738 = vst [vmem:[#allocation2 + $0x78] sm:$0xff] %v4297_v44  ;;  %v842_v56 = vadd.f32 %v841_v52, %v805_v51  ;;  %v819_v51 = vmul.f32 %v4263_v15, %v4263_v15 }
 0x100   : > { %748 = vst [vmem:[#allocation2 + $0x58] sm:$0xff] %v4321_v21 }
 0x104   : > { %v622_v54 = vpop.f32.mrf.mxu0  ;;  %v649_v55 = vpop.f32.mrf.mxu1 }
 0x105   : > { %721 = vst [vmem:[#allocation2 + $0x108] sm:$0xff] %v622_v54  ;;  %v759_v57 = vadd.f32 %v758_v53, %v622_v54  ;;  %v806_v58 = vmul.f32 %v622_v54, %v622_v54  ;;  %v4303_v59 = vpop.f32.mrf.mxu2  ;;  %v815_v41 = vmul.f32 %v649_v55, %v649_v55  ;;  %v820_v54 = vmul.f32 %v4272_v19, %v4272_v19 }
 0x106   : > { %730 = vst [vmem:[#allocation2 + $0x50] sm:$0xff] %v649_v55 }
 0x107   : > { %v760_v62 = vadd.f32 %v759_v57, %v4246_v6  ;;  %v843_v63 = vadd.f32 %v842_v56, %v806_v58  ;;  %739 = vst [vmem:[#allocation2 + $0xc0] sm:$0xff] %v4303_v59  ;;  %v810_v6 = vmul.f32 %v4261_v14, %v4261_v14  ;;  %v821_v56 = vmul.f32 %v4281_v23, %v4281_v23 }
 0x108   : > { %v822_v58 = vmul.f32 %v4290_v28, %v4290_v28 }
 0x109   : > { %v761_v1 = vadd.f32 %v760_v62, %v4249_v8  ;;  %v844_v2 = vadd.f32 %v843_v63, %v807_v61  ;;  %v811_v8 = vmul.f32 %v4270_v18, %v4270_v18  ;;  %v823_v62 = vmul.f32 %v4297_v44, %v4297_v44 }
 0x10b   : > { %v762_v4 = vadd.f32 %v761_v1, %v4255_v11  ;;  %v845_v5 = vadd.f32 %v844_v2, %v808_v0  ;;  %v812_v11 = vmul.f32 %v4279_v22, %v4279_v22  ;;  %v824_v1 = vmul.f32 %v4303_v59, %v4303_v59 }
 0x10c   : > { %v652_v7 = vpop.f32.mrf.mxu1 }
 0x10d   : > { %v763_v10 = vadd.f32 %v762_v4, %v4261_v14  ;;  %v846_v13 = vadd.f32 %v845_v5, %v809_v3  ;;  %731 = vst [vmem:[#allocation2 + $0x8] sm:$0xff] %v652_v7  ;;  %v679_v17 = vpop.f32.mrf.mxu2  ;;  %v816_v42 = vmul.f32 %v652_v7, %v652_v7 }
 0x10e   : > { %740 = vst [vmem:[#allocation2 + $0x80] sm:$0xff] %v679_v17  ;;  %v825_v4 = vmul.f32 %v679_v17, %v679_v17 }
 0x10f   : > { %v847_v25 = vadd.f32 %v846_v13, %v810_v6  ;;  %v764_v27 = vadd.f32 %v763_v10, %v4270_v18  ;;  %v706_v18 = vpop.f32.mrf.mxu3 }
 0x110   : > { %749 = vst [vmem:[#allocation2 + $0x118] sm:$0xff] %v706_v18 }
 0x111   : > { %v765_v30 = vadd.f32 %v764_v27, %v4279_v22  ;;  %v848_v14 = vadd.f32 %v847_v25, %v811_v8 }
 0x113   : > { %v766_v32 = vadd.f32 %v765_v30, %v4288_v26  ;;  %v849_v33 = vadd.f32 %v848_v14, %v812_v11  ;;  %v830_v11 = vmul.f32 %v4293_v29, %v4293_v29 }
 0x115   : > { %v767_v34 = vadd.f32 %v766_v32, %v646_v40  ;;  %v850_v36 = vadd.f32 %v849_v33, %v813_v31  ;;  %v682_v37 = vpop.f32.mrf.mxu2  ;;  %v818_v40 = vmul.f32 %v4257_v12, %v4257_v12 }
 0x116   : > { %741 = vst [vmem:[#allocation2 + $0xe8] sm:$0xff] %v682_v37  ;;  %v826_v5 = vmul.f32 %v682_v37, %v682_v37 }
 0x117   : > { %v851_v38 = vadd.f32 %v850_v36, %v814_v35  ;;  %v768_v39 = vadd.f32 %v767_v34, %v649_v55  ;;  %v709_v50 = vpop.f32.mrf.mxu3  ;;  %v833_v35 = vmul.f32 %v4321_v21, %v4321_v21 }
 0x118   : > { %750 = vst [vmem:[#allocation2 + $0xb8] sm:$0xff] %v709_v50 }
 0x119   : > { %v852_v43 = vadd.f32 %v851_v38, %v815_v41  ;;  %v769_v22 = vadd.f32 %v768_v39, %v652_v7  ;;  %v834_v38 = vmul.f32 %v706_v18, %v706_v18  ;;  %v835_v39 = vmul.f32 %v709_v50, %v709_v50 }
 0x11b   : > { %v770_v47 = vadd.f32 %v769_v22, %v4251_v9  ;;  %v853_v26 = vadd.f32 %v852_v43, %v816_v42 }
 0x11d   : > { %v771_v48 = vadd.f32 %v770_v47, %v4257_v12  ;;  %v854_v49 = vadd.f32 %v853_v26, %v817_v46 }
 0x11f   : > { %v772_v52 = vadd.f32 %v771_v48, %v4263_v15  ;;  %v855_v53 = vadd.f32 %v854_v49, %v818_v40 }
 0x121   : > { %v773_v9 = vadd.f32 %v772_v52, %v4272_v19  ;;  %v856_v55 = vadd.f32 %v855_v53, %v819_v51  ;;  %v751_v51 = vld [vmem:[#allocation3] sm:$0x1]  ;;  %v797_v53 = vld [vmem:[#allocation4] sm:$0x1] }
 0x123   : > { %v857_v57 = vadd.f32 %v856_v55, %v820_v54  ;;  %v774_v12 = vadd.f32 %v773_v9, %v4281_v23 }
 0x125   : > { %v775_v61 = vadd.f32 %v774_v12, %v4290_v28  ;;  %v858_v15 = vadd.f32 %v857_v57, %v821_v56  ;;  %v827_v28 = vmul.f32 %v4266_v16, %v4266_v16 }
 0x127   : > { %v776_v63 = vadd.f32 %v775_v61, %v4297_v44  ;;  %v859_v0 = vadd.f32 %v858_v15, %v822_v58  ;;  %v828_v44 = vmul.f32 %v4275_v20, %v4275_v20 }
 0x129   : > { %v777_v19 = vadd.f32 %v776_v63, %v4303_v59  ;;  %v860_v2 = vadd.f32 %v859_v0, %v823_v62  ;;  %v829_v59 = vmul.f32 %v4284_v24, %v4284_v24 }
 0x12b   : > { %v861_v3 = vadd.f32 %v860_v2, %v824_v1  ;;  %v778_v23 = vadd.f32 %v777_v19, %v679_v17 }
 0x12d   : > { %v862_v7 = vadd.f32 %v861_v3, %v825_v4  ;;  %v779_v6 = vadd.f32 %v778_v23, %v682_v37 }
 0x12f   : > { %v780_v10 = vadd.f32 %v779_v6, %v4266_v16  ;;  %v863_v13 = vadd.f32 %v862_v7, %v826_v5  ;;  %v831_v16 = vmul.f32 %v4299_v45, %v4299_v45 }
 0x131   : > { %v781_v8 = vadd.f32 %v780_v10, %v4275_v20  ;;  %v864_v25 = vadd.f32 %v863_v13, %v827_v28  ;;  %v832_v20 = vmul.f32 %v4305_v60, %v4305_v60 }
 0x133   : > { %v782_v17 = vadd.f32 %v781_v8, %v4284_v24  ;;  %v865_v27 = vadd.f32 %v864_v25, %v828_v44 }
 0x135   : > { %v866_v30 = vadd.f32 %v865_v27, %v829_v59  ;;  %v783_v14 = vadd.f32 %v782_v17, %v4293_v29 }
 0x137   : > { %v784_v31 = vadd.f32 %v783_v14, %v4299_v45  ;;  %v867_v32 = vadd.f32 %v866_v30, %v830_v11 }
 0x139   : > { %v785_v33 = vadd.f32 %v784_v31, %v4305_v60  ;;  %v868_v34 = vadd.f32 %v867_v32, %v831_v16 }
 0x13b   : > { %v786_v24 = vadd.f32 %v785_v33, %v4321_v21  ;;  %v869_v36 = vadd.f32 %v868_v34, %v832_v20 }
 0x13d   : > { %v870_v37 = vadd.f32 %v869_v36, %v833_v35  ;;  %v787_v29 = vadd.f32 %v786_v24, %v706_v18 }
 0x13f   : > { %v871_v41 = vadd.f32 %v870_v37, %v834_v38  ;;  %v788_v42 = vadd.f32 %v787_v29, %v709_v50 }
 0x141   : > { %v789_v45 = vrot.slane %v788_v42, 4  ;;  %v872_v43 = vadd.f32 %v871_v41, %v835_v39 }
 0x143   : > { %v790_v22 = vadd.f32 %v789_v45, %v788_v42  ;;  %v873_v46 = vrot.slane %v872_v43, 4 }
 0x145   : > { %v791_v47 = vrot.slane %v790_v22, 2  ;;  %v874_v26 = vadd.f32 %v873_v46, %v872_v43 }
 0x147   : > { %v792_v60 = vadd.f32 %v791_v47, %v790_v22  ;;  %v875_v40 = vrot.slane %v874_v26, 2 }
 0x149   : > { %v793_v48 = vrot.slane %v792_v60, 1  ;;  %v876_v49 = vadd.f32 %v875_v40, %v874_v26 }
 0x14b   : > { %v794_v52 = vadd.f32 %v793_v48, %v792_v60  ;;  %v877_v21 = vrot.slane %v876_v49, 1 }
 0x14d   : > { %v795_v54 = vadd.f32 %v794_v52, %v751_v51  ;;  %v878_v9 = vadd.f32 %v877_v21, %v876_v49 }
 0x14f   : > { %796 = vst [vmem:[#allocation3] sm:$0x1] %v795_v54  ;;  %v879_v18 = vadd.f32 %v878_v9, %v797_v53 }
 0x151   : > { %880 = vst [vmem:[#allocation4] sm:$0x1] %v879_v18 }
 0x152 PF: > { %p3437_p8 = scmp.ne.s32.totalorder %s3984_s30, 1 }
 0x154   : > { %884 = sbr.rel (%p3437_p8) target bundleno = 696 (0x2b8), region = 72 }
 0x159   : > { %v1745_v50 = vld [vmem:[%s6505_s2 + $0x78] sm:$0xff]  ;;  %v1744_v55 = vld [vmem:[%s6505_s2 + $0x70] sm:$0xff]  ;;  %v1743_v56 = vld [vmem:[%s6505_s2 + $0x68] sm:$0xff] }
 0x15a   : > { %1746 = vmatpush.msra.mxu0 %v1745_v50  ;;  %3533 = vmatpush.msra.mxu1 %v1745_v50  ;;  %v1742_v57 = vld [vmem:[%s6505_s2 + $0x60] sm:$0xff]  ;;  %v1741_v12 = vld [vmem:[%s6505_s2 + $0x58] sm:$0xff]  ;;  %v886_v58 = vld [vmem:[#allocation2 + $0xb0] sm:$0xff] }
 0x15b   : > { %3534 = vmatpush.msra.mxu2 %v1745_v50  ;;  %3535 = vmatpush.msra.mxu3 %v1745_v50  ;;  %v4394_v61 = vld [vmem:[#allocation5] ss:$0 sm:$0xff]  ;;  %v4396_v15 = vld [vmem:[#allocation6] ss:$0 sm:$0xff]  ;;  %v895_v0 = vld [vmem:[#allocation2 + $0x88] sm:$0xff] }
 0x15c   : > { %1747 = vmatpush.msra.mxu0 %v1744_v55  ;;  %3536 = vmatpush.msra.mxu1 %v1744_v55  ;;  %v887_v62 = vld [vmem:[#allocation2 + $0xd0] sm:$0xff]  ;;  %v928_v1 = vmul.f32 %v4394_v61, %v886_v58  ;;  %v889_v23 = vld [vmem:[#allocation2 + $0x48] sm:$0xff]  ;;  %v937_v5 = vmul.f32 %v4394_v61, %v895_v0  ;;  %v890_v25 = vld [vmem:[#allocation2 + $0x120] sm:$0xff] }
 0x15d   : > { %3537 = vmatpush.msra.mxu2 %v1744_v55  ;;  %3538 = vmatpush.msra.mxu3 %v1744_v55  ;;  %v888_v63 = vld [vmem:[#allocation2 + $0x10] sm:$0xff]  ;;  %v929_v2 = vmul.f32 %v4394_v61, %v887_v62  ;;  %v904_v4 = vld [vmem:[#allocation2 + $0x8] sm:$0xff]  ;;  %v931_v7 = vmul.f32 %v4394_v61, %v889_v23  ;;  %v1738_v59 = vld [vmem:[%s6505_s2 + $0x40] sm:$0xff]  ;;  %v932_v34 = vmul.f32 %v4394_v61, %v890_v25 }
 0x15e   : > { %1748 = vmatpush.msra.mxu0 %v1743_v56  ;;  %3539 = vmatpush.msra.mxu1 %v1743_v56  ;;  %v1740_v19 = vld [vmem:[%s6505_s2 + $0x50] sm:$0xff]  ;;  %v930_v3 = vmul.f32 %v4394_v61, %v888_v63  ;;  %v946_v6 = vmul.f32 %v4394_v61, %v904_v4  ;;  %v1739_v10 = vld [vmem:[%s6505_s2 + $0x48] sm:$0xff]  ;;  %v970_v13 = vadd.f32 %v4396_v15, %v928_v1  ;;  %v905_v30 = vld [vmem:[#allocation2 + $0x98] sm:$0xff] }
 0x15f   : > { %3540 = vmatpush.msra.mxu2 %v1743_v56  ;;  %3541 = vmatpush.msra.mxu3 %v1743_v56  ;;  %v896_v28 = vld [vmem:[#allocation2 + $0x110] sm:$0xff]  ;;  %v971_v44 = vadd.f32 %v4396_v15, %v929_v2  ;;  %v979_v17 = vadd.f32 %v4396_v15, %v937_v5  ;;  %v973_v27 = vadd.f32 %v4396_v15, %v931_v7  ;;  %v1737_v24 = vld [vmem:[%s6505_s2 + $0x38] sm:$0xff]  ;;  %v906_v42 = vld [vmem:[#allocation2 + $0xa8] sm:$0xff] }
 0x160   : > { %1749 = vmatpush.msra.mxu0 %v1742_v57  ;;  %3542 = vmatpush.msra.mxu1 %v1742_v57  ;;  %v972_v8 = vadd.f32 %v4396_v15, %v930_v3  ;;  %v988_v11 = vadd.f32 %v4396_v15, %v946_v6  ;;  %v897_v14 = vld [vmem:[#allocation2 + $0xf0] sm:$0xff]  ;;  %v3438_v16 = vmul.f32 -1.442695, %v970_v13  ;;  %v938_v20 = vmul.f32 %v4394_v61, %v896_v28  ;;  %v891_v41 = vld [vmem:[#allocation2 + $0x38] sm:$0xff]  ;;  %v898_v26 = vld [vmem:[#allocation2 + $0x40] sm:$0xff] }
 0x161   : > { %3543 = vmatpush.msra.mxu2 %v1742_v57  ;;  %3544 = vmatpush.msra.mxu3 %v1742_v57  ;;  %v3439_v31 = vmul.f32 -1.442695, %v971_v44  ;;  %v3447_v33 = vmul.f32 -1.442695, %v979_v17  ;;  %v3441_v35 = vmul.f32 -1.442695, %v973_v27  ;;  %v947_v37 = vmul.f32 %v4394_v61, %v905_v30 }
 0x162   : > { %1750 = vmatpush.msra.mxu0 %v1741_v12  ;;  %3545 = vmatpush.msra.mxu1 %v1741_v12  ;;  %v3440_v32 = vmul.f32 -1.442695, %v972_v8  ;;  %3659 = vpow2.f32 %v3438_v16  ;;  %v980_v36 = vadd.f32 %v4396_v15, %v938_v20  ;;  %v3456_v29 = vmul.f32 -1.442695, %v988_v11  ;;  %v1736_v45 = vld [vmem:[%s6505_s2 + $0x30] sm:$0xff]  ;;  %v1735_v60 = vld [vmem:[%s6505_s2 + $0x28] sm:$0xff] }
 0x163   : > { %3546 = vmatpush.msra.mxu2 %v1741_v12  ;;  %3547 = vmatpush.msra.mxu3 %v1741_v12  ;;  %3661 = vpow2.f32 %v3439_v31  ;;  %v974_v38 = vadd.f32 %v4396_v15, %v932_v34  ;;  %v939_v39 = vmul.f32 %v4394_v61, %v897_v14  ;;  %v989_v22 = vadd.f32 %v4396_v15, %v947_v37  ;;  %v914_v51 = vld [vmem:[#allocation2 + $0xe8] sm:$0xff]  ;;  %v1734_v21 = vld [vmem:[%s6505_s2 + $0x20] sm:$0xff]  ;;  %v1733_v56 = vld [vmem:[%s6505_s2 + $0x18] sm:$0xff] }
 0x164   : > { %1751 = vmatpush.msra.mxu0 %v1740_v19  ;;  %3548 = vmatpush.msra.mxu1 %v1740_v19  ;;  %3663 = vpow2.f32 %v3440_v32  ;;  %v3448_v43 = vmul.f32 -1.442695, %v980_v36  ;;  %v933_v46 = vmul.f32 %v4394_v61, %v891_v41  ;;  %v948_v47 = vmul.f32 %v4394_v61, %v906_v42  ;;  %v1732_v63 = vld [vmem:[%s6505_s2 + $0x10] sm:$0xff]  ;;  %v1731_v6 = vld [vmem:[%s6505_s2 + $0x8] sm:$0xff]  ;;  %v1730_v17 = vld [vmem:[%s6505_s2] sm:$0xff] }
 0x165   : > { %3549 = vmatpush.msra.mxu2 %v1740_v19  ;;  %3550 = vmatpush.msra.mxu3 %v1740_v19  ;;  %3665 = vpow2.f32 %v3447_v33  ;;  %v3442_v40 = vmul.f32 -1.442695, %v974_v38  ;;  %v940_v48 = vmul.f32 %v4394_v61, %v898_v26  ;;  %v981_v49 = vadd.f32 %v4396_v15, %v939_v39 }
 0x166   : > { %1752 = vmatpush.msra.mxu0 %v1739_v10  ;;  %3551 = vmatpush.msra.mxu1 %v1739_v10  ;;  %3667 = vpow2.f32 %v3441_v35  ;;  %v975_v53 = vadd.f32 %v4396_v15, %v933_v46  ;;  %v990_v54 = vadd.f32 %v4396_v15, %v948_v47  ;;  %v3457_v50 = vmul.f32 -1.442695, %v989_v22  ;;  %v892_v46 = vld [vmem:[#allocation2 + $0x70] sm:$0xff] }
 0x167   : > { %3552 = vmatpush.msra.mxu2 %v1739_v10  ;;  %3553 = vmatpush.msra.mxu3 %v1739_v10  ;;  %3669 = vpow2.f32 %v3456_v29  ;;  %v982_v12 = vadd.f32 %v4396_v15, %v940_v48  ;;  %v956_v58 = vmul.f32 %v4394_v61, %v914_v51  ;;  %v4457_v0 = vmul.f32 -1.442695, %v981_v49 }
 0x168   : > { %1753 = vmatpush.msra.mxu0 %v1738_v59  ;;  %3554 = vmatpush.msra.mxu1 %v1738_v59  ;;  %v3660_v52 = vpop.eup %3659  ;;  %3671 = vpow2.f32 %v3448_v43  ;;  %v4461_v2 = vmul.f32 -1.442695, %v975_v53  ;;  %v4463_v3 = vmul.f32 -1.442695, %v990_v54 }
 0x169   : > { %3555 = vmatpush.msra.mxu2 %v1738_v59  ;;  %3556 = vmatpush.msra.mxu3 %v1738_v59  ;;  %v3662_v9 = vpop.eup %3661  ;;  %v4444_v18 = vadd.f32 1.0, %v3660_v52  ;;  %3673 = vpow2.f32 %v3442_v40  ;;  %v4476_v13 = vmul.f32 -1.442695, %v982_v12  ;;  %v4479_v44 = vadd.f32 %v4396_v15, %v956_v58  ;;  %v915_v58 = vld [vmem:[#allocation2] sm:$0xff] }
 0x16a   : > { %1754 = vmatpush.msra.mxu0 %v1737_v24  ;;  %3557 = vmatpush.msra.mxu1 %v1737_v24  ;;  %v3664_v55 = vpop.eup %3663  ;;  %v4449_v57 = vadd.f32 1.0, %v3662_v9 }
 0x16b   : > { %3558 = vmatpush.msra.mxu2 %v1737_v24  ;;  %3559 = vmatpush.msra.mxu3 %v1737_v24  ;;  %v3666_v62 = vpop.eup %3665  ;;  %3675 = vrcp.f32 %v4444_v18  ;;  %v1169_v1 = vand.u32 2147483647, %v4444_v18  ;;  %v1171_v4 = vand.u32 2147483648, %v4444_v18  ;;  %v4466_v5 = vadd.f32 1.0, %v3664_v55 }
 0x16c   : > { %1755 = vmatpush.msra.mxu0 %v1736_v45  ;;  %3560 = vmatpush.msra.mxu1 %v1736_v45  ;;  %v3668_v19 = vpop.eup %3667  ;;  %3677 = vrcp.f32 %v4449_v57  ;;  %v4468_v7 = vadd.f32 1.0, %v3666_v62  ;;  %v1186_v28 = vand.u32 2147483648, %v4449_v57  ;;  %vm1165_vm5 = vweird.f32 %v4444_v18 }
 0x16d   : > { %3561 = vmatpush.msra.mxu2 %v1736_v45  ;;  %3562 = vmatpush.msra.mxu3 %v1736_v45  ;;  %v3670_v23 = vpop.eup %3669  ;;  %3679 = vpow2.f32 %v3457_v50  ;;  %v4474_v10 = vadd.f32 1.0, %v3668_v19  ;;  %vm1180_vm6 = vweird.f32 %v4449_v57  ;;  %v1201_v25 = vand.u32 2147483648, %v4466_v5 }
 0x16e   : > { %1756 = vmatpush.msra.mxu0 %v1735_v60  ;;  %3563 = vmatpush.msra.mxu1 %v1735_v60  ;;  %v4481_v8 = vpop.eup %3671  ;;  %3681 = vrcp.f32 %v4466_v5  ;;  %vm4492_vm7 = vcmp.eq.f32.partialorder %v1169_v1, 8.507059e+37  ;;  %v1184_v11 = vand.u32 2147483647, %v4449_v57  ;;  %v4498_v30 = vadd.f32 1.0, %v3670_v23 }
 0x16f   : > { %3564 = vmatpush.msra.mxu2 %v1735_v60  ;;  %3565 = vmatpush.msra.mxu3 %v1735_v60  ;;  %v4487_v59 = vpop.eup %3673  ;;  %3683 = vrcp.f32 %v4468_v7  ;;  %v1172_v16 = vor.u32 1.1754944e-38, %v1171_v4  ;;  %v1304_v31 = vand.u32 2147483647, %v4468_v7  ;;  %v1306_v32 = vand.u32 2147483648, %v4468_v7 }
 0x170   : > { %1757 = vmatpush.msra.mxu0 %v1734_v21  ;;  %3566 = vmatpush.msra.mxu1 %v1734_v21  ;;  %3685 = vrcp.f32 %v4474_v10  ;;  %v4506_v34 = vor.u32 1.1754944e-38, %v1186_v28  ;;  %vm1195_vm8 = vweird.f32 %v4466_v5  ;;  %v1199_v24 = vand.u32 2147483647, %v4466_v5 }
 0x171   : > { %3567 = vmatpush.msra.mxu2 %v1734_v21  ;;  %3568 = vmatpush.msra.mxu3 %v1734_v21  ;;  %v3676_v14 = vpop.eup %3675  ;;  %v4512_v37 = vor.u32 1.1754944e-38, %v1201_v25  ;;  %vm1300_vm9 = vweird.f32 %v4468_v7  ;;  %v1216_v29 = vand.u32 2147483648, %v4474_v10  ;;  %vm1210_vm11 = vweird.f32 %v4474_v10 }
 0x172   : > { %1758 = vmatpush.msra.mxu0 %v1733_v56  ;;  %3569 = vmatpush.msra.mxu1 %v1733_v56  ;;  %v4503_v20 = vpop.eup %3677  ;;  %v1161_v33 = vmul.f32 %v3676_v14, %v4444_v18  ;;  %vm1166_vm10 = vweird.f32 %v3676_v14  ;;  %3687 = vrcp.f32 %v4498_v30  ;;  %vm4521_vm13 = vcmp.eq.f32.partialorder %v1304_v31, 8.507059e+37 }
 0x173   : > { %3570 = vmatpush.msra.mxu2 %v1733_v56  ;;  %3571 = vmatpush.msra.mxu3 %v1733_v56  ;;  %v3680_v35 = vpop.eup %3679  ;;  %v1176_v36 = vmul.f32 %v4503_v20, %v4449_v57  ;;  %vm1181_vm12 = vweird.f32 %v4503_v20  ;;  %v1307_v45 = vor.u32 1.1754944e-38, %v1306_v32  ;;  %vm4525_vm14 = vcmp.eq.f32.partialorder %v1184_v11, 8.507059e+37  ;;  %vm4536_vm0 = vmor %vm1165_vm5, %vm1166_vm10 }
 0x174   : > { %1759 = vmatpush.msra.mxu0 %v1732_v63  ;;  %3572 = vmatpush.msra.mxu1 %v1732_v63  ;;  %v1162_v38 = vsub.f32 1.0, %v1161_v33  ;;  %v4518_v39 = vpop.eup %3681  ;;  %v1214_v26 = vand.u32 2147483647, %v4474_v10  ;;  %vm1435_vm15 = vweird.f32 %v4498_v30  ;;  %vm4541_vm1 = vcmp.eq.f32.partialorder %v1199_v24, 8.507059e+37  ;;  %vm4559_vm5 = vmor %vm1180_vm6, %vm1181_vm12 }
 0x175   : > { %3573 = vmatpush.msra.mxu2 %v1732_v63  ;;  %3574 = vmatpush.msra.mxu3 %v1732_v63  ;;  %v1177_v41 = vsub.f32 1.0, %v1176_v36  ;;  %v3684_v43 = vpop.eup %3683  ;;  %v1191_v47 = vmul.f32 %v4518_v39, %v4466_v5  ;;  %v1217_v52 = vor.u32 1.1754944e-38, %v1216_v29  ;;  %v1439_v21 = vand.u32 2147483647, %v4498_v30 }
 0x176   : > { %1760 = vmatpush.msra.mxu0 %v1731_v6  ;;  %3575 = vmatpush.msra.mxu1 %v1731_v6  ;;  %v1163_v22 = vmul.f32 %v3676_v14, %v1162_v38  ;;  %v3686_v60 = vpop.eup %3685  ;;  %v1296_v51 = vmul.f32 %v3684_v43, %v4468_v7  ;;  %vm1196_vm2 = vweird.f32 %v4518_v39  ;;  %vm1301_vm3 = vweird.f32 %v3684_v43 }
 0x177   : > { %3576 = vmatpush.msra.mxu2 %v1731_v6  ;;  %3577 = vmatpush.msra.mxu3 %v1731_v6  ;;  %v1178_v48 = vmul.f32 %v4503_v20, %v1177_v41  ;;  %v1192_v54 = vsub.f32 1.0, %v1191_v47  ;;  %v1206_v9 = vmul.f32 %v3686_v60, %v4474_v10  ;;  %vm1211_vm4 = vweird.f32 %v3686_v60  ;;  %vm4568_vm10 = vmor %vm1195_vm8, %vm1196_vm2  ;;  %v907_v47 = vld [vmem:[#allocation2 + $0x90] sm:$0xff] }
 0x178   : > { %1761 = vmatpush.msra.mxu0 %v1730_v17  ;;  %3578 = vmatpush.msra.mxu1 %v1730_v17  ;;  %v1164_v53 = vadd.f32 %v3676_v14, %v1163_v22  ;;  %v1297_v18 = vsub.f32 1.0, %v1296_v51  ;;  %v4550_v50 = vadd.f32 1.0, %v4481_v8  ;;  %v3688_v55 = vpop.eup %3687  ;;  %v4574_v57 = vadd.f32 1.0, %v4487_v59  ;;  %vm4580_vm6 = vmor %vm1300_vm9, %vm1301_vm3  ;;  %v899_v51 = vld [vmem:[#allocation2 + $0xc8] sm:$0xff] }
 0x179   : > { %3579 = vmatpush.msra.mxu2 %v1730_v17  ;;  %3580 = vmatpush.msra.mxu3 %v1730_v17  ;;  %v1179_v12 = vadd.f32 %v4503_v20, %v1178_v48  ;;  %v1193_v62 = vmul.f32 %v4518_v39, %v1192_v54  ;;  %v1207_v63 = vsub.f32 1.0, %v1206_v9  ;;  %v1431_v4 = vmul.f32 %v3688_v55, %v4498_v30 }
 0x17a   : > { %v1168_v56 = vsel %vm4536_vm0, %v3676_v14, %v1164_v53  ;;  %v1298_v23 = vmul.f32 %v3684_v43, %v1297_v18  ;;  %v1441_v8 = vand.u32 2147483648, %v4498_v30  ;;  %v4585_v25 = vadd.f32 1.0, %v3680_v35 }
 0x17b   : > { %v1173_v19 = vsel %vm4492_vm7, %v1172_v16, %v1168_v56  ;;  %v1194_v6 = vadd.f32 %v4518_v39, %v1193_v62  ;;  %v1208_v5 = vmul.f32 %v3686_v60, %v1207_v63  ;;  %vm4590_vm7 = vmor %vm1210_vm11, %vm1211_vm4  ;;  %v1432_v27 = vsub.f32 1.0, %v1431_v4 }
 0x17c   : > { %1762 = vmatmul.f32.vlgmr.msra.gmra.mxu0 %v1173_v19  ;;  %v1299_v17 = vadd.f32 %v3684_v43, %v1298_v23  ;;  %vm1436_vm8 = vweird.f32 %v3688_v55  ;;  %3689 = vrcp.f32 %v4550_v50  ;;  %v1183_v7 = vsel %vm4559_vm5, %v4503_v20, %v1179_v12 }
 0x17d   : > { %v1198_v11 = vsel %vm4568_vm10, %v4518_v39, %v1194_v6  ;;  %v1209_v14 = vadd.f32 %v3686_v60, %v1208_v5  ;;  %v1319_v16 = vand.u32 2147483647, %v4550_v50  ;;  %v1433_v31 = vmul.f32 %v3688_v55, %v1432_v27  ;;  %vm4612_vm11 = vmor %vm1435_vm15, %vm1436_vm8 }
 0x17e   : > { %v1303_v10 = vsel %vm4580_vm6, %v3684_v43, %v1299_v17  ;;  %v1321_v32 = vand.u32 2147483648, %v4550_v50  ;;  %3691 = vrcp.f32 %v4574_v57  ;;  %vm1215_vm9 = vcmp.eq.f32.partialorder %v1214_v26, 8.507059e+37 }
 0x17f   : > { %v1308_v33 = vsel %vm4521_vm13, %v1307_v45, %v1303_v10  ;;  %v1213_v20 = vsel %vm4590_vm7, %v3686_v60, %v1209_v14  ;;  %v1442_v35 = vor.u32 1.1754944e-38, %v1441_v8  ;;  %v1188_v36 = vsel %vm4525_vm14, %v4506_v34, %v1183_v7 }
 0x180   : > { %1789 = vmatmul.f32.vlgmr.msra.gmra.mxu1 %v1308_v33  ;;  %v1434_v29 = vadd.f32 %v3688_v55, %v1433_v31  ;;  %vm1440_vm12 = vcmp.eq.f32.partialorder %v1439_v21, 8.507059e+37  ;;  %vm1315_vm13 = vweird.f32 %v4550_v50  ;;  %v1203_v38 = vsel %vm4541_vm1, %v4512_v37, %v1198_v11 }
 0x181   : > { %vm4623_vm0 = vcmp.eq.f32.partialorder %v1319_v16, 8.507059e+37  ;;  %v1229_v39 = vand.u32 2147483647, %v4574_v57  ;;  %3693 = vrcp.f32 %v4585_v25  ;;  %v4629_v42 = vsel %vm1215_vm9, %v1217_v52, %v1213_v20 }
 0x182   : > { %v3690_v41 = vpop.eup %3689  ;;  %v1438_v34 = vsel %vm4612_vm11, %v3688_v55, %v1434_v29  ;;  %v1322_v45 = vor.u32 1.1754944e-38, %v1321_v32  ;;  %3695 = vpow2.f32 %v4457_v0  ;;  %vm1225_vm14 = vweird.f32 %v4574_v57 }
 0x183   : > { %v1443_v43 = vsel %vm1440_vm12, %v1442_v35, %v1438_v34  ;;  %v1311_v37 = vmul.f32 %v3690_v41, %v4550_v50  ;;  %v1231_v22 = vand.u32 2147483648, %v4574_v57  ;;  %vm1450_vm15 = vweird.f32 %v4585_v25 }
 0x184   : > { %1765 = vmatmul.f32.gmra.mxu0 %v1188_v36  ;;  %v4637_v26 = vpop.eup %3691  ;;  %1816 = vmatmul.f32.vlgmr.msra.gmra.mxu2 %v1443_v43  ;;  %v1454_v60 = vand.u32 2147483647, %v4585_v25  ;;  %v1456_v40 = vand.u32 2147483648, %v4585_v25  ;;  %3697 = vpow2.f32 %v4461_v2  ;;  %vm1316_vm1 = vweird.f32 %v3690_v41 }
 0x185   : > { %v1312_v0 = vsub.f32 1.0, %v1311_v37  ;;  %v1221_v48 = vmul.f32 %v4637_v26, %v4574_v57  ;;  %vm4645_vm2 = vcmp.eq.f32.partialorder %v1229_v39, 8.507059e+37  ;;  %3699 = vpow2.f32 %v4463_v3  ;;  %vm4658_vm4 = vmor %vm1315_vm13, %vm1316_vm1 }
 0x186   : > { %3701 = vpow2.f32 %v4476_v13  ;;  %v3466_v52 = vmul.f32 -1.442695, %v4479_v44  ;;  %v934_v21 = vmul.f32 %v4394_v61, %v892_v46  ;;  %v949_v2 = vmul.f32 %v4394_v61, %v907_v47 }
 0x187   : > { %v3694_v53 = vpop.eup %3693  ;;  %v1313_v54 = vmul.f32 %v3690_v41, %v1312_v0  ;;  %v1222_v9 = vsub.f32 1.0, %v1221_v48  ;;  %vm1226_vm3 = vweird.f32 %v4637_v26  ;;  %v1232_v18 = vor.u32 1.1754944e-38, %v1231_v22 }
 0x188   : > { %v3696_v55 = vpop.eup %3695  ;;  %v1446_v13 = vmul.f32 %v3694_v53, %v4585_v25  ;;  %vm4663_vm5 = vcmp.eq.f32.partialorder %v1454_v60, 8.507059e+37  ;;  %v1457_v56 = vor.u32 1.1754944e-38, %v1456_v40  ;;  %v941_v12 = vmul.f32 %v4394_v61, %v899_v51  ;;  %vm4674_vm10 = vmor %vm1225_vm14, %vm1226_vm3 }
 0x189   : > { %v1314_v62 = vadd.f32 %v3690_v41, %v1313_v54  ;;  %v1223_v63 = vmul.f32 %v4637_v26, %v1222_v9  ;;  %v4669_v19 = vadd.f32 1.0, %v3696_v55  ;;  %v976_v50 = vadd.f32 %v4396_v15, %v934_v21 }
 0x18a   : > { %v3698_v1 = vpop.eup %3697  ;;  %v1447_v4 = vsub.f32 1.0, %v1446_v13  ;;  %vm1451_vm6 = vweird.f32 %v3694_v53  ;;  %3703 = vpow2.f32 %v3466_v52  ;;  %v991_v6 = vadd.f32 %v4396_v15, %v949_v2 }
 0x18b   : > { %v3700_v28 = vpop.eup %3699  ;;  %v1318_v5 = vsel %vm4658_vm4, %v3690_v41, %v1314_v62  ;;  %v1224_v8 = vadd.f32 %v4637_v26, %v1223_v63  ;;  %3705 = vrcp.f32 %v4669_v19  ;;  %v957_v57 = vmul.f32 %v4394_v61, %v915_v58  ;;  %vm4694_vm7 = vmor %vm1450_vm15, %vm1451_vm6 }
 0x18c   : > { %1768 = vmatmul.f32.gmra.mxu0 %v1203_v38  ;;  %v3702_v17 = vpop.eup %3701  ;;  %v1323_v59 = vsel %vm4623_vm0, %v1322_v45, %v1318_v5  ;;  %v1448_v27 = vmul.f32 %v3694_v53, %v1447_v4  ;;  %v1334_v7 = vand.u32 2147483647, %v4669_v19  ;;  %v983_v11 = vadd.f32 %v4396_v15, %v941_v12  ;;  %v894_v4 = vld [vmem:[#allocation2 + $0x108] sm:$0xff] }
 0x18d   : > { %1792 = vmatmul.f32.gmra.mxu1 %v1323_v59  ;;  %v1228_v14 = vsel %vm4674_vm10, %v4637_v26, %v1224_v8  ;;  %v4698_v10 = vadd.f32 1.0, %v3698_v1  ;;  %v4700_v31 = vadd.f32 1.0, %v3700_v28  ;;  %v3444_v32 = vmul.f32 -1.442695, %v976_v50  ;;  %v893_v8 = vld [vmem:[#allocation2 + $0x100] sm:$0xff] }
 0x18e   : > { %v1449_v33 = vadd.f32 %v3694_v53, %v1448_v27  ;;  %v1336_v20 = vand.u32 2147483648, %v4669_v19  ;;  %v4703_v24 = vadd.f32 1.0, %v3702_v17  ;;  %v3459_v35 = vmul.f32 -1.442695, %v991_v6 }
 0x18f   : > { %vm1330_vm8 = vweird.f32 %v4669_v19  ;;  %3707 = vrcp.f32 %v4698_v10  ;;  %v1246_v25 = vand.u32 2147483648, %v4698_v10  ;;  %v999_v36 = vadd.f32 %v4396_v15, %v957_v57 }
 0x190   : > { %v3704_v29 = vpop.eup %3703  ;;  %v1233_v38 = vsel %vm4645_vm2, %v1232_v18, %v1228_v14  ;;  %v1453_v30 = vsel %vm4694_vm7, %v3694_v53, %v1449_v33  ;;  %vm4713_vm9 = vcmp.eq.f32.partialorder %v1334_v7, 8.507059e+37  ;;  %3709 = vrcp.f32 %v4700_v31 }
 0x191   : > { %v3706_v41 = vpop.eup %3705  ;;  %v1458_v34 = vsel %vm4663_vm5, %v1457_v56, %v1453_v30  ;;  %v1244_v45 = vand.u32 2147483647, %v4698_v10  ;;  %v1469_v43 = vand.u32 2147483647, %v4700_v31  ;;  %v1471_v37 = vand.u32 2147483648, %v4700_v31 }
 0x192   : > { %1819 = vmatmul.f32.gmra.mxu2 %v1458_v34  ;;  %v1326_v22 = vmul.f32 %v3706_v41, %v4669_v19  ;;  %v1337_v46 = vor.u32 1.1754944e-38, %v1336_v20  ;;  %vm1240_vm11 = vweird.f32 %v4698_v10  ;;  %3711 = vrcp.f32 %v4703_v24 }
 0x193   : > { %v4727_v47 = vor.u32 1.1754944e-38, %v1246_v25  ;;  %vm1465_vm12 = vweird.f32 %v4700_v31  ;;  %v1349_v26 = vand.u32 2147483647, %v4703_v24  ;;  %v1351_v60 = vand.u32 2147483648, %v4703_v24 }
 0x194   : > { %1771 = vmatmul.f32.gmra.mxu0 %v4629_v42  ;;  %v1327_v40 = vsub.f32 1.0, %v1326_v22  ;;  %vm1331_vm13 = vweird.f32 %v3706_v41  ;;  %v4732_v0 = vadd.f32 1.0, %v3704_v29  ;;  %3713 = vpow2.f32 %v3444_v32 }
 0x195   : > { %v4734_v48 = vpop.eup %3707  ;;  %vm4736_vm0 = vcmp.eq.f32.partialorder %v1244_v45, 8.507059e+37  ;;  %vm4740_vm14 = vcmp.eq.f32.partialorder %v1469_v43, 8.507059e+37  ;;  %v1472_v51 = vor.u32 1.1754944e-38, %v1471_v37  ;;  %3715 = vpow2.f32 %v3459_v35  ;;  %vm4749_vm15 = vmor %vm1330_vm8, %vm1331_vm13 }
 0x196   : > { %v3451_v52 = vmul.f32 -1.442695, %v983_v11  ;;  %v3710_v21 = vpop.eup %3709  ;;  %v1328_v2 = vmul.f32 %v3706_v41, %v1327_v40  ;;  %v1236_v53 = vmul.f32 %v4734_v48, %v4698_v10  ;;  %3717 = vrcp.f32 %v4732_v0 }
 0x197   : > { %v3467_v54 = vmul.f32 -1.442695, %v999_v36  ;;  %v1461_v18 = vmul.f32 %v3710_v21, %v4700_v31  ;;  %vm1345_vm1 = vweird.f32 %v4703_v24  ;;  %vm4755_vm2 = vcmp.eq.f32.partialorder %v1349_v26, 8.507059e+37 }
 0x198   : > { %v1352_v3 = vor.u32 1.1754944e-38, %v1351_v60  ;;  %v3712_v13 = vpop.eup %3711  ;;  %v1329_v44 = vadd.f32 %v3706_v41, %v1328_v2  ;;  %v1237_v56 = vsub.f32 1.0, %v1236_v53  ;;  %vm1241_vm3 = vweird.f32 %v4734_v48 }
 0x199   : > { %vm1466_vm4 = vweird.f32 %v3710_v21  ;;  %v1462_v12 = vsub.f32 1.0, %v1461_v18  ;;  %v1341_v58 = vmul.f32 %v3712_v13, %v4703_v24  ;;  %v1589_v62 = vand.u32 2147483647, %v4732_v0  ;;  %vm4769_vm10 = vmor %vm1240_vm11, %vm1241_vm3 }
 0x19a   : > { %3719 = vpow2.f32 %v3451_v52  ;;  %v3714_v63 = vpop.eup %3713  ;;  %v1333_v19 = vsel %vm4749_vm15, %v3706_v41, %v1329_v44  ;;  %v1238_v50 = vmul.f32 %v4734_v48, %v1237_v56  ;;  %vm1346_vm5 = vweird.f32 %v3712_v13  ;;  %vm4779_vm6 = vmor %vm1465_vm12, %vm1466_vm4 }
 0x19b   : > { %3721 = vpow2.f32 %v3467_v54  ;;  %v3716_v1 = vpop.eup %3715  ;;  %v1338_v23 = vsel %vm4713_vm9, %v1337_v46, %v1333_v19  ;;  %v1463_v6 = vmul.f32 %v3710_v21, %v1462_v12  ;;  %v1342_v28 = vsub.f32 1.0, %v1341_v58  ;;  %vm4798_vm9 = vmor %vm1345_vm1, %vm1346_vm5 }
 0x19c   : > { %1774 = vmatmul.f32.gmra.mxu0 %v1233_v38  ;;  %v4773_v5 = vadd.f32 1.0, %v3714_v63  ;;  %v3718_v57 = vpop.eup %3717  ;;  %1795 = vmatmul.f32.gmra.mxu1 %v1338_v23  ;;  %v1239_v17 = vadd.f32 %v4734_v48, %v1238_v50  ;;  %vm1585_vm7 = vweird.f32 %v4732_v0  ;;  %v1591_v27 = vand.u32 2147483648, %v4732_v0  ;;  %v908_v38 = vld [vmem:[#allocation2 + $0xe0] sm:$0xff] }
 0x19d   : > { %v4785_v7 = vadd.f32 1.0, %v3716_v1  ;;  %v1464_v11 = vadd.f32 %v3710_v21, %v1463_v6  ;;  %v1343_v14 = vmul.f32 %v3712_v13, %v1342_v28  ;;  %v1581_v16 = vmul.f32 %v3718_v57, %v4732_v0 }
 0x19e   : > { %vm4788_vm8 = vcmp.eq.f32.partialorder %v1589_v62, 8.507059e+37  ;;  %v1243_v31 = vsel %vm4769_vm10, %v4734_v48, %v1239_v17  ;;  %vm1586_vm11 = vweird.f32 %v3718_v57  ;;  %3723 = vrcp.f32 %v4773_v5 }
 0x19f   : > { %v935_v33 = vmul.f32 %v4394_v61, %v893_v8  ;;  %v1468_v35 = vsel %vm4779_vm6, %v3710_v21, %v1464_v11  ;;  %v1344_v25 = vadd.f32 %v3712_v13, %v1343_v14  ;;  %v1582_v36 = vsub.f32 1.0, %v1581_v16  ;;  %vm4822_vm12 = vmor %vm1585_vm7, %vm1586_vm11 }
 0x1a0   : > { %v3720_v20 = vpop.eup %3719  ;;  %v1259_v29 = vand.u32 2147483647, %v4773_v5  ;;  %v1248_v24 = vsel %vm4736_vm0, %v4727_v47, %v1243_v31  ;;  %v1473_v39 = vsel %vm4740_vm14, %v1472_v51, %v1468_v35  ;;  %v1261_v41 = vand.u32 2147483648, %v4773_v5 }
 0x1a1   : > { %v3722_v30 = vpop.eup %3721  ;;  %3725 = vrcp.f32 %v4785_v7  ;;  %1822 = vmatmul.f32.gmra.mxu2 %v1473_v39  ;;  %v1348_v34 = vsel %vm4798_vm9, %v3712_v13, %v1344_v25  ;;  %v1583_v45 = vmul.f32 %v3718_v57, %v1582_v36  ;;  %v1592_v43 = vor.u32 1.1754944e-38, %v1591_v27  ;;  %v916_v13 = vld [vmem:[#allocation2 + $0xd8] sm:$0xff] }
 0x1a2   : > { %v1484_v37 = vand.u32 2147483647, %v4785_v7  ;;  %v1353_v22 = vsel %vm4755_vm2, %v1352_v3, %v1348_v34  ;;  %v1486_v47 = vand.u32 2147483648, %v4785_v7  ;;  %v4827_v26 = vadd.f32 1.0, %v3720_v20  ;;  %v900_v3 = vld [vmem:[#allocation2 + $0x30] sm:$0xff]  ;;  %v909_v25 = vld [vmem:[#allocation2 + $0xf8] sm:$0xff] }
 0x1a3   : > { %v950_v60 = vmul.f32 %v4394_v61, %v908_v38  ;;  %v1584_v40 = vadd.f32 %v3718_v57, %v1583_v45  ;;  %vm1255_vm13 = vweird.f32 %v4773_v5  ;;  %vm4831_vm0 = vcmp.eq.f32.partialorder %v1259_v29, 8.507059e+37 }
 0x1a4   : > { %1777 = vmatmul.f32.gmra.mxu0 %v1248_v24  ;;  %v4835_v49 = vadd.f32 1.0, %v3722_v30  ;;  %v3724_v0 = vpop.eup %3723  ;;  %1798 = vmatmul.f32.gmra.mxu1 %v1353_v22  ;;  %v1262_v42 = vor.u32 1.1754944e-38, %v1261_v41  ;;  %vm1480_vm14 = vweird.f32 %v4785_v7  ;;  %3727 = vrcp.f32 %v4827_v26 }
 0x1a5   : > { %v977_v51 = vadd.f32 %v4396_v15, %v935_v33  ;;  %v1588_v52 = vsel %vm4822_vm12, %v3718_v57, %v1584_v40  ;;  %v1251_v21 = vmul.f32 %v3724_v0, %v4773_v5  ;;  %vm4843_vm15 = vcmp.eq.f32.partialorder %v1484_v37, 8.507059e+37 }
 0x1a6   : > { %v1364_v53 = vand.u32 2147483647, %v4827_v26  ;;  %v1366_v54 = vand.u32 2147483648, %v4827_v26  ;;  %v1593_v18 = vsel %vm4788_vm8, %v1592_v43, %v1588_v52  ;;  %v1487_v55 = vor.u32 1.1754944e-38, %v1486_v47  ;;  %v917_v52 = vld [vmem:[#allocation2 + $0x28] sm:$0xff] }
 0x1a7   : > { %v3726_v9 = vpop.eup %3725  ;;  %vm1360_vm1 = vweird.f32 %v4827_v26  ;;  %3729 = vrcp.f32 %v4835_v49  ;;  %1846 = vmatmul.f32.vlgmr.msra.gmra.mxu3 %v1593_v18  ;;  %v1252_v44 = vsub.f32 1.0, %v1251_v21  ;;  %vm1256_vm2 = vweird.f32 %v3724_v0 }
 0x1a8   : > { %v1476_v56 = vmul.f32 %v3726_v9, %v4785_v7  ;;  %vm1600_vm3 = vweird.f32 %v4835_v49  ;;  %vm1481_vm4 = vweird.f32 %v3726_v9  ;;  %v1367_v12 = vor.u32 1.1754944e-38, %v1366_v54  ;;  %vm4864_vm10 = vmor %vm1255_vm13, %vm1256_vm2  ;;  %v901_v7 = vld [vmem:[#allocation2 + $0x20] sm:$0xff] }
 0x1a9   : > { %v3445_v58 = vmul.f32 -1.442695, %v977_v51  ;;  %v992_v62 = vadd.f32 %v4396_v15, %v950_v60  ;;  %v1253_v63 = vmul.f32 %v3724_v0, %v1252_v44  ;;  %vm4856_vm5 = vcmp.eq.f32.partialorder %v1364_v53, 8.507059e+37  ;;  %vm4874_vm7 = vmor %vm1480_vm14, %vm1481_vm4 }
 0x1aa   : > { %v1477_v19 = vsub.f32 1.0, %v1476_v56  ;;  %v942_v1 = vmul.f32 %v4394_v61, %v900_v3  ;;  %v958_v23 = vmul.f32 %v4394_v61, %v916_v13  ;;  %v3728_v6 = vpop.eup %3727  ;;  %v1604_v8 = vand.u32 2147483647, %v4835_v49  ;;  %v4923_v13 = vld [vmem:[#allocation5] ss:$0 sm:$0xff] }
 0x1ab   : > { %v1606_v57 = vand.u32 2147483648, %v4835_v49  ;;  %3731 = vpow2.f32 %v3445_v58  ;;  %v3460_v17 = vmul.f32 -1.442695, %v992_v62  ;;  %v1254_v59 = vadd.f32 %v3724_v0, %v1253_v63 }
 0x1ac   : > { %v1478_v27 = vmul.f32 %v3726_v9, %v1477_v19  ;;  %v1356_v11 = vmul.f32 %v3728_v6, %v4827_v26  ;;  %vm1361_vm6 = vweird.f32 %v3728_v6  ;;  %v984_v16 = vadd.f32 %v4396_v15, %v942_v1  ;;  %v910_v19 = vld [vmem:[#allocation2 + $0xa0] sm:$0xff] }
 0x1ad   : > { %v3730_v14 = vpop.eup %3729  ;;  %3733 = vpow2.f32 %v3460_v17  ;;  %v1000_v10 = vadd.f32 %v4396_v15, %v958_v23  ;;  %v936_v31 = vmul.f32 %v4394_v61, %v894_v4  ;;  %v1258_v32 = vsel %vm4864_vm10, %v3724_v0, %v1254_v59  ;;  %vm4894_vm9 = vmor %vm1360_vm1, %vm1361_vm6  ;;  %v911_v59 = vld [vmem:[#allocation2 + $0x78] sm:$0xff] }
 0x1ae   : > { %v1479_v33 = vadd.f32 %v3726_v9, %v1478_v27  ;;  %v1357_v20 = vsub.f32 1.0, %v1356_v11  ;;  %v1596_v35 = vmul.f32 %v3730_v14, %v4835_v49  ;;  %v1263_v36 = vsel %vm4831_vm0, %v1262_v42, %v1258_v32 }
 0x1af   : > { %vm1601_vm8 = vweird.f32 %v3730_v14  ;;  %v3452_v29 = vmul.f32 -1.442695, %v984_v16  ;;  %v3468_v38 = vmul.f32 -1.442695, %v1000_v10  ;;  %1780 = vmatmul.f32.gmra.mxu0 %v1263_v36  ;;  %v978_v41 = vadd.f32 %v4396_v15, %v936_v31 }
 0x1b0   : > { %v1483_v30 = vsel %vm4874_vm7, %v3726_v9, %v1479_v33  ;;  %v1358_v24 = vmul.f32 %v3728_v6, %v1357_v20  ;;  %v1597_v39 = vsub.f32 1.0, %v1596_v35  ;;  %v951_v37 = vmul.f32 %v4394_v61, %v909_v25  ;;  %vm4905_vm11 = vmor %vm1600_vm3, %vm1601_vm8 }
 0x1b1   : > { %v3732_v34 = vpop.eup %3731  ;;  %v1488_v45 = vsel %vm4843_vm15, %v1487_v55, %v1483_v30  ;;  %3735 = vpow2.f32 %v3452_v29  ;;  %v943_v22 = vmul.f32 %v4394_v61, %v901_v7  ;;  %v1607_v48 = vor.u32 1.1754944e-38, %v1606_v57 }
 0x1b2   : > { %1825 = vmatmul.f32.gmra.mxu2 %v1488_v45  ;;  %v1359_v46 = vadd.f32 %v3728_v6, %v1358_v24  ;;  %v1598_v47 = vmul.f32 %v3730_v14, %v1597_v39  ;;  %v4900_v60 = vadd.f32 1.0, %v3732_v34  ;;  %3737 = vpow2.f32 %v3468_v38 }
 0x1b3   : > { %v3734_v40 = vpop.eup %3733  ;;  %v3446_v0 = vmul.f32 -1.442695, %v978_v41  ;;  %v993_v42 = vadd.f32 %v4396_v15, %v951_v37  ;;  %vm1605_vm12 = vcmp.eq.f32.partialorder %v1604_v8, 8.507059e+37  ;;  %v985_v53 = vadd.f32 %v4396_v15, %v943_v22  ;;  %v4942_v8 = vld [vmem:[#allocation6] ss:$0 sm:$0xff] }
 0x1b4   : > { %v1363_v61 = vsel %vm4894_vm9, %v3728_v6, %v1359_v46  ;;  %v1599_v51 = vadd.f32 %v3730_v14, %v1598_v47  ;;  %3739 = vrcp.f32 %v4900_v60  ;;  %v1274_v49 = vand.u32 2147483647, %v4900_v60 }
 0x1b5   : > { %v1368_v21 = vsel %vm4856_vm5, %v1367_v12, %v1363_v61  ;;  %v4916_v2 = vadd.f32 1.0, %v3734_v40  ;;  %v1276_v9 = vand.u32 2147483648, %v4900_v60  ;;  %3741 = vpow2.f32 %v3446_v0 }
 0x1b6   : > { %1801 = vmatmul.f32.gmra.mxu1 %v1368_v21  ;;  %v1603_v54 = vsel %vm4905_vm11, %v3730_v14, %v1599_v51  ;;  %v3461_v18 = vmul.f32 -1.442695, %v993_v42  ;;  %v959_v44 = vmul.f32 %v4923_v13, %v917_v52  ;;  %vm1270_vm13 = vweird.f32 %v4900_v60 }
 0x1b7   : > { %v3736_v55 = vpop.eup %3735  ;;  %v1608_v3 = vsel %vm1605_vm12, %v1607_v48, %v1603_v54  ;;  %3743 = vrcp.f32 %v4916_v2  ;;  %v1499_v15 = vand.u32 2147483647, %v4916_v2  ;;  %vm4930_vm0 = vcmp.eq.f32.partialorder %v1274_v49, 8.507059e+37  ;;  %v920_v49 = vld [vmem:[#allocation2 + $0x18] sm:$0xff] }
 0x1b8   : > { %v3738_v56 = vpop.eup %3737  ;;  %1849 = vmatmul.f32.gmra.mxu3 %v1608_v3  ;;  %v4928_v12 = vadd.f32 1.0, %v3736_v55  ;;  %3745 = vpow2.f32 %v3461_v18  ;;  %v3453_v63 = vmul.f32 -1.442695, %v985_v53  ;;  %v1277_v1 = vor.u32 1.1754944e-38, %v1276_v9 }
 0x1b9   : > { %v4934_v62 = vadd.f32 1.0, %v3738_v56  ;;  %vm1495_vm14 = vweird.f32 %v4916_v2  ;;  %v1501_v23 = vand.u32 2147483648, %v4916_v2  ;;  %v1001_v57 = vadd.f32 %v4942_v8, %v959_v44 }
 0x1ba   : > { %v3740_v50 = vpop.eup %3739  ;;  %3747 = vrcp.f32 %v4928_v12  ;;  %v1379_v6 = vand.u32 2147483647, %v4928_v12  ;;  %v1381_v28 = vand.u32 2147483648, %v4928_v12  ;;  %vm4945_vm1 = vcmp.eq.f32.partialorder %v1499_v15, 8.507059e+37 }
 0x1bb   : > { %v1266_v4 = vmul.f32 %v3740_v50, %v4900_v60  ;;  %v3742_v17 = vpop.eup %3741  ;;  %vm1271_vm15 = vweird.f32 %v3740_v50  ;;  %3749 = vrcp.f32 %v4934_v62  ;;  %v952_v27 = vmul.f32 %v4923_v13, %v910_v19 }
 0x1bc   : > { %v1619_v5 = vand.u32 2147483647, %v4934_v62  ;;  %v1621_v16 = vand.u32 2147483648, %v4934_v62  ;;  %v4953_v10 = vadd.f32 1.0, %v3742_v17  ;;  %v1502_v32 = vor.u32 1.1754944e-38, %v1501_v23  ;;  %vm4966_vm5 = vmor %vm1270_vm13, %vm1271_vm15 }
 0x1bd   : > { %v3744_v11 = vpop.eup %3743  ;;  %v1267_v14 = vsub.f32 1.0, %v1266_v4  ;;  %vm1375_vm2 = vweird.f32 %v4928_v12  ;;  %vm1615_vm3 = vweird.f32 %v4934_v62  ;;  %vm4958_vm4 = vcmp.eq.f32.partialorder %v1379_v6, 8.507059e+37  ;;  %v918_v6 = vld [vmem:[#allocation2 + $0x60] sm:$0xff] }
 0x1be   : > { %v1491_v31 = vmul.f32 %v3744_v11, %v4916_v2  ;;  %v3746_v33 = vpop.eup %3745  ;;  %v1382_v25 = vor.u32 1.1754944e-38, %v1381_v28  ;;  %3751 = vrcp.f32 %v4953_v10  ;;  %vm1496_vm10 = vweird.f32 %v3744_v11 }
 0x1bf   : > { %v1268_v20 = vmul.f32 %v3740_v50, %v1267_v14  ;;  %v4970_v38 = vadd.f32 1.0, %v3746_v33  ;;  %3753 = vpow2.f32 %v3453_v63  ;;  %vm4973_vm6 = vcmp.eq.f32.partialorder %v1619_v5, 8.507059e+37  ;;  %vm4984_vm8 = vmor %vm1495_vm14, %vm1496_vm10 }
 0x1c0   : > { %v3748_v7 = vpop.eup %3747  ;;  %v1492_v29 = vsub.f32 1.0, %v1491_v31  ;;  %v1622_v41 = vor.u32 1.1754944e-38, %v1621_v16  ;;  %vm1285_vm7 = vweird.f32 %v4953_v10  ;;  %v1289_v43 = vand.u32 2147483647, %v4953_v10 }
 0x1c1   : > { %v1269_v30 = vadd.f32 %v3740_v50, %v1268_v20  ;;  %v1371_v24 = vmul.f32 %v3748_v7, %v4928_v12  ;;  %v3750_v34 = vpop.eup %3749  ;;  %3755 = vrcp.f32 %v4970_v38  ;;  %vm1376_vm9 = vweird.f32 %v3748_v7 }
 0x1c2   : > { %v1493_v45 = vmul.f32 %v3744_v11, %v1492_v29  ;;  %v1611_v47 = vmul.f32 %v3750_v34, %v4934_v62  ;;  %vm1616_vm11 = vweird.f32 %v3750_v34  ;;  %v1291_v26 = vand.u32 2147483648, %v4953_v10  ;;  %vm4997_vm12 = vmor %vm1375_vm2, %vm1376_vm9 }
 0x1c3   : > { %v1273_v37 = vsel %vm4966_vm5, %v3740_v50, %v1269_v30  ;;  %v1372_v46 = vsub.f32 1.0, %v1371_v24  ;;  %v3469_v61 = vmul.f32 -1.442695, %v1001_v57  ;;  %v994_v51 = vadd.f32 %v4942_v8, %v952_v27  ;;  %vm5012_vm14 = vmor %vm1615_vm3, %vm1616_vm11  ;;  %v903_v27 = vld [vmem:[#allocation2 + $0x50] sm:$0xff] }
 0x1c4   : > { %v1278_v60 = vsel %vm4930_vm0, %v1277_v1, %v1273_v37  ;;  %v1494_v40 = vadd.f32 %v3744_v11, %v1493_v45  ;;  %v3752_v48 = vpop.eup %3751  ;;  %v1612_v42 = vsub.f32 1.0, %v1611_v47  ;;  %vm5002_vm13 = vcmp.eq.f32.partialorder %v1289_v43, 8.507059e+37  ;;  %v902_v1 = vld [vmem:[#allocation2 + $0x128] sm:$0xff] }
 0x1c5   : > { %1783 = vmatmul.f32.gmra.mxu0 %v1278_v60  ;;  %v1373_v0 = vmul.f32 %v3748_v7, %v1372_v46  ;;  %v3754_v52 = vpop.eup %3753  ;;  %v1281_v2 = vmul.f32 %v3752_v48, %v4953_v10  ;;  %v1514_v54 = vand.u32 2147483647, %v4970_v38  ;;  %vm1286_vm0 = vweird.f32 %v3752_v48 }
 0x1c6   : > { %v1498_v21 = vsel %vm4984_vm8, %v3744_v11, %v1494_v40  ;;  %v1613_v55 = vmul.f32 %v3750_v34, %v1612_v42  ;;  %v5016_v15 = vadd.f32 1.0, %v3754_v52  ;;  %3757 = vpow2.f32 %v3469_v61  ;;  %vm5030_vm15 = vmor %vm1285_vm7, %vm1286_vm0  ;;  %v912_v61 = vld [vmem:[#allocation2 + $0xc0] sm:$0xff] }
 0x1c7   : > { %v1503_v9 = vsel %vm4945_vm1, %v1502_v32, %v1498_v21  ;;  %v1374_v18 = vadd.f32 %v3748_v7, %v1373_v0  ;;  %v3756_v3 = vpop.eup %3755  ;;  %v1282_v56 = vsub.f32 1.0, %v1281_v2  ;;  %v3462_v12 = vmul.f32 -1.442695, %v994_v51 }
 0x1c8   : > { %1828 = vmatmul.f32.gmra.mxu2 %v1503_v9  ;;  %v1614_v63 = vadd.f32 %v3750_v34, %v1613_v55  ;;  %v1506_v19 = vmul.f32 %v3756_v3, %v4970_v38  ;;  %v1516_v50 = vand.u32 2147483648, %v4970_v38  ;;  %v1292_v4 = vor.u32 1.1754944e-38, %v1291_v26 }
 0x1c9   : > { %v1378_v58 = vsel %vm4997_vm12, %v3748_v7, %v1374_v18  ;;  %v1283_v23 = vmul.f32 %v3752_v48, %v1282_v56  ;;  %3759 = vrcp.f32 %v5016_v15  ;;  %vm1510_vm1 = vweird.f32 %v4970_v38 }
 0x1ca   : > { %v1383_v62 = vsel %vm4958_vm4, %v1382_v25, %v1378_v58  ;;  %v1618_v28 = vsel %vm5012_vm14, %v3750_v34, %v1614_v63  ;;  %v1507_v17 = vsub.f32 1.0, %v1506_v19  ;;  %vm1511_vm2 = vweird.f32 %v3756_v3 }
 0x1cb   : > { %1804 = vmatmul.f32.gmra.mxu1 %v1383_v62  ;;  %v1623_v11 = vsel %vm4973_vm6, %v1622_v41, %v1618_v28  ;;  %v1284_v14 = vadd.f32 %v3752_v48, %v1283_v23  ;;  %3761 = vpow2.f32 %v3462_v12  ;;  %v944_v5 = vmul.f32 %v4923_v13, %v902_v1  ;;  %vm5047_vm4 = vmor %vm1510_vm1, %vm1511_vm2  ;;  %v919_v41 = vld [vmem:[#allocation2 + $0x68] sm:$0xff] }
 0x1cc   : > { %1852 = vmatmul.f32.gmra.mxu3 %v1623_v11  ;;  %v1508_v16 = vmul.f32 %v3756_v3, %v1507_v17  ;;  %vm5038_vm3 = vcmp.eq.f32.partialorder %v1514_v54, 8.507059e+37  ;;  %v1517_v31 = vor.u32 1.1754944e-38, %v1516_v50  ;;  %v960_v32 = vmul.f32 %v4923_v13, %v918_v6  ;;  %v3758_v33 = vpop.eup %3757 }
 0x1cd   : > { %v1288_v20 = vsel %vm5030_vm15, %v3752_v48, %v1284_v14  ;;  %v986_v25 = vadd.f32 %v4942_v8, %v944_v5  ;;  %v953_v7 = vmul.f32 %v4923_v13, %v911_v59  ;;  %v945_v36 = vmul.f32 %v4923_v13, %v903_v27  ;;  %v913_v5 = vld [vmem:[#allocation2 + $0x80] sm:$0xff] }
 0x1ce   : > { %v1293_v29 = vsel %vm5002_vm13, %v1292_v4, %v1288_v20  ;;  %v1509_v30 = vadd.f32 %v3756_v3, %v1508_v16  ;;  %v5056_v24 = vadd.f32 1.0, %v3758_v33  ;;  %v1002_v39 = vadd.f32 %v4942_v8, %v960_v32 }
 0x1cf   : > { %v3760_v38 = vpop.eup %3759  ;;  %1786 = vmatmul.f32.gmra.mxu0 %v1293_v29  ;;  %vm1390_vm5 = vweird.f32 %v5016_v15  ;;  %v1394_v34 = vand.u32 2147483647, %v5016_v15  ;;  %v3454_v45 = vmul.f32 -1.442695, %v986_v25  ;;  %v995_v43 = vadd.f32 %v4942_v8, %v953_v7  ;;  %v921_v7 = vld [vmem:[#allocation2 + $0x58] sm:$0xff] }
 0x1d0   : > { %v1513_v37 = vsel %vm5047_vm4, %v3756_v3, %v1509_v30  ;;  %v1386_v22 = vmul.f32 %v3760_v38, %v5016_v15  ;;  %v1396_v46 = vand.u32 2147483648, %v5016_v15  ;;  %3763 = vrcp.f32 %v5056_v24 }
 0x1d1   : > { %v3762_v47 = vpop.eup %3761  ;;  %v1518_v60 = vsel %vm5038_vm3, %v1517_v31, %v1513_v37  ;;  %vm1391_vm10 = vweird.f32 %v3760_v38  ;;  %v987_v40 = vadd.f32 %v4942_v8, %v945_v36  ;;  %v961_v26 = vmul.f32 %v4923_v13, %v919_v41 }
 0x1d2   : > { %1831 = vmatmul.f32.gmra.mxu2 %v1518_v60  ;;  %v1387_v48 = vsub.f32 1.0, %v1386_v22  ;;  %v5071_v0 = vadd.f32 1.0, %v3762_v47  ;;  %3765 = vpow2.f32 %v3454_v45  ;;  %v3470_v42 = vmul.f32 -1.442695, %v1002_v39  ;;  %vm5079_vm6 = vmor %vm1390_vm5, %vm1391_vm10 }
 0x1d3   : > { %v1634_v51 = vand.u32 2147483647, %v5056_v24  ;;  %v1636_v52 = vand.u32 2147483648, %v5056_v24  ;;  %v3463_v21 = vmul.f32 -1.442695, %v995_v43  ;;  %v1397_v53 = vor.u32 1.1754944e-38, %v1396_v46 }
 0x1d4   : > { %v1388_v2 = vmul.f32 %v3760_v38, %v1387_v48  ;;  %3767 = vrcp.f32 %v5071_v0  ;;  %v3455_v9 = vmul.f32 -1.442695, %v987_v40  ;;  %v1003_v18 = vadd.f32 %v4942_v8, %v961_v26 }
 0x1d5   : > { %3769 = vpow2.f32 %v3470_v42  ;;  %v954_v55 = vmul.f32 %v4923_v13, %v912_v61  ;;  %vm1395_vm7 = vcmp.eq.f32.partialorder %v1394_v34, 8.507059e+37  ;;  %v962_v56 = vmul.f32 %v4923_v13, %v920_v49 }
 0x1d6   : > { %v3764_v3 = vpop.eup %3763  ;;  %v1389_v44 = vadd.f32 %v3760_v38, %v1388_v2  ;;  %3771 = vpow2.f32 %v3463_v21  ;;  %vm1630_vm8 = vweird.f32 %v5056_v24  ;;  %vm5088_vm9 = vcmp.eq.f32.partialorder %v1634_v51, 8.507059e+37 }
 0x1d7   : > { %v1626_v12 = vmul.f32 %v3764_v3, %v5056_v24  ;;  %v1637_v58 = vor.u32 1.1754944e-38, %v1636_v52  ;;  %vm1631_vm11 = vweird.f32 %v3764_v3  ;;  %v3471_v50 = vmul.f32 -1.442695, %v1003_v18 }
 0x1d8   : > { %v3766_v63 = vpop.eup %3765  ;;  %v1393_v19 = vsel %vm5079_vm6, %v3760_v38, %v1389_v44  ;;  %v996_v1 = vadd.f32 %v4942_v8, %v954_v55  ;;  %3773 = vpow2.f32 %v3455_v9  ;;  %v1529_v28 = vand.u32 2147483647, %v5071_v0  ;;  %vm5105_vm12 = vmor %vm1630_vm8, %vm1631_vm11 }
 0x1d9   : > { %v1398_v62 = vsel %vm1395_vm7, %v1397_v53, %v1393_v19  ;;  %v1627_v23 = vsub.f32 1.0, %v1626_v12  ;;  %v5095_v4 = vadd.f32 1.0, %v3766_v63  ;;  %v1531_v57 = vand.u32 2147483648, %v5071_v0 }
 0x1da   : > { %v3768_v6 = vpop.eup %3767  ;;  %1807 = vmatmul.f32.gmra.mxu1 %v1398_v62  ;;  %3775 = vpow2.f32 %v3471_v50  ;;  %v1004_v17 = vadd.f32 %v4942_v8, %v962_v56  ;;  %v3464_v14 = vmul.f32 -1.442695, %v996_v1  ;;  %vm1525_vm13 = vweird.f32 %v5071_v0 }
 0x1db   : > { %v3770_v59 = vpop.eup %3769  ;;  %v1628_v27 = vmul.f32 %v3764_v3, %v1627_v23  ;;  %v1521_v11 = vmul.f32 %v3768_v6, %v5071_v0  ;;  %3777 = vrcp.f32 %v5095_v4  ;;  %vm1526_vm0 = vweird.f32 %v3768_v6 }
 0x1dc   : > { %v3772_v16 = vpop.eup %3771  ;;  %v1409_v31 = vand.u32 2147483647, %v5095_v4  ;;  %v5111_v32 = vadd.f32 1.0, %v3770_v59  ;;  %v1411_v35 = vand.u32 2147483648, %v5095_v4  ;;  %vm5116_vm14 = vcmp.eq.f32.partialorder %v1529_v28, 8.507059e+37  ;;  %vm5131_vm15 = vmor %vm1525_vm13, %vm1526_vm0 }
 0x1dd   : > { %v1629_v33 = vadd.f32 %v3764_v3, %v1628_v27  ;;  %v1522_v20 = vsub.f32 1.0, %v1521_v11  ;;  %v5114_v25 = vadd.f32 1.0, %v3772_v16  ;;  %v1532_v29 = vor.u32 1.1754944e-38, %v1531_v57 }
 0x1de   : > { %3779 = vrcp.f32 %v5111_v32  ;;  %v5122_v30 = vmul.f32 %v4923_v13, %v913_v5  ;;  %v3774_v24 = vpop.eup %3773  ;;  %v3472_v38 = vmul.f32 -1.442695, %v1004_v17  ;;  %vm1405_vm1 = vweird.f32 %v5095_v4 }
 0x1df   : > { %v1633_v39 = vsel %vm5105_vm12, %v3764_v3, %v1629_v33  ;;  %v1523_v41 = vmul.f32 %v3768_v6, %v1522_v20  ;;  %3781 = vpow2.f32 %v3464_v14  ;;  %v5138_v37 = vmul.f32 %v4923_v13, %v921_v7 }
 0x1e0   : > { %v3776_v34 = vpop.eup %3775  ;;  %v1638_v45 = vsel %vm5088_vm9, %v1637_v58, %v1633_v39  ;;  %3783 = vrcp.f32 %v5114_v25  ;;  %vm5140_vm2 = vcmp.eq.f32.partialorder %v1409_v31, 8.507059e+37  ;;  %v1412_v60 = vor.u32 1.1754944e-38, %v1411_v35 }
 0x1e1   : > { %v3778_v22 = vpop.eup %3777  ;;  %1855 = vmatmul.f32.gmra.mxu3 %v1638_v45  ;;  %v1524_v46 = vadd.f32 %v3768_v6, %v1523_v41  ;;  %v1649_v40 = vand.u32 2147483647, %v5111_v32  ;;  %v1651_v48 = vand.u32 2147483648, %v5111_v32  ;;  %v1544_v0 = vand.u32 2147483647, %v5114_v25  ;;  %v922_v41 = vld [vmem:[#allocation2 + $0x118] sm:$0xff] }
 0x1e2   : > { %v1401_v26 = vmul.f32 %v3778_v22, %v5095_v4  ;;  %v5148_v42 = vadd.f32 1.0, %v3774_v24  ;;  %v1546_v51 = vand.u32 2147483648, %v5114_v25  ;;  %v5153_v52 = vadd.f32 1.0, %v3776_v34 }
 0x1e3   : > { %v1528_v61 = vsel %vm5131_vm15, %v3768_v6, %v1524_v46  ;;  %3785 = vpow2.f32 %v3472_v38  ;;  %vm1406_vm3 = vweird.f32 %v3778_v22  ;;  %vm1645_vm4 = vweird.f32 %v5111_v32  ;;  %v923_v38 = vld [vmem:[#allocation2 + $0xb8] sm:$0xff] }
 0x1e4   : > { %v3780_v21 = vpop.eup %3779  ;;  %v1533_v49 = vsel %vm5116_vm14, %v1532_v29, %v1528_v61  ;;  %v1402_v2 = vsub.f32 1.0, %v1401_v26  ;;  %3787 = vrcp.f32 %v5148_v42  ;;  %vm5160_vm5 = vcmp.eq.f32.partialorder %v1649_v40, 8.507059e+37  ;;  %vm5172_vm7 = vmor %vm1405_vm1, %vm1406_vm3 }
 0x1e5   : > { %v3782_v53 = vpop.eup %3781  ;;  %1834 = vmatmul.f32.gmra.mxu2 %v1533_v49  ;;  %v1641_v54 = vmul.f32 %v3780_v21, %v5111_v32  ;;  %vm1540_vm10 = vweird.f32 %v5114_v25  ;;  %v1652_v3 = vor.u32 1.1754944e-38, %v1651_v48  ;;  %vm5165_vm6 = vcmp.eq.f32.partialorder %v1544_v0, 8.507059e+37 }
 0x1e6   : > { %v3784_v18 = vpop.eup %3783  ;;  %v1403_v55 = vmul.f32 %v3778_v22, %v1402_v2  ;;  %3789 = vrcp.f32 %v5153_v52  ;;  %vm1646_vm8 = vweird.f32 %v3780_v21  ;;  %v1547_v58 = vor.u32 1.1754944e-38, %v1546_v51 }
 0x1e7   : > { %v1642_v12 = vsub.f32 1.0, %v1641_v54  ;;  %v1536_v15 = vmul.f32 %v3784_v18, %v5114_v25  ;;  %vm1420_vm9 = vweird.f32 %v5148_v42  ;;  %v1424_v19 = vand.u32 2147483647, %v5148_v42  ;;  %vm5186_vm12 = vmor %vm1645_vm4, %vm1646_vm8 }
 0x1e8   : > { %v1404_v63 = vadd.f32 %v3778_v22, %v1403_v55  ;;  %v1426_v50 = vand.u32 2147483648, %v5148_v42  ;;  %vm1541_vm11 = vweird.f32 %v3784_v18  ;;  %v5180_v4 = vadd.f32 1.0, %v3782_v53 }
 0x1e9   : > { %v3786_v1 = vpop.eup %3785  ;;  %v1643_v62 = vmul.f32 %v3780_v21, %v1642_v12  ;;  %v1537_v23 = vsub.f32 1.0, %v1536_v15  ;;  %vm1660_vm13 = vweird.f32 %v5153_v52  ;;  %v1664_v17 = vand.u32 2147483647, %v5153_v52  ;;  %vm5199_vm0 = vmor %vm1540_vm10, %vm1541_vm11 }
 0x1ea   : > { %v3788_v6 = vpop.eup %3787  ;;  %v1408_v28 = vsel %vm5172_vm7, %v3778_v22, %v1404_v63  ;;  %v5192_v59 = vadd.f32 1.0, %v3786_v1  ;;  %v1666_v31 = vand.u32 2147483648, %v5153_v52  ;;  %3791 = vrcp.f32 %v5180_v4 }
 0x1eb   : > { %v1413_v27 = vsel %vm5140_vm2, %v1412_v60, %v1408_v28  ;;  %v1644_v11 = vadd.f32 %v3780_v21, %v1643_v62  ;;  %v1538_v14 = vmul.f32 %v3784_v18, %v1537_v23  ;;  %v1416_v5 = vmul.f32 %v3788_v6, %v5148_v42 }
 0x1ec   : > { %v3790_v16 = vpop.eup %3789  ;;  %1810 = vmatmul.f32.gmra.mxu1 %v1413_v27  ;;  %vm1421_vm14 = vweird.f32 %v3788_v6  ;;  %v997_v32 = vadd.f32 %v4942_v8, %v5122_v30  ;;  %vm5212_vm15 = vcmp.eq.f32.partialorder %v1424_v19, 8.507059e+37  ;;  %v1005_v29 = vadd.f32 %v4942_v8, %v5138_v37 }
 0x1ed   : > { %v1648_v33 = vsel %vm5186_vm12, %v3780_v21, %v1644_v11  ;;  %v1539_v20 = vadd.f32 %v3784_v18, %v1538_v14  ;;  %v1417_v35 = vsub.f32 1.0, %v1416_v5  ;;  %v1656_v7 = vmul.f32 %v3790_v16, %v5153_v52  ;;  %vm5226_vm2 = vmor %vm1420_vm9, %vm1421_vm14 }
 0x1ee   : > { %v1653_v25 = vsel %vm5160_vm5, %v1652_v3, %v1648_v33  ;;  %vm1661_vm1 = vweird.f32 %v3790_v16  ;;  %3793 = vrcp.f32 %v5192_v59  ;;  %v1427_v43 = vor.u32 1.1754944e-38, %v1426_v50 }
 0x1ef   : > { %1858 = vmatmul.f32.gmra.mxu3 %v1653_v25  ;;  %v1543_v30 = vsel %vm5199_vm0, %v3784_v18, %v1539_v20  ;;  %v1418_v24 = vmul.f32 %v3788_v6, %v1417_v35  ;;  %v1657_v39 = vsub.f32 1.0, %v1656_v7  ;;  %vm5230_vm3 = vcmp.eq.f32.partialorder %v1664_v17, 8.507059e+37  ;;  %vm5238_vm5 = vmor %vm1660_vm13, %vm1661_vm1 }
 0x1f0   : > { %v1548_v34 = vsel %vm5165_vm6, %v1547_v58, %v1543_v30  ;;  %v1667_v22 = vor.u32 1.1754944e-38, %v1666_v31  ;;  %vm1555_vm4 = vweird.f32 %v5180_v4  ;;  %v3465_v60 = vmul.f32 -1.442695, %v997_v32  ;;  %v3792_v40 = vpop.eup %3791 }
 0x1f1   : > { %1837 = vmatmul.f32.gmra.mxu2 %v1548_v34  ;;  %v1419_v46 = vadd.f32 %v3788_v6, %v1418_v24  ;;  %v1658_v47 = vmul.f32 %v3790_v16, %v1657_v39  ;;  %v1561_v48 = vand.u32 2147483648, %v5180_v4  ;;  %v3473_v0 = vmul.f32 -1.442695, %v1005_v29 }
 0x1f2   : > { %v964_v42 = vmul.f32 %v4923_v13, %v922_v41  ;;  %v965_v61 = vmul.f32 %v4923_v13, %v923_v38  ;;  %v1551_v49 = vmul.f32 %v3792_v40, %v5180_v4  ;;  %v1559_v2 = vand.u32 2147483647, %v5180_v4 }
 0x1f3   : > { %v1423_v51 = vsel %vm5226_vm2, %v3788_v6, %v1419_v46  ;;  %v1659_v21 = vadd.f32 %v3790_v16, %v1658_v47  ;;  %vm1556_vm10 = vweird.f32 %v3792_v40  ;;  %3795 = vpow2.f32 %v3465_v60 }
 0x1f4   : > { %v1428_v52 = vsel %vm5212_vm15, %v1427_v43, %v1423_v51  ;;  %v1006_v53 = vadd.f32 %v4942_v8, %v964_v42  ;;  %v3794_v54 = vpop.eup %3793  ;;  %v1552_v9 = vsub.f32 1.0, %v1551_v49  ;;  %3797 = vpow2.f32 %v3473_v0  ;;  %vm5263_vm7 = vmor %vm1555_vm4, %vm1556_vm10 }
 0x1f5   : > { %1813 = vmatmul.f32.gmra.mxu1 %v1428_v52  ;;  %v1663_v13 = vsel %vm5238_vm5, %v3790_v16, %v1659_v21  ;;  %v1007_v18 = vadd.f32 %v4942_v8, %v965_v61  ;;  %v1562_v3 = vor.u32 1.1754944e-38, %v1561_v48  ;;  %v1671_v44 = vmul.f32 %v3794_v54, %v5192_v59 }
 0x1f6   : > { %v1668_v55 = vsel %vm5230_vm3, %v1667_v22, %v1663_v13  ;;  %v3474_v56 = vmul.f32 -1.442695, %v1006_v53  ;;  %v1553_v12 = vmul.f32 %v3792_v40, %v1552_v9  ;;  %vm1675_vm6 = vweird.f32 %v5192_v59 }
 0x1f7   : > { %1861 = vmatmul.f32.gmra.mxu3 %v1668_v55  ;;  %v1681_v15 = vand.u32 2147483648, %v5192_v59  ;;  %v3475_v58 = vmul.f32 -1.442695, %v1007_v18  ;;  %v1672_v8 = vsub.f32 1.0, %v1671_v44  ;;  %vm1676_vm8 = vweird.f32 %v3794_v54 }
 0x1f8   : > { %v1679_v19 = vand.u32 2147483647, %v5192_v59  ;;  %3799 = vpow2.f32 %v3474_v56  ;;  %v1554_v50 = vadd.f32 %v3792_v40, %v1553_v12  ;;  %vm1560_vm9 = vcmp.eq.f32.partialorder %v1559_v2, 8.507059e+37  ;;  %vm1677_vm11 = vmor %vm1675_vm6, %vm1676_vm8 }
 0x1f9   : > { %3801 = vpow2.f32 %v3475_v58  ;;  %v3796_v1 = vpop.eup %3795  ;;  %v1673_v62 = vmul.f32 %v3794_v54, %v1672_v8  ;;  %v1682_v4 = vor.u32 1.1754944e-38, %v1681_v15  ;;  %v1763_v10 = vpop.f32.mrf.mxu0 }
 0x1fa   : > { %v3798_v23 = vpop.eup %3797  ;;  %v1558_v6 = vsel %vm5263_vm7, %v3792_v40, %v1554_v50  ;;  %v1149_v28 = vadd.f32 1.0, %v3796_v1  ;;  %vm1680_vm12 = vcmp.eq.f32.partialorder %v1679_v19, 8.507059e+37  ;;  %1877 = vst [vmem:[#allocation2 + $0xb0] sm:$0xff] %v1763_v10  ;;  %v2192_v37 = vmul.f32 %v1763_v10, %v1763_v10 }
 0x1fb   : > { %v1563_v57 = vsel %vm1560_vm9, %v1562_v3, %v1558_v6  ;;  %v1674_v17 = vadd.f32 %v3794_v54, %v1673_v62  ;;  %v1157_v27 = vadd.f32 1.0, %v3798_v23 }
 0x1fc   : > { %1840 = vmatmul.f32.gmra.mxu2 %v1563_v57  ;;  %3803 = vrcp.f32 %v1149_v28  ;;  %v1574_v20 = vand.u32 2147483647, %v1149_v28  ;;  %v1576_v25 = vand.u32 2147483648, %v1149_v28  ;;  %vm1570_vm13 = vweird.f32 %v1149_v28 }
 0x1fd   : > { %v1678_v14 = vsel %vm1677_vm11, %v3794_v54, %v1674_v17  ;;  %3805 = vrcp.f32 %v1157_v27  ;;  %v5272_v31 = vpop.f32.mrf.mxu1  ;;  %v1694_v29 = vand.u32 2147483647, %v1157_v27  ;;  %v1696_v24 = vand.u32 2147483648, %v1157_v27 }
 0x1fe   : > { %v3800_v11 = vpop.eup %3799  ;;  %v1683_v16 = vsel %vm1680_vm12, %v1682_v4, %v1678_v14  ;;  %1886 = vst [vmem:[#allocation2 + $0x88] sm:$0xff] %v5272_v31  ;;  %vm5281_vm14 = vcmp.eq.f32.partialorder %v1574_v20, 8.507059e+37  ;;  %vm1690_vm15 = vweird.f32 %v1157_v27  ;;  %v1577_v40 = vor.u32 1.1754944e-38, %v1576_v25 }
 0x1ff   : > { %v3802_v5 = vpop.eup %3801  ;;  %1864 = vmatmul.f32.gmra.mxu3 %v1683_v16  ;;  %v5274_v32 = vadd.f32 1.0, %v3800_v11  ;;  %vm5293_vm3 = vcmp.eq.f32.partialorder %v1694_v29, 8.507059e+37  ;;  %v1697_v51 = vor.u32 1.1754944e-38, %v1696_v24 }
 0x200   : > { %v5276_v59 = vadd.f32 1.0, %v3802_v5 }
 0x201   : > { %3807 = vrcp.f32 %v5274_v32  ;;  %v1766_v38 = vpop.f32.mrf.mxu0  ;;  %vm1705_vm5 = vweird.f32 %v5274_v32  ;;  %v1709_v13 = vand.u32 2147483647, %v5274_v32  ;;  %v1711_v9 = vand.u32 2147483648, %v5274_v32 }
 0x202   : > { %v3804_v33 = vpop.eup %3803  ;;  %3809 = vrcp.f32 %v5276_v59  ;;  %1878 = vst [vmem:[#allocation2 + $0xd0] sm:$0xff] %v1766_v38  ;;  %v2146_v22 = vadd.f32 %v1766_v38, %v1763_v10  ;;  %v2193_v46 = vmul.f32 %v1766_v38, %v1766_v38  ;;  %vm1720_vm8 = vweird.f32 %v5276_v59 }
 0x203   : > { %v3806_v35 = vpop.eup %3805  ;;  %v1566_v7 = vmul.f32 %v3804_v33, %v1149_v28  ;;  %vm1571_vm0 = vweird.f32 %v3804_v33  ;;  %v1712_v58 = vor.u32 1.1754944e-38, %v1711_v9  ;;  %vm1710_vm7 = vcmp.eq.f32.partialorder %v1709_v13, 8.507059e+37 }
 0x204   : > { %v1686_v36 = vmul.f32 %v3806_v35, %v1157_v27  ;;  %vm1691_vm1 = vweird.f32 %v3806_v35  ;;  %vm5289_vm2 = vmor %vm1570_vm13, %vm1571_vm0  ;;  %v2230_v49 = vadd.f32 %v2193_v46, %v2192_v37  ;;  %v1726_v23 = vand.u32 2147483648, %v5276_v59 }
 0x205   : > { %v1567_v30 = vsub.f32 1.0, %v1566_v7  ;;  %vm5301_vm4 = vmor %vm1690_vm15, %vm1691_vm1  ;;  %v1724_v4 = vand.u32 2147483647, %v5276_v59 }
 0x206   : > { %v1687_v41 = vsub.f32 1.0, %v1686_v36  ;;  %v1727_v17 = vor.u32 1.1754944e-38, %v1726_v23 }
 0x207   : > { %v5285_v34 = vpop.f32.mrf.mxu2  ;;  %v3808_v45 = vpop.eup %3807  ;;  %v1568_v43 = vmul.f32 %v3804_v33, %v1567_v30  ;;  %vm1725_vm12 = vcmp.eq.f32.partialorder %v1724_v4, 8.507059e+37 }
 0x208   : > { %v3810_v47 = vpop.eup %3809  ;;  %v1688_v26 = vmul.f32 %v3806_v35, %v1687_v41  ;;  %v1701_v0 = vmul.f32 %v3808_v45, %v5274_v32  ;;  %1895 = vst [vmem:[#allocation2 + $0x8] sm:$0xff] %v5285_v34  ;;  %vm1706_vm10 = vweird.f32 %v3808_v45 }
 0x209   : > { %v1569_v42 = vadd.f32 %v3804_v33, %v1568_v43  ;;  %v1716_v21 = vmul.f32 %v3810_v47, %v5276_v59  ;;  %vm1707_vm6 = vmor %vm1705_vm5, %vm1706_vm10  ;;  %v1769_v15 = vpop.f32.mrf.mxu0  ;;  %vm1721_vm9 = vweird.f32 %v3810_v47 }
 0x20a   : > { %v5306_v2 = vpop.f32.mrf.mxu1  ;;  %v1689_v52 = vadd.f32 %v3806_v35, %v1688_v26  ;;  %v1702_v53 = vsub.f32 1.0, %v1701_v0  ;;  %1879 = vst [vmem:[#allocation2 + $0x10] sm:$0xff] %v1769_v15  ;;  %v2147_v63 = vadd.f32 %v2146_v22, %v1769_v15  ;;  %v2194_v8 = vmul.f32 %v1769_v15, %v1769_v15  ;;  %vm1722_vm11 = vmor %vm1720_vm8, %vm1721_vm9 }
 0x20b   : > { %1887 = vst [vmem:[#allocation2 + $0x110] sm:$0xff] %v5306_v2  ;;  %v1573_v54 = vsel %vm5289_vm2, %v3804_v33, %v1569_v42  ;;  %v1717_v44 = vsub.f32 1.0, %v1716_v21 }
 0x20c   : > { %v1578_v18 = vsel %vm5281_vm14, %v1577_v40, %v1573_v54  ;;  %v1693_v55 = vsel %vm5301_vm4, %v3806_v35, %v1689_v52  ;;  %v1703_v3 = vmul.f32 %v3808_v45, %v1702_v53  ;;  %v2231_v1 = vadd.f32 %v2230_v49, %v2194_v8 }
 0x20d   : > { %1843 = vmatmul.f32.gmra.mxu2 %v1578_v18  ;;  %v1698_v56 = vsel %vm5293_vm3, %v1697_v51, %v1693_v55  ;;  %v1718_v50 = vmul.f32 %v3810_v47, %v1717_v44  ;;  %v2201_v51 = vmul.f32 %v5272_v31, %v5272_v31  ;;  %v2202_v53 = vmul.f32 %v5306_v2, %v5306_v2 }
 0x20e   : > { %1867 = vmatmul.f32.gmra.mxu3 %v1698_v56  ;;  %v1704_v12 = vadd.f32 %v3808_v45, %v1703_v3 }
 0x20f   : > { %v1719_v6 = vadd.f32 %v3810_v47, %v1718_v50 }
 0x210   : > { %v1708_v19 = vsel %vm1707_vm6, %v3808_v45, %v1704_v12 }
 0x211   : > { %v1713_v62 = vsel %vm1710_vm7, %v1712_v58, %v1708_v19  ;;  %v1772_v57 = vpop.f32.mrf.mxu0  ;;  %v1723_v14 = vsel %vm1722_vm11, %v3810_v47, %v1719_v6 }
 0x212   : > { %1880 = vst [vmem:[#allocation2 + $0x48] sm:$0xff] %v1772_v57  ;;  %v2148_v27 = vadd.f32 %v2147_v63, %v1772_v57  ;;  %v2195_v11 = vmul.f32 %v1772_v57, %v1772_v57  ;;  %v1728_v10 = vsel %vm1725_vm12, %v1727_v17, %v1723_v14 }
 0x214   : > { %v2232_v16 = vadd.f32 %v2231_v1, %v2195_v11 }
 0x215   : > { %v5323_v28 = vpop.f32.mrf.mxu2 }
 0x216   : > { %1896 = vst [vmem:[#allocation2 + $0x98] sm:$0xff] %v5323_v28  ;;  %1870 = vmatmul.f32.gmra.mxu3 %v1713_v62 }
 0x219   : > { %v1796_v5 = vpop.f32.mrf.mxu1  ;;  %v1775_v32 = vpop.f32.mrf.mxu0 }
 0x21a   : > { %1888 = vst [vmem:[#allocation2 + $0xf0] sm:$0xff] %v1796_v5  ;;  %v2149_v59 = vadd.f32 %v2148_v27, %v1775_v32  ;;  %v2196_v33 = vmul.f32 %v1775_v32, %v1775_v32  ;;  %v2203_v9 = vmul.f32 %v1796_v5, %v1796_v5 }
 0x21b   : > { %1881 = vst [vmem:[#allocation2 + $0x120] sm:$0xff] %v1775_v32 }
 0x21c   : > { %v2233_v35 = vadd.f32 %v2232_v16, %v2196_v33 }
 0x21e   : > { %1873 = vmatmul.f32.gmra.mxu3 %v1728_v10 }
 0x221   : > { %v1799_v20 = vpop.f32.mrf.mxu1  ;;  %v1778_v25 = vpop.f32.mrf.mxu0 }
 0x222   : > { %1889 = vst [vmem:[#allocation2 + $0x40] sm:$0xff] %v1799_v20  ;;  %v2197_v38 = vmul.f32 %v1778_v25, %v1778_v25  ;;  %v2150_v45 = vadd.f32 %v2149_v59, %v1778_v25  ;;  %v2204_v3 = vmul.f32 %v1799_v20, %v1799_v20  ;;  %v2210_v59 = vmul.f32 %v5285_v34, %v5285_v34 }
 0x223   : > { %1882 = vst [vmem:[#allocation2 + $0x38] sm:$0xff] %v1778_v25 }
 0x224   : > { %v5326_v7 = vpop.f32.mrf.mxu2  ;;  %v2234_v22 = vadd.f32 %v2233_v35, %v2197_v38  ;;  %v2211_v35 = vmul.f32 %v5323_v28, %v5323_v28 }
 0x225   : > { %1897 = vst [vmem:[#allocation2 + $0xa8] sm:$0xff] %v5326_v7 }
 0x22a   : > { %v5329_v36 = vpop.f32.mrf.mxu3 }
 0x22b   : > { %1905 = vst [vmem:[#allocation2 + $0xe8] sm:$0xff] %v5329_v36 }
 0x22c   : > { %v1781_v29 = vpop.f32.mrf.mxu0 }
 0x22d   : > { %1883 = vst [vmem:[#allocation2 + $0x70] sm:$0xff] %v1781_v29  ;;  %v2198_v43 = vmul.f32 %v1781_v29, %v1781_v29  ;;  %v2151_v46 = vadd.f32 %v2150_v45, %v1781_v29 }
 0x22f   : > { %v2235_v40 = vadd.f32 %v2234_v22, %v2198_v43 }
 0x233   : > { %v1802_v30 = vpop.f32.mrf.mxu1 }
 0x234   : > { %1890 = vst [vmem:[#allocation2 + $0xc8] sm:$0xff] %v1802_v30 }
 0x235   : > { %v5332_v24 = vpop.f32.mrf.mxu2 }
 0x236   : > { %1898 = vst [vmem:[#allocation2 + $0x90] sm:$0xff] %v5332_v24  ;;  %v2213_v43 = vmul.f32 %v5332_v24, %v5332_v24 }
 0x23b   : > { %v5335_v39 = vpop.f32.mrf.mxu3 }
 0x23c   : > { %1906 = vst [vmem:[#allocation2] sm:$0xff] %v5335_v39 }
 0x242   : > { %v1784_v41 = vpop.f32.mrf.mxu0 }
 0x243   : > { %1884 = vst [vmem:[#allocation2 + $0x100] sm:$0xff] %v1784_v41  ;;  %v2199_v47 = vmul.f32 %v1784_v41, %v1784_v41  ;;  %v2152_v26 = vadd.f32 %v2151_v46, %v1784_v41 }
 0x245   : > { %v2236_v0 = vadd.f32 %v2235_v40, %v2199_v47 }
 0x248   : > { %v1805_v37 = vpop.f32.mrf.mxu1 }
 0x249   : > { %1891 = vst [vmem:[#allocation2 + $0x30] sm:$0xff] %v1805_v37 }
 0x24b   : > { %v5338_v60 = vpop.f32.mrf.mxu2 }
 0x24c   : > { %1899 = vst [vmem:[#allocation2 + $0xe0] sm:$0xff] %v5338_v60  ;;  %v1787_v48 = vpop.f32.mrf.mxu0  ;;  %v2214_v46 = vmul.f32 %v5338_v60, %v5338_v60 }
 0x24d   : > { %1885 = vst [vmem:[#allocation2 + $0x108] sm:$0xff] %v1787_v48  ;;  %v2153_v42 = vadd.f32 %v2152_v26, %v1787_v48  ;;  %v2200_v61 = vmul.f32 %v1787_v48, %v1787_v48 }
 0x24f   : > { %v2154_v21 = vadd.f32 %v2153_v42, %v5272_v31  ;;  %v2237_v49 = vadd.f32 %v2236_v0, %v2200_v61  ;;  %v5344_v52 = vpop.f32.mrf.mxu3  ;;  %v2205_v31 = vmul.f32 %v1802_v30, %v1802_v30 }
 0x250   : > { %1907 = vst [vmem:[#allocation2 + $0xd8] sm:$0xff] %v5344_v52 }
 0x251   : > { %v2155_v54 = vadd.f32 %v2154_v21, %v5306_v2  ;;  %v2238_v13 = vadd.f32 %v2237_v49, %v2201_v51  ;;  %v2206_v2 = vmul.f32 %v1805_v37, %v1805_v37 }
 0x253   : > { %v2156_v18 = vadd.f32 %v2155_v54, %v1796_v5  ;;  %v2239_v55 = vadd.f32 %v2238_v13, %v2202_v53 }
 0x255   : > { %v2240_v44 = vadd.f32 %v2239_v55, %v2203_v9  ;;  %v2157_v56 = vadd.f32 %v2156_v18, %v1799_v20  ;;  %v1832_v12 = vpop.f32.mrf.mxu2 }
 0x256   : > { %1900 = vst [vmem:[#allocation2 + $0xf8] sm:$0xff] %v1832_v12  ;;  %v2215_v26 = vmul.f32 %v1832_v12, %v1832_v12 }
 0x257   : > { %v1808_v15 = vpop.f32.mrf.mxu1  ;;  %v2158_v58 = vadd.f32 %v2157_v56, %v1802_v30  ;;  %v2241_v63 = vadd.f32 %v2240_v44, %v2204_v3  ;;  %v2212_v30 = vmul.f32 %v5326_v7, %v5326_v7  ;;  %v2220_v3 = vmul.f32 %v5329_v36, %v5329_v36 }
 0x258   : > { %1892 = vst [vmem:[#allocation2 + $0x20] sm:$0xff] %v1808_v15  ;;  %v2207_v4 = vmul.f32 %v1808_v15, %v1808_v15 }
 0x259   : > { %v2242_v8 = vadd.f32 %v2241_v63, %v2205_v31  ;;  %v2159_v50 = vadd.f32 %v2158_v58, %v1805_v37  ;;  %v2221_v31 = vmul.f32 %v5335_v39, %v5335_v39  ;;  %v2222_v63 = vmul.f32 %v5344_v52, %v5344_v52 }
 0x25b   : > { %v2243_v62 = vadd.f32 %v2242_v8, %v2206_v2  ;;  %v2160_v6 = vadd.f32 %v2159_v50, %v1808_v15 }
 0x25d   : > { %v2244_v57 = vadd.f32 %v2243_v62, %v2207_v4 }
 0x264   : > { %v5350_v19 = vpop.f32.mrf.mxu3 }
 0x265   : > { %1908 = vst [vmem:[#allocation2 + $0x28] sm:$0xff] %v5350_v19 }
 0x268   : > { %v1835_v1 = vpop.f32.mrf.mxu2 }
 0x269   : > { %v1811_v23 = vpop.f32.mrf.mxu1  ;;  %1901 = vst [vmem:[#allocation2 + $0xa0] sm:$0xff] %v1835_v1  ;;  %v2216_v42 = vmul.f32 %v1835_v1, %v1835_v1 }
 0x26a   : > { %1893 = vst [vmem:[#allocation2 + $0x128] sm:$0xff] %v1811_v23  ;;  %v2161_v17 = vadd.f32 %v2160_v6, %v1811_v23  ;;  %v2208_v27 = vmul.f32 %v1811_v23, %v1811_v23 }
 0x26c   : > { %v2245_v11 = vadd.f32 %v2244_v57, %v2208_v27 }
 0x272   : > { %v5353_v14 = vpop.f32.mrf.mxu3  ;;  %v1814_v5 = vpop.f32.mrf.mxu1 }
 0x273   : > { %1909 = vst [vmem:[#allocation2 + $0x60] sm:$0xff] %v5353_v14  ;;  %v2162_v16 = vadd.f32 %v2161_v17, %v1814_v5  ;;  %v2209_v10 = vmul.f32 %v1814_v5, %v1814_v5  ;;  %v2224_v6 = vmul.f32 %v5353_v14, %v5353_v14 }
 0x274   : > { %1894 = vst [vmem:[#allocation2 + $0x50] sm:$0xff] %v1814_v5  ;;  %v1838_v32 = vpop.f32.mrf.mxu2 }
 0x275   : > { %v2163_v33 = vadd.f32 %v2162_v16, %v5285_v34  ;;  %v2246_v20 = vadd.f32 %v2245_v11, %v2209_v10  ;;  %1902 = vst [vmem:[#allocation2 + $0x78] sm:$0xff] %v1838_v32  ;;  %v2217_v21 = vmul.f32 %v1838_v32, %v1838_v32 }
 0x277   : > { %v2164_v25 = vadd.f32 %v2163_v33, %v5323_v28  ;;  %v2247_v29 = vadd.f32 %v2246_v20, %v2210_v59 }
 0x279   : > { %v2165_v41 = vadd.f32 %v2164_v25, %v5326_v7  ;;  %v2248_v38 = vadd.f32 %v2247_v29, %v2211_v35 }
 0x27a   : > { %v1862_v45 = vpop.f32.mrf.mxu3 }
 0x27b   : > { %v2166_v34 = vadd.f32 %v2165_v41, %v5332_v24  ;;  %v2249_v37 = vadd.f32 %v2248_v38, %v2212_v30  ;;  %1910 = vst [vmem:[#allocation2 + $0x68] sm:$0xff] %v1862_v45  ;;  %v2225_v17 = vmul.f32 %v1862_v45, %v1862_v45 }
 0x27d   : > { %v2250_v22 = vadd.f32 %v2249_v37, %v2213_v43  ;;  %v2167_v28 = vadd.f32 %v2166_v34, %v5338_v60 }
 0x27f   : > { %v2251_v47 = vadd.f32 %v2250_v22, %v2214_v46  ;;  %v1841_v40 = vpop.f32.mrf.mxu2  ;;  %v2168_v7 = vadd.f32 %v2167_v28, %v1832_v12  ;;  %v1915_v12 = vlaneseq }
 0x280   : > { %1903 = vst [vmem:[#allocation2 + $0xc0] sm:$0xff] %v1841_v40  ;;  %v2218_v54 = vmul.f32 %v1841_v40, %v1841_v40 }
 0x281   : > { %v2252_v0 = vadd.f32 %v2251_v47, %v2215_v26  ;;  %v2169_v61 = vadd.f32 %v2168_v7, %v1835_v1  ;;  %v1916_v50 = vshrl.u32 %v1915_v12, 7  ;;  %v2223_v1 = vmul.f32 %v5350_v19, %v5350_v19 }
 0x282   : > { %v1865_v48 = vpop.f32.mrf.mxu3 }
 0x283   : > { %1911 = vst [vmem:[#allocation2 + $0x18] sm:$0xff] %v1865_v48  ;;  %v2253_v51 = vadd.f32 %v2252_v0, %v2216_v42  ;;  %v2170_v24 = vadd.f32 %v2169_v61, %v1838_v32  ;;  %v1953_v57 = vadd.s32 296, %v1916_v50  ;;  %v2226_v11 = vmul.f32 %v1865_v48, %v1865_v48 }
 0x285   : > { %v2254_v49 = vadd.f32 %v2253_v51, %v2217_v21  ;;  %v2171_v53 = vadd.f32 %v2170_v24, %v1841_v40  ;;  %vm2030_vm13 = vcmp.lt.s32.totalorder %v1953_v57, 300  ;;  %v2145_v40 = vld [vmem:[#allocation3] sm:$0x1] }
 0x287   : > { %v2255_v13 = vadd.f32 %v2254_v49, %v2218_v54 }
 0x290   : > { %v1844_v9 = vpop.f32.mrf.mxu2 }
 0x291   : > { %1904 = vst [vmem:[#allocation2 + $0x80] sm:$0xff] %v1844_v9  ;;  %v2172_v60 = vadd.f32 %v2171_v53, %v1844_v9  ;;  %v2219_v18 = vmul.f32 %v1844_v9, %v1844_v9  ;;  %v1868_v55 = vpop.f32.mrf.mxu3 }
 0x292   : > { %1912 = vst [vmem:[#allocation2 + $0x58] sm:$0xff] %v1868_v55  ;;  %v2227_v32 = vmul.f32 %v1868_v55, %v1868_v55 }
 0x293   : > { %v2173_v44 = vadd.f32 %v2172_v60, %v5329_v36  ;;  %v2256_v56 = vadd.f32 %v2255_v13, %v2219_v18 }
 0x295   : > { %v2174_v15 = vadd.f32 %v2173_v44, %v5335_v39  ;;  %v2257_v58 = vadd.f32 %v2256_v56, %v2220_v3 }
 0x297   : > { %v2175_v8 = vadd.f32 %v2174_v15, %v5344_v52  ;;  %v2258_v2 = vadd.f32 %v2257_v58, %v2221_v31 }
 0x299   : > { %v2176_v36 = vadd.f32 %v2175_v8, %v5350_v19  ;;  %v2259_v62 = vadd.f32 %v2258_v2, %v2222_v63  ;;  %v1871_v23 = vpop.f32.mrf.mxu3 }
 0x29a   : > { %1913 = vst [vmem:[#allocation2 + $0x118] sm:$0xff] %v1871_v23  ;;  %v2228_v35 = vmul.f32 %v1871_v23, %v1871_v23 }
 0x29b   : > { %v2260_v39 = vadd.f32 %v2259_v62, %v2223_v1  ;;  %v2177_v4 = vadd.f32 %v2176_v36, %v5353_v14 }
 0x29d   : > { %v2178_v27 = vadd.f32 %v2177_v4, %v1862_v45  ;;  %v2261_v52 = vadd.f32 %v2260_v39, %v2224_v6 }
 0x29f   : > { %v2179_v5 = vadd.f32 %v2178_v27, %v1865_v48  ;;  %v2262_v16 = vadd.f32 %v2261_v52, %v2225_v17  ;;  %v2191_v48 = vld [vmem:[#allocation4] sm:$0x1] }
 0x2a1   : > { %v2180_v10 = vadd.f32 %v2179_v5, %v1868_v55  ;;  %v2263_v19 = vadd.f32 %v2262_v16, %v2226_v11  ;;  %v1874_v59 = vpop.f32.mrf.mxu3 }
 0x2a2   : > { %1914 = vst [vmem:[#allocation2 + $0xb8] sm:$0xff] %v1874_v59  ;;  %v2144_v33 = vsel %vm2030_vm13, %v1874_v59, 0.0 }
 0x2a3   : > { %v2264_v20 = vadd.f32 %v2263_v19, %v2227_v32  ;;  %v2181_v25 = vadd.f32 %v2180_v10, %v1871_v23  ;;  %v2229_v29 = vmul.f32 %v2144_v33, %v2144_v33 }
 0x2a5   : > { %v2182_v30 = vadd.f32 %v2181_v25, %v2144_v33  ;;  %v2265_v14 = vadd.f32 %v2264_v20, %v2228_v35 }
 0x2a7   : > { %v2183_v41 = vrot.slane %v2182_v30, 4  ;;  %v2266_v38 = vadd.f32 %v2265_v14, %v2229_v29 }
 0x2a9   : > { %v2184_v45 = vadd.f32 %v2183_v41, %v2182_v30  ;;  %v2267_v43 = vrot.slane %v2266_v38, 4 }
 0x2ab   : > { %v2185_v34 = vrot.slane %v2184_v45, 2  ;;  %v2268_v37 = vadd.f32 %v2267_v43, %v2266_v38 }
 0x2ad   : > { %v2186_v22 = vadd.f32 %v2185_v34, %v2184_v45  ;;  %v2269_v46 = vrot.slane %v2268_v37, 2 }
 0x2af   : > { %v2187_v28 = vrot.slane %v2186_v22, 1  ;;  %v2270_v47 = vadd.f32 %v2269_v46, %v2268_v37 }
 0x2b1   : > { %v2188_v26 = vadd.f32 %v2187_v28, %v2186_v22  ;;  %v2271_v7 = vrot.slane %v2270_v47, 1 }
 0x2b3   : > { %v2189_v0 = vadd.f32 %v2188_v26, %v2145_v40  ;;  %v2272_v42 = vadd.f32 %v2271_v7, %v2270_v47 }
 0x2b5   : > { %2190 = vst [vmem:[#allocation3] sm:$0x1] %v2189_v0  ;;  %v2273_v61 = vadd.f32 %v2272_v42, %v2191_v48 }
 0x2b7   : > { %2274 = vst [vmem:[#allocation4] sm:$0x1] %v2273_v61 }
 0x2b8 PF: > { %p3476_p9 = scmp.ne.s32.totalorder %s3984_s30, 2 }
 0x2ba   : > { %2278 = sbr.rel (%p3476_p9) target bundleno = 1020 (0x3fc), region = 76 }
 0x2bf   : > { %v3139_v51 = vld [vmem:[%s6506_s3 + $0x78] sm:$0xff]  ;;  %v3138_v24 = vld [vmem:[%s6506_s3 + $0x70] sm:$0xff]  ;;  %v3137_v21 = vld [vmem:[%s6506_s3 + $0x68] sm:$0xff] }
 0x2c0   : > { %3582 = vmatpush.msra.mxu2 %v3139_v51  ;;  %3583 = vmatpush.msra.mxu3 %v3139_v51  ;;  %v3136_v49 = vld [vmem:[%s6506_s3 + $0x60] sm:$0xff]  ;;  %v3135_v53 = vld [vmem:[%s6506_s3 + $0x58] sm:$0xff]  ;;  %v2298_v54 = vld [vmem:[#allocation2 + $0x8] sm:$0xff] }
 0x2c1   : > { %3144 = vmatpush.msra.mxu0 %v3139_v51  ;;  %3581 = vmatpush.msra.mxu1 %v3139_v51  ;;  %v5402_v13 = vld [vmem:[#allocation5] ss:$0 sm:$0xff]  ;;  %v5404_v9 = vld [vmem:[#allocation6] ss:$0 sm:$0xff]  ;;  %v2308_v60 = vld [vmem:[#allocation2 + $0xe8] sm:$0xff] }
 0x2c2   : > { %3585 = vmatpush.msra.mxu2 %v3138_v24  ;;  %3586 = vmatpush.msra.mxu3 %v3138_v24  ;;  %v2299_v18 = vld [vmem:[#allocation2 + $0x98] sm:$0xff]  ;;  %v2309_v55 = vld [vmem:[#allocation2] sm:$0xff]  ;;  %v3134_v3 = vld [vmem:[%s6506_s3 + $0x50] sm:$0xff]  ;;  %v2340_v44 = vmul.f32 %v5402_v13, %v2298_v54  ;;  %v2350_v56 = vmul.f32 %v5402_v13, %v2308_v60 }
 0x2c3   : > { %3145 = vmatpush.msra.mxu0 %v3138_v24  ;;  %3584 = vmatpush.msra.mxu1 %v3138_v24  ;;  %v2341_v12 = vmul.f32 %v5402_v13, %v2299_v18  ;;  %v2280_v31 = vld [vmem:[#allocation2 + $0xb0] sm:$0xff]  ;;  %v2289_v15 = vld [vmem:[#allocation2 + $0x88] sm:$0xff]  ;;  %v2351_v63 = vmul.f32 %v5402_v13, %v2309_v55  ;;  %v3132_v1 = vld [vmem:[%s6506_s3 + $0x40] sm:$0xff] }
 0x2c4   : > { %3588 = vmatpush.msra.mxu2 %v3137_v21  ;;  %3589 = vmatpush.msra.mxu3 %v3137_v21  ;;  %v3133_v58 = vld [vmem:[%s6506_s3 + $0x48] sm:$0xff]  ;;  %v2322_v8 = vmul.f32 %v5402_v13, %v2280_v31  ;;  %v2331_v2 = vmul.f32 %v5402_v13, %v2289_v15  ;;  %v2382_v36 = vadd.f32 %v5404_v9, %v2340_v44  ;;  %v2310_v6 = vld [vmem:[#allocation2 + $0xd8] sm:$0xff]  ;;  %v2281_v17 = vld [vmem:[#allocation2 + $0xd0] sm:$0xff] }
 0x2c5   : > { %3146 = vmatpush.msra.mxu0 %v3137_v21  ;;  %3587 = vmatpush.msra.mxu1 %v3137_v21  ;;  %v2300_v50 = vld [vmem:[#allocation2 + $0xa8] sm:$0xff]  ;;  %v2392_v62 = vadd.f32 %v5404_v9, %v2350_v56  ;;  %v2383_v23 = vadd.f32 %v5404_v9, %v2341_v12  ;;  %v2393_v39 = vadd.f32 %v5404_v9, %v2351_v63  ;;  %v2290_v27 = vld [vmem:[#allocation2 + $0x110] sm:$0xff]  ;;  %v3131_v33 = vld [vmem:[%s6506_s3 + $0x38] sm:$0xff] }
 0x2c6   : > { %3591 = vmatpush.msra.mxu2 %v3136_v49  ;;  %3592 = vmatpush.msra.mxu3 %v3136_v49  ;;  %v2364_v4 = vadd.f32 %v5404_v9, %v2322_v8  ;;  %v2373_v57 = vadd.f32 %v5404_v9, %v2331_v2  ;;  %v2301_v52 = vld [vmem:[#allocation2 + $0x90] sm:$0xff]  ;;  %v3495_v11 = vmul.f32 -1.442695, %v2382_v36  ;;  %v2342_v10 = vmul.f32 %v5402_v13, %v2300_v50  ;;  %v2311_v29 = vld [vmem:[#allocation2 + $0x28] sm:$0xff]  ;;  %v3128_v26 = vld [vmem:[%s6506_s3 + $0x20] sm:$0xff] }
 0x2c7   : > { %3147 = vmatpush.msra.mxu0 %v3136_v49  ;;  %3590 = vmatpush.msra.mxu1 %v3136_v49  ;;  %v3505_v5 = vmul.f32 -1.442695, %v2392_v62  ;;  %v3496_v16 = vmul.f32 -1.442695, %v2383_v23  ;;  %v3506_v32 = vmul.f32 -1.442695, %v2393_v39  ;;  %v2352_v59 = vmul.f32 %v5402_v13, %v2310_v6 }
 0x2c8   : > { %3594 = vmatpush.msra.mxu2 %v3135_v53  ;;  %3595 = vmatpush.msra.mxu3 %v3135_v53  ;;  %v3477_v19 = vmul.f32 -1.442695, %v2364_v4  ;;  %3816 = vpow2.f32 %v3495_v11  ;;  %v3486_v20 = vmul.f32 -1.442695, %v2373_v57  ;;  %v2384_v35 = vadd.f32 %v5404_v9, %v2342_v10  ;;  %v3130_v38 = vld [vmem:[%s6506_s3 + $0x30] sm:$0xff]  ;;  %v3129_v34 = vld [vmem:[%s6506_s3 + $0x28] sm:$0xff] }
 0x2c9   : > { %3148 = vmatpush.msra.mxu0 %v3135_v53  ;;  %3593 = vmatpush.msra.mxu1 %v3135_v53  ;;  %v2323_v25 = vmul.f32 %v5402_v13, %v2281_v17  ;;  %3818 = vpow2.f32 %v3505_v5  ;;  %v2394_v30 = vadd.f32 %v5404_v9, %v2352_v59  ;;  %v2332_v14 = vmul.f32 %v5402_v13, %v2290_v27  ;;  %v2282_v47 = vld [vmem:[#allocation2 + $0x10] sm:$0xff]  ;;  %v3127_v61 = vld [vmem:[%s6506_s3 + $0x18] sm:$0xff]  ;;  %v3125_v8 = vld [vmem:[%s6506_s3 + $0x8] sm:$0xff] }
 0x2ca   : > { %3597 = vmatpush.msra.mxu2 %v3134_v3  ;;  %3598 = vmatpush.msra.mxu3 %v3134_v3  ;;  %v2343_v41 = vmul.f32 %v5402_v13, %v2301_v52  ;;  %3820 = vpow2.f32 %v3496_v16  ;;  %v2353_v45 = vmul.f32 %v5402_v13, %v2311_v29  ;;  %v3497_v43 = vmul.f32 -1.442695, %v2384_v35  ;;  %v2291_v60 = vld [vmem:[#allocation2 + $0xf0] sm:$0xff]  ;;  %v3124_v6 = vld [vmem:[%s6506_s3] sm:$0xff] }
 0x2cb   : > { %3149 = vmatpush.msra.mxu0 %v3134_v3  ;;  %3596 = vmatpush.msra.mxu1 %v3134_v3  ;;  %3822 = vpow2.f32 %v3506_v32  ;;  %v3507_v37 = vmul.f32 -1.442695, %v2394_v30  ;;  %v2365_v22 = vadd.f32 %v5404_v9, %v2323_v25  ;;  %v2374_v46 = vadd.f32 %v5404_v9, %v2332_v14  ;;  %v3126_v55 = vld [vmem:[%s6506_s3 + $0x10] sm:$0xff] }
 0x2cc   : > { %3600 = vmatpush.msra.mxu2 %v3133_v58  ;;  %3601 = vmatpush.msra.mxu3 %v3133_v58  ;;  %3824 = vpow2.f32 %v3477_v19  ;;  %v2385_v28 = vadd.f32 %v5404_v9, %v2343_v41  ;;  %v2395_v7 = vadd.f32 %v5404_v9, %v2353_v45  ;;  %v2324_v21 = vmul.f32 %v5402_v13, %v2282_v47 }
 0x2cd   : > { %3150 = vmatpush.msra.mxu0 %v3133_v58  ;;  %3599 = vmatpush.msra.mxu1 %v3133_v58  ;;  %3826 = vpow2.f32 %v3486_v20  ;;  %v3478_v24 = vmul.f32 -1.442695, %v2365_v22  ;;  %v5460_v53 = vmul.f32 -1.442695, %v2374_v46 }
 0x2ce   : > { %3603 = vmatpush.msra.mxu2 %v3132_v1  ;;  %3604 = vmatpush.msra.mxu3 %v3132_v1  ;;  %v3817_v40 = vpop.eup %3816  ;;  %3828 = vpow2.f32 %v3497_v43  ;;  %v5462_v54 = vmul.f32 -1.442695, %v2385_v28  ;;  %v5470_v56 = vmul.f32 -1.442695, %v2395_v7  ;;  %v5484_v50 = vadd.f32 %v5404_v9, %v2324_v21  ;;  %v2312_v28 = vld [vmem:[#allocation2 + $0x60] sm:$0xff] }
 0x2cf   : > { %3151 = vmatpush.msra.mxu0 %v3132_v1  ;;  %3602 = vmatpush.msra.mxu1 %v3132_v1  ;;  %v3819_v48 = vpop.eup %3818  ;;  %v5451_v0 = vadd.f32 1.0, %v3817_v40  ;;  %3830 = vpow2.f32 %v3507_v37  ;;  %v5487_v1 = vmul.f32 %v5402_v13, %v2291_v60 }
 0x2d0   : > { %3606 = vmatpush.msra.mxu2 %v3131_v33  ;;  %3607 = vmatpush.msra.mxu3 %v3131_v33  ;;  %v3821_v42 = vpop.eup %3820  ;;  %v5456_v51 = vadd.f32 1.0, %v3819_v48 }
 0x2d1   : > { %3152 = vmatpush.msra.mxu0 %v3131_v33  ;;  %3605 = vmatpush.msra.mxu1 %v3131_v33  ;;  %v3823_v49 = vpop.eup %3822  ;;  %3832 = vrcp.f32 %v5451_v0  ;;  %v2833_v3 = vand.u32 2147483647, %v5451_v0  ;;  %v2835_v44 = vand.u32 2147483648, %v5451_v0  ;;  %v5474_v58 = vadd.f32 1.0, %v3821_v42 }
 0x2d2   : > { %3609 = vmatpush.msra.mxu2 %v3130_v38  ;;  %3610 = vmatpush.msra.mxu3 %v3130_v38  ;;  %v3825_v18 = vpop.eup %3824  ;;  %3834 = vrcp.f32 %v5456_v51  ;;  %v2983_v31 = vand.u32 2147483647, %v5456_v51  ;;  %v2985_v15 = vand.u32 2147483648, %v5456_v51  ;;  %v5476_v63 = vadd.f32 1.0, %v3823_v49 }
 0x2d3   : > { %3153 = vmatpush.msra.mxu0 %v3130_v38  ;;  %3608 = vmatpush.msra.mxu1 %v3130_v38  ;;  %v3827_v12 = vpop.eup %3826  ;;  %v5481_v2 = vadd.f32 1.0, %v3825_v18  ;;  %3836 = vpow2.f32 %v3478_v24  ;;  %vm2829_vm0 = vweird.f32 %v5451_v0  ;;  %vm2979_vm14 = vweird.f32 %v5456_v51 }
 0x2d4   : > { %3612 = vmatpush.msra.mxu2 %v3129_v34  ;;  %3613 = vmatpush.msra.mxu3 %v3129_v34  ;;  %v5489_v36 = vpop.eup %3828  ;;  %3838 = vrcp.f32 %v5474_v58  ;;  %v2850_v62 = vand.u32 2147483648, %v5474_v58  ;;  %vm5500_vm15 = vcmp.eq.f32.partialorder %v2833_v3, 8.507059e+37  ;;  %v5504_v4 = vor.u32 1.1754944e-38, %v2835_v44 }
 0x2d5   : > { %3154 = vmatpush.msra.mxu0 %v3129_v34  ;;  %3611 = vmatpush.msra.mxu1 %v3129_v34  ;;  %v5495_v23 = vpop.eup %3830  ;;  %3840 = vrcp.f32 %v5476_v63  ;;  %v3000_v57 = vand.u32 2147483648, %v5476_v63  ;;  %v5508_v17 = vadd.f32 1.0, %v3827_v12  ;;  %vm5510_vm1 = vcmp.eq.f32.partialorder %v2983_v31, 8.507059e+37 }
 0x2d6   : > { %3615 = vmatpush.msra.mxu2 %v3128_v26  ;;  %3616 = vmatpush.msra.mxu3 %v3128_v26  ;;  %v2986_v11 = vor.u32 1.1754944e-38, %v2985_v15  ;;  %vm2844_vm2 = vweird.f32 %v5474_v58  ;;  %v2848_v5 = vand.u32 2147483647, %v5474_v58  ;;  %3842 = vrcp.f32 %v5481_v2 }
 0x2d7   : > { %3155 = vmatpush.msra.mxu0 %v3128_v26  ;;  %3614 = vmatpush.msra.mxu1 %v3128_v26  ;;  %v3833_v27 = vpop.eup %3832  ;;  %v5518_v32 = vor.u32 1.1754944e-38, %v2850_v62  ;;  %vm2994_vm3 = vweird.f32 %v5476_v63  ;;  %v2998_v19 = vand.u32 2147483647, %v5476_v63  ;;  %vm2559_vm4 = vweird.f32 %v5481_v2 }
 0x2d8   : > { %3618 = vmatpush.msra.mxu2 %v3127_v61  ;;  %3619 = vmatpush.msra.mxu3 %v3127_v61  ;;  %v3835_v16 = vpop.eup %3834  ;;  %v2825_v10 = vmul.f32 %v3833_v27, %v5451_v0  ;;  %v2563_v33 = vand.u32 2147483647, %v5481_v2  ;;  %v2565_v20 = vand.u32 2147483648, %v5481_v2  ;;  %vm2830_vm5 = vweird.f32 %v3833_v27 }
 0x2d9   : > { %3156 = vmatpush.msra.mxu0 %v3127_v61  ;;  %3617 = vmatpush.msra.mxu1 %v3127_v61  ;;  %v2975_v59 = vmul.f32 %v3835_v16, %v5456_v51  ;;  %v3837_v35 = vpop.eup %3836  ;;  %v5526_v29 = vor.u32 1.1754944e-38, %v3000_v57  ;;  %3844 = vrcp.f32 %v5508_v17  ;;  %vm2980_vm10 = vweird.f32 %v3835_v16  ;;  %vm5546_vm9 = vmor %vm2829_vm0, %vm2830_vm5 }
 0x2da   : > { %3621 = vmatpush.msra.mxu2 %v3126_v55  ;;  %3622 = vmatpush.msra.mxu3 %v3126_v55  ;;  %v2826_v25 = vsub.f32 1.0, %v2825_v10  ;;  %v5529_v30 = vpop.eup %3838  ;;  %vm2694_vm6 = vweird.f32 %v5508_v17  ;;  %v2698_v41 = vand.u32 2147483647, %v5508_v17  ;;  %vm5535_vm7 = vcmp.eq.f32.partialorder %v2848_v5, 8.507059e+37  ;;  %vm5556_vm12 = vmor %vm2979_vm14, %vm2980_vm10 }
 0x2db   : > { %3157 = vmatpush.msra.mxu0 %v3126_v55  ;;  %3620 = vmatpush.msra.mxu1 %v3126_v55  ;;  %v2976_v14 = vsub.f32 1.0, %v2975_v59  ;;  %v3841_v38 = vpop.eup %3840  ;;  %v2840_v43 = vmul.f32 %v5529_v30, %v5474_v58  ;;  %vm5539_vm8 = vcmp.eq.f32.partialorder %v2563_v33, 8.507059e+37  ;;  %v2566_v22 = vor.u32 1.1754944e-38, %v2565_v20 }
 0x2dc   : > { %3624 = vmatpush.msra.mxu2 %v3125_v8  ;;  %3625 = vmatpush.msra.mxu3 %v3125_v8  ;;  %v2827_v45 = vmul.f32 %v3833_v27, %v2826_v25  ;;  %v3843_v46 = vpop.eup %3842  ;;  %vm2845_vm11 = vweird.f32 %v5529_v30  ;;  %v2990_v40 = vmul.f32 %v3841_v38, %v5476_v63  ;;  %v2700_v26 = vand.u32 2147483648, %v5508_v17 }
 0x2dd   : > { %3158 = vmatpush.msra.mxu0 %v3125_v8  ;;  %3623 = vmatpush.msra.mxu1 %v3125_v8  ;;  %v2977_v47 = vmul.f32 %v3835_v16, %v2976_v14  ;;  %v2841_v0 = vsub.f32 1.0, %v2840_v43  ;;  %vm2995_vm13 = vweird.f32 %v3841_v38  ;;  %v2555_v42 = vmul.f32 %v3843_v46, %v5481_v2  ;;  %vm5579_vm14 = vmor %vm2844_vm2, %vm2845_vm11 }
 0x2de   : > { %3627 = vmatpush.msra.mxu2 %v3124_v6  ;;  %3628 = vmatpush.msra.mxu3 %v3124_v6  ;;  %v2828_v7 = vadd.f32 %v3833_v27, %v2827_v45  ;;  %v2991_v24 = vsub.f32 1.0, %v2990_v40  ;;  %vm2560_vm0 = vweird.f32 %v3843_v46  ;;  %v5562_v21 = vadd.f32 1.0, %v5489_v36  ;;  %v2302_v45 = vld [vmem:[#allocation2 + $0xe0] sm:$0xff] }
 0x2df   : > { %3159 = vmatpush.msra.mxu0 %v3124_v6  ;;  %3626 = vmatpush.msra.mxu1 %v3124_v6  ;;  %v2978_v61 = vadd.f32 %v3835_v16, %v2977_v47  ;;  %v3845_v49 = vpop.eup %3844  ;;  %v2842_v51 = vmul.f32 %v5529_v30, %v2841_v0  ;;  %v2556_v18 = vsub.f32 1.0, %v2555_v42  ;;  %v5568_v55 = vadd.f32 1.0, %v5495_v23  ;;  %vm5599_vm2 = vmor %vm2559_vm4, %vm2560_vm0  ;;  %v2283_v0 = vld [vmem:[#allocation2 + $0x48] sm:$0xff] }
 0x2e0   : > { %v2832_v60 = vsel %vm5546_vm9, %v3833_v27, %v2828_v7  ;;  %v2992_v31 = vmul.f32 %v3841_v38, %v2991_v24  ;;  %v2690_v15 = vmul.f32 %v3845_v49, %v5508_v17  ;;  %v5594_v23 = vadd.f32 1.0, %v3837_v35 }
 0x2e1   : > { %v2837_v3 = vsel %vm5500_vm15, %v5504_v4, %v2832_v60  ;;  %v2982_v44 = vsel %vm5556_vm12, %v3835_v16, %v2978_v61  ;;  %v2843_v36 = vadd.f32 %v5529_v30, %v2842_v51  ;;  %vm5590_vm15 = vmor %vm2994_vm3, %vm2995_vm13  ;;  %v2557_v58 = vmul.f32 %v3843_v46, %v2556_v18  ;;  %v2292_v51 = vld [vmem:[#allocation2 + $0x40] sm:$0xff] }
 0x2e2   : > { %3214 = vmatmul.f32.vlgmr.msra.gmra.mxu2 %v2837_v3  ;;  %v2987_v8 = vsel %vm5510_vm1, %v2986_v11, %v2982_v44  ;;  %v2993_v6 = vadd.f32 %v3841_v38, %v2992_v31  ;;  %v2691_v4 = vsub.f32 1.0, %v2690_v15  ;;  %vm2695_vm1 = vweird.f32 %v3845_v49 }
 0x2e3   : > { %3244 = vmatmul.f32.vlgmr.msra.gmra.mxu3 %v2987_v8  ;;  %3846 = vrcp.f32 %v5562_v21  ;;  %v2847_v57 = vsel %vm5579_vm14, %v5529_v30, %v2843_v36  ;;  %v2558_v27 = vadd.f32 %v3843_v46, %v2557_v58  ;;  %v2863_v52 = vand.u32 2147483647, %v5562_v21  ;;  %vm5618_vm4 = vmor %vm2694_vm6, %vm2695_vm1 }
 0x2e4   : > { %v2865_v11 = vand.u32 2147483648, %v5562_v21  ;;  %v2997_v2 = vsel %vm5590_vm15, %v3841_v38, %v2993_v6  ;;  %vm2999_vm3 = vcmp.eq.f32.partialorder %v2998_v19, 8.507059e+37  ;;  %v2692_v5 = vmul.f32 %v3845_v49, %v2691_v4 }
 0x2e5   : > { %3848 = vrcp.f32 %v5568_v55  ;;  %v2562_v16 = vsel %vm5599_vm2, %v3843_v46, %v2558_v27  ;;  %vm5622_vm5 = vcmp.eq.f32.partialorder %v2698_v41, 8.507059e+37  ;;  %v2701_v33 = vor.u32 1.1754944e-38, %v2700_v26 }
 0x2e6   : > { %v2375_v63 = vadd.f32 %v5404_v9, %v5487_v1  ;;  %v2852_v19 = vsel %vm5535_vm7, %v5518_v32, %v2847_v57  ;;  %v2567_v20 = vsel %vm5539_vm8, %v2566_v22, %v2562_v16  ;;  %v2693_v17 = vadd.f32 %v3845_v49, %v2692_v5 }
 0x2e7   : > { %vm2859_vm10 = vweird.f32 %v5562_v21  ;;  %v3002_v35 = vsel %vm2999_vm3, %v5526_v29, %v2997_v2  ;;  %3160 = vmatmul.f32.vlgmr.msra.gmra.mxu0 %v2567_v20  ;;  %vm5635_vm6 = vcmp.eq.f32.partialorder %v2863_v52, 8.507059e+37  ;;  %v2866_v30 = vor.u32 1.1754944e-38, %v2865_v11  ;;  %v2303_v11 = vld [vmem:[#allocation2 + $0xf8] sm:$0xff] }
 0x2e8   : > { %3850 = vrcp.f32 %v5594_v23  ;;  %v2697_v32 = vsel %vm5618_vm4, %v3845_v49, %v2693_v17  ;;  %vm3009_vm7 = vweird.f32 %v5568_v55  ;;  %v3013_v14 = vand.u32 2147483647, %v5568_v55 }
 0x2e9   : > { %v3847_v1 = vpop.eup %3846  ;;  %3852 = vpow2.f32 %v5460_v53  ;;  %v2702_v29 = vsel %vm5622_vm5, %v2701_v33, %v2697_v32  ;;  %v3015_v38 = vand.u32 2147483648, %v5568_v55  ;;  %vm2574_vm8 = vweird.f32 %v5594_v23 }
 0x2ea   : > { %3217 = vmatmul.f32.gmra.mxu2 %v2852_v19  ;;  %v2855_v41 = vmul.f32 %v3847_v1, %v5562_v21  ;;  %3187 = vmatmul.f32.vlgmr.msra.gmra.mxu1 %v2702_v29  ;;  %v2578_v34 = vand.u32 2147483647, %v5594_v23  ;;  %v2580_v37 = vand.u32 2147483648, %v5594_v23  ;;  %3854 = vpow2.f32 %v5462_v54 }
 0x2eb   : > { %v3849_v43 = vpop.eup %3848  ;;  %3247 = vmatmul.f32.gmra.mxu3 %v3002_v35  ;;  %v3479_v53 = vmul.f32 -1.442695, %v5484_v50  ;;  %vm2860_vm9 = vweird.f32 %v3847_v1  ;;  %3856 = vpow2.f32 %v5470_v56  ;;  %vm5656_vm11 = vcmp.eq.f32.partialorder %v3013_v14, 8.507059e+37 }
 0x2ec   : > { %v2856_v22 = vsub.f32 1.0, %v2855_v41  ;;  %v3005_v46 = vmul.f32 %v3849_v43, %v5568_v55  ;;  %v3488_v40 = vmul.f32 -1.442695, %v2375_v63  ;;  %v2344_v26 = vmul.f32 %v5402_v13, %v2302_v45  ;;  %vm5664_vm13 = vmor %vm2859_vm10, %vm2860_vm9 }
 0x2ed   : > { %3858 = vpow2.f32 %v3479_v53  ;;  %vm3010_vm12 = vweird.f32 %v3849_v43  ;;  %v3016_v50 = vor.u32 1.1754944e-38, %v3015_v38  ;;  %vm5669_vm0 = vcmp.eq.f32.partialorder %v2578_v34, 8.507059e+37 }
 0x2ee   : > { %v3851_v7 = vpop.eup %3850  ;;  %v2857_v48 = vmul.f32 %v3847_v1, %v2856_v22  ;;  %v3006_v54 = vsub.f32 1.0, %v3005_v46  ;;  %v2386_v49 = vadd.f32 %v5404_v9, %v2344_v26  ;;  %v2354_v60 = vmul.f32 %v5402_v13, %v2312_v28  ;;  %vm5680_vm14 = vmor %vm3009_vm7, %vm3010_vm12 }
 0x2ef   : > { %v3853_v42 = vpop.eup %3852  ;;  %v2570_v61 = vmul.f32 %v3851_v7, %v5594_v23  ;;  %v2581_v44 = vor.u32 1.1754944e-38, %v2580_v37  ;;  %vm2575_vm15 = vweird.f32 %v3851_v7  ;;  %3860 = vpow2.f32 %v3488_v40 }
 0x2f0   : > { %v2858_v18 = vadd.f32 %v3847_v1, %v2857_v48  ;;  %v3007_v3 = vmul.f32 %v3849_v43, %v3006_v54  ;;  %v5675_v12 = vadd.f32 1.0, %v3853_v42  ;;  %v3855_v21 = vpop.eup %3854  ;;  %v2325_v8 = vmul.f32 %v5402_v13, %v2283_v0  ;;  %vm5697_vm2 = vmor %vm2574_vm8, %vm2575_vm15 }
 0x2f1   : > { %v2571_v15 = vsub.f32 1.0, %v2570_v61  ;;  %v3857_v36 = vpop.eup %3856  ;;  %v2334_v6 = vmul.f32 %v5402_v13, %v2292_v51  ;;  %v3499_v57 = vmul.f32 -1.442695, %v2386_v49  ;;  %v2396_v27 = vadd.f32 %v5404_v9, %v2354_v60 }
 0x2f2   : > { %v2862_v62 = vsel %vm5664_vm13, %v3847_v1, %v2858_v18  ;;  %v3008_v58 = vadd.f32 %v3849_v43, %v3007_v3  ;;  %3862 = vrcp.f32 %v5675_v12  ;;  %v2713_v2 = vand.u32 2147483647, %v5675_v12 }
 0x2f3   : > { %v3859_v39 = vpop.eup %3858  ;;  %v2867_v55 = vsel %vm5635_vm6, %v2866_v30, %v2862_v62  ;;  %v2572_v4 = vmul.f32 %v3851_v7, %v2571_v15  ;;  %v5702_v5 = vadd.f32 1.0, %v3855_v21  ;;  %v5704_v16 = vadd.f32 1.0, %v3857_v36 }
 0x2f4   : > { %3220 = vmatmul.f32.gmra.mxu2 %v2867_v55  ;;  %v3012_v52 = vsel %vm5680_vm14, %v3849_v43, %v3008_v58  ;;  %v2715_v33 = vand.u32 2147483648, %v5675_v12  ;;  %v5709_v63 = vadd.f32 1.0, %v3859_v39  ;;  %v2367_v19 = vadd.f32 %v5404_v9, %v2325_v8 }
 0x2f5   : > { %v3017_v10 = vsel %vm5656_vm11, %v3016_v50, %v3012_v52  ;;  %v2573_v59 = vadd.f32 %v3851_v7, %v2572_v4  ;;  %3864 = vrcp.f32 %v5702_v5  ;;  %v2880_v23 = vand.u32 2147483648, %v5702_v5  ;;  %v3861_v17 = vpop.eup %3860  ;;  %v2284_v50 = vld [vmem:[#allocation2 + $0x120] sm:$0xff] }
 0x2f6   : > { %3250 = vmatmul.f32.gmra.mxu3 %v3017_v10  ;;  %v2376_v20 = vadd.f32 %v5404_v9, %v2334_v6  ;;  %vm2709_vm1 = vweird.f32 %v5675_v12  ;;  %v2878_v25 = vand.u32 2147483647, %v5702_v5  ;;  %3866 = vrcp.f32 %v5704_v16 }
 0x2f7   : > { %v2577_v35 = vsel %vm5697_vm2, %v3851_v7, %v2573_v59  ;;  %vm5722_vm3 = vcmp.eq.f32.partialorder %v2713_v2, 8.507059e+37  ;;  %v3028_v14 = vand.u32 2147483647, %v5704_v16  ;;  %v3030_v29 = vand.u32 2147483648, %v5704_v16 }
 0x2f8   : > { %v3863_v30 = vpop.eup %3862  ;;  %v2582_v1 = vsel %vm5669_vm0, %v2581_v44, %v2577_v35  ;;  %v2716_v38 = vor.u32 1.1754944e-38, %v2715_v33  ;;  %vm2874_vm4 = vweird.f32 %v5702_v5  ;;  %3868 = vrcp.f32 %v5709_v63 }
 0x2f9   : > { %3163 = vmatmul.f32.gmra.mxu0 %v2582_v1  ;;  %v2705_v41 = vmul.f32 %v3863_v30, %v5675_v12  ;;  %vm2710_vm5 = vweird.f32 %v3863_v30  ;;  %v2881_v45 = vor.u32 1.1754944e-38, %v2880_v23  ;;  %vm3024_vm10 = vweird.f32 %v5704_v16 }
 0x2fa   : > { %v2593_v43 = vand.u32 2147483647, %v5709_v63  ;;  %vm5733_vm6 = vcmp.eq.f32.partialorder %v2878_v25, 8.507059e+37  ;;  %v5737_v53 = vadd.f32 1.0, %v3861_v17  ;;  %3870 = vpow2.f32 %v3499_v57  ;;  %vm5750_vm9 = vmor %vm2709_vm1, %vm2710_vm5 }
 0x2fb   : > { %v2706_v34 = vsub.f32 1.0, %v2705_v41  ;;  %v3509_v22 = vmul.f32 -1.442695, %v2396_v27  ;;  %v3865_v46 = vpop.eup %3864  ;;  %vm5739_vm7 = vcmp.eq.f32.partialorder %v3028_v14, 8.507059e+37  ;;  %v3031_v47 = vor.u32 1.1754944e-38, %v3030_v29 }
 0x2fc   : > { %vm2589_vm8 = vweird.f32 %v5709_v63  ;;  %v2595_v40 = vand.u32 2147483648, %v5709_v63  ;;  %v3867_v26 = vpop.eup %3866  ;;  %v2870_v48 = vmul.f32 %v3865_v46, %v5702_v5  ;;  %3872 = vrcp.f32 %v5737_v53 }
 0x2fd   : > { %v2707_v7 = vmul.f32 %v3863_v30, %v2706_v34  ;;  %v3480_v54 = vmul.f32 -1.442695, %v2367_v19  ;;  %vm2875_vm11 = vweird.f32 %v3865_v46  ;;  %v3020_v0 = vmul.f32 %v3867_v26, %v5704_v16 }
 0x2fe   : > { %vm5755_vm12 = vcmp.eq.f32.partialorder %v2593_v43, 8.507059e+37  ;;  %v3489_v56 = vmul.f32 -1.442695, %v2376_v20  ;;  %v3869_v61 = vpop.eup %3868  ;;  %v2871_v49 = vsub.f32 1.0, %v2870_v48  ;;  %vm3025_vm13 = vweird.f32 %v3867_v26  ;;  %vm5769_vm14 = vmor %vm2874_vm4, %vm2875_vm11  ;;  %v2313_v20 = vld [vmem:[#allocation2 + $0x68] sm:$0xff] }
 0x2ff   : > { %v2708_v24 = vadd.f32 %v3863_v30, %v2707_v7  ;;  %3874 = vpow2.f32 %v3509_v22  ;;  %v3021_v60 = vsub.f32 1.0, %v3020_v0  ;;  %v2585_v51 = vmul.f32 %v3869_v61, %v5709_v63  ;;  %vm5778_vm15 = vmor %vm3024_vm10, %vm3025_vm13 }
 0x300   : > { %v2728_v18 = vand.u32 2147483647, %v5737_v53  ;;  %v2730_v3 = vand.u32 2147483648, %v5737_v53  ;;  %v3871_v44 = vpop.eup %3870  ;;  %v2872_v21 = vmul.f32 %v3865_v46, %v2871_v49  ;;  %vm2590_vm0 = vweird.f32 %v3869_v61 }
 0x301   : > { %v2712_v12 = vsel %vm5750_vm9, %v3863_v30, %v2708_v24  ;;  %3876 = vpow2.f32 %v3480_v54  ;;  %v3022_v8 = vmul.f32 %v3867_v26, %v3021_v60  ;;  %v2586_v36 = vsub.f32 1.0, %v2585_v51 }
 0x302   : > { %v2717_v31 = vsel %vm5722_vm3, %v2716_v38, %v2712_v12  ;;  %v5773_v62 = vadd.f32 1.0, %v3871_v44  ;;  %v3873_v58 = vpop.eup %3872  ;;  %v2873_v6 = vadd.f32 %v3865_v46, %v2872_v21  ;;  %v2596_v55 = vor.u32 1.1754944e-38, %v2595_v40  ;;  %vm5793_vm3 = vmor %vm2589_vm8, %vm2590_vm0 }
 0x303   : > { %3190 = vmatmul.f32.gmra.mxu1 %v2717_v31  ;;  %vm2724_vm2 = vweird.f32 %v5737_v53  ;;  %3878 = vpow2.f32 %v3489_v56  ;;  %v3023_v4 = vadd.f32 %v3867_v26, %v3022_v8  ;;  %v2587_v57 = vmul.f32 %v3869_v61, %v2586_v36  ;;  %v2293_v8 = vld [vmem:[#allocation2 + $0xc8] sm:$0xff]  ;;  %v2304_v36 = vld [vmem:[#allocation2 + $0xa0] sm:$0xff] }
 0x304   : > { %v2720_v27 = vmul.f32 %v3873_v58, %v5737_v53  ;;  %vm5784_vm1 = vcmp.eq.f32.partialorder %v2728_v18, 8.507059e+37  ;;  %v2877_v5 = vsel %vm5769_vm14, %v3865_v46, %v2873_v6  ;;  %vm2725_vm4 = vweird.f32 %v3873_v58 }
 0x305   : > { %v3875_v2 = vpop.eup %3874  ;;  %v2731_v10 = vor.u32 1.1754944e-38, %v2730_v3  ;;  %3880 = vrcp.f32 %v5773_v62  ;;  %v2882_v59 = vsel %vm5733_vm6, %v2881_v45, %v2877_v5  ;;  %v3027_v33 = vsel %vm5778_vm15, %v3867_v26, %v3023_v4  ;;  %vm5818_vm5 = vmor %vm2724_vm2, %vm2725_vm4 }
 0x306   : > { %v2588_v23 = vadd.f32 %v3869_v61, %v2587_v57  ;;  %v2721_v19 = vsub.f32 1.0, %v2720_v27  ;;  %3223 = vmatmul.f32.gmra.mxu2 %v2882_v59  ;;  %v3032_v63 = vsel %vm5739_vm7, %v3031_v47, %v3027_v33  ;;  %v2893_v35 = vand.u32 2147483647, %v5773_v62  ;;  %v2285_v33 = vld [vmem:[#allocation2 + $0x38] sm:$0xff] }
 0x307   : > { %v3877_v17 = vpop.eup %3876  ;;  %v5805_v25 = vadd.f32 1.0, %v3875_v2  ;;  %v2345_v30 = vmul.f32 %v5402_v13, %v2303_v11  ;;  %3253 = vmatmul.f32.gmra.mxu3 %v3032_v63  ;;  %v2895_v14 = vand.u32 2147483648, %v5773_v62  ;;  %vm2889_vm10 = vweird.f32 %v5773_v62 }
 0x308   : > { %v2592_v1 = vsel %vm5793_vm3, %v3869_v61, %v2588_v23  ;;  %v2722_v32 = vmul.f32 %v3873_v58, %v2721_v19  ;;  %v5811_v29 = vadd.f32 1.0, %v3877_v17  ;;  %v2355_v43 = vmul.f32 %v5402_v13, %v2313_v20 }
 0x309   : > { %v3879_v41 = vpop.eup %3878  ;;  %v2597_v38 = vsel %vm5755_vm12, %v2596_v55, %v2592_v1  ;;  %3882 = vrcp.f32 %v5805_v25  ;;  %v3043_v37 = vand.u32 2147483647, %v5805_v25  ;;  %v3045_v22 = vand.u32 2147483648, %v5805_v25 }
 0x30a   : > { %3166 = vmatmul.f32.gmra.mxu0 %v2597_v38  ;;  %v2723_v34 = vadd.f32 %v3873_v58, %v2722_v32  ;;  %3884 = vrcp.f32 %v5811_v29  ;;  %v2608_v53 = vand.u32 2147483647, %v5811_v29  ;;  %v2610_v28 = vand.u32 2147483648, %v5811_v29 }
 0x30b   : > { %v3881_v46 = vpop.eup %3880  ;;  %v5830_v47 = vadd.f32 1.0, %v3879_v41  ;;  %v2387_v40 = vadd.f32 %v5404_v9, %v2345_v30  ;;  %vm5836_vm6 = vcmp.eq.f32.partialorder %v2893_v35, 8.507059e+37  ;;  %v2896_v54 = vor.u32 1.1754944e-38, %v2895_v14 }
 0x30c   : > { %v2727_v26 = vsel %vm5818_vm5, %v3873_v58, %v2723_v34  ;;  %v2885_v7 = vmul.f32 %v3881_v46, %v5773_v62  ;;  %vm2890_vm7 = vweird.f32 %v3881_v46  ;;  %vm3039_vm8 = vweird.f32 %v5805_v25  ;;  %v2314_v58 = vld [vmem:[#allocation2 + $0x18] sm:$0xff] }
 0x30d   : > { %v2732_v0 = vsel %vm5784_vm1, %v2731_v10, %v2727_v26  ;;  %vm2604_vm9 = vweird.f32 %v5811_v29  ;;  %vm5844_vm11 = vcmp.eq.f32.partialorder %v3043_v37, 8.507059e+37  ;;  %v3046_v61 = vor.u32 1.1754944e-38, %v3045_v22  ;;  %vm5864_vm0 = vmor %vm2889_vm10, %vm2890_vm7 }
 0x30e   : > { %3193 = vmatmul.f32.gmra.mxu1 %v2732_v0  ;;  %v2886_v42 = vsub.f32 1.0, %v2885_v7  ;;  %v5848_v24 = vor.u32 1.1754944e-38, %v2610_v28  ;;  %3886 = vrcp.f32 %v5830_v47  ;;  %vm5851_vm12 = vcmp.eq.f32.partialorder %v2608_v53, 8.507059e+37 }
 0x30f   : > { %v3883_v49 = vpop.eup %3882  ;;  %vm2739_vm13 = vweird.f32 %v5830_v47  ;;  %v3500_v51 = vmul.f32 -1.442695, %v2387_v40  ;;  %v2397_v18 = vadd.f32 %v5404_v9, %v2355_v43  ;;  %v2326_v3 = vmul.f32 %v5402_v13, %v2284_v50 }
 0x310   : > { %v3885_v44 = vpop.eup %3884  ;;  %v2887_v12 = vmul.f32 %v3881_v46, %v2886_v42  ;;  %v3035_v21 = vmul.f32 %v3883_v49, %v5805_v25  ;;  %v2743_v31 = vand.u32 2147483647, %v5830_v47  ;;  %v2745_v15 = vand.u32 2147483648, %v5830_v47 }
 0x311   : > { %vm3040_vm14 = vweird.f32 %v3883_v49  ;;  %v2600_v39 = vmul.f32 %v3885_v44, %v5811_v29  ;;  %vm2605_vm15 = vweird.f32 %v3885_v44  ;;  %3888 = vpow2.f32 %v3500_v51 }
 0x312   : > { %v2888_v55 = vadd.f32 %v3881_v46, %v2887_v12  ;;  %v3036_v4 = vsub.f32 1.0, %v3035_v21  ;;  %v3510_v57 = vmul.f32 -1.442695, %v2397_v18  ;;  %v2368_v27 = vadd.f32 %v5404_v9, %v2326_v3  ;;  %vm5880_vm2 = vmor %vm3039_vm8, %vm3040_vm14  ;;  %v2305_v3 = vld [vmem:[#allocation2 + $0x78] sm:$0xff] }
 0x313   : > { %v2601_v52 = vsub.f32 1.0, %v2600_v39  ;;  %v2335_v11 = vmul.f32 %v5402_v13, %v2293_v8  ;;  %v2346_v2 = vmul.f32 %v5402_v13, %v2304_v36  ;;  %v2356_v62 = vmul.f32 %v5402_v13, %v2314_v58  ;;  %vm5888_vm3 = vmor %vm2604_vm9, %vm2605_vm15 }
 0x314   : > { %v3887_v5 = vpop.eup %3886  ;;  %v2892_v16 = vsel %vm5864_vm0, %v3881_v46, %v2888_v55  ;;  %v3037_v10 = vmul.f32 %v3883_v49, %v3036_v4  ;;  %3890 = vpow2.f32 %v3510_v57  ;;  %v3481_v59 = vmul.f32 -1.442695, %v2368_v27 }
 0x315   : > { %v2897_v23 = vsel %vm5836_vm6, %v2896_v54, %v2892_v16  ;;  %v2602_v20 = vmul.f32 %v3885_v44, %v2601_v52  ;;  %v2735_v17 = vmul.f32 %v3887_v5, %v5830_v47  ;;  %vm2740_vm1 = vweird.f32 %v3887_v5  ;;  %v5923_v47 = vld [vmem:[#allocation6] ss:$0 sm:$0xff] }
 0x316   : > { %3226 = vmatmul.f32.gmra.mxu2 %v2897_v23  ;;  %v3038_v63 = vadd.f32 %v3883_v49, %v3037_v10  ;;  %3892 = vpow2.f32 %v3481_v59  ;;  %v2377_v25 = vadd.f32 %v5404_v9, %v2335_v11  ;;  %v2388_v30 = vadd.f32 %v5404_v9, %v2346_v2  ;;  %vm5914_vm5 = vmor %vm2739_vm13, %vm2740_vm1 }
 0x317   : > { %v3889_v1 = vpop.eup %3888  ;;  %v2603_v32 = vadd.f32 %v3885_v44, %v2602_v20  ;;  %v2736_v14 = vsub.f32 1.0, %v2735_v17  ;;  %v2398_v41 = vadd.f32 %v5404_v9, %v2356_v62  ;;  %v2327_v38 = vmul.f32 %v5402_v13, %v2285_v33  ;;  %v2294_v9 = vld [vmem:[#allocation2 + $0x30] sm:$0xff]  ;;  %v2295_v33 = vld [vmem:[#allocation2 + $0x20] sm:$0xff] }
 0x318   : > { %v3042_v45 = vsel %vm5880_vm2, %v3883_v49, %v3038_v63  ;;  %v5898_v29 = vadd.f32 1.0, %v3889_v1  ;;  %v3490_v43 = vmul.f32 -1.442695, %v2377_v25  ;;  %v3501_v34 = vmul.f32 -1.442695, %v2388_v30 }
 0x319   : > { %v3047_v37 = vsel %vm5844_vm11, %v3046_v61, %v3042_v45  ;;  %v2607_v22 = vsel %vm5888_vm3, %v3885_v44, %v2603_v32  ;;  %v2737_v46 = vmul.f32 %v3887_v5, %v2736_v14  ;;  %vm5904_vm4 = vcmp.eq.f32.partialorder %v2743_v31, 8.507059e+37  ;;  %v5926_v61 = vld [vmem:[#allocation5] ss:$0 sm:$0xff] }
 0x31a   : > { %v3891_v13 = vpop.eup %3890  ;;  %3256 = vmatmul.f32.gmra.mxu3 %v3047_v37  ;;  %v2612_v28 = vsel %vm5851_vm12, %v5848_v24, %v2607_v22  ;;  %v2746_v26 = vor.u32 1.1754944e-38, %v2745_v15  ;;  %3894 = vrcp.f32 %v5898_v29  ;;  %v3511_v7 = vmul.f32 -1.442695, %v2398_v41 }
 0x31b   : > { %3169 = vmatmul.f32.gmra.mxu0 %v2612_v28  ;;  %v2738_v48 = vadd.f32 %v3887_v5, %v2737_v46  ;;  %v2908_v54 = vand.u32 2147483647, %v5898_v29  ;;  %v5920_v50 = vadd.f32 1.0, %v3891_v13  ;;  %3896 = vpow2.f32 %v3490_v43 }
 0x31c   : > { %v3893_v0 = vpop.eup %3892  ;;  %v2910_v42 = vand.u32 2147483648, %v5898_v29  ;;  %3898 = vpow2.f32 %v3501_v34  ;;  %v2369_v56 = vadd.f32 %v5923_v47, %v2327_v38  ;;  %v2336_v24 = vmul.f32 %v5926_v61, %v2294_v9 }
 0x31d   : > { %v2742_v49 = vsel %vm5914_vm5, %v3887_v5, %v2738_v48  ;;  %3900 = vrcp.f32 %v5920_v50  ;;  %v3058_v51 = vand.u32 2147483647, %v5920_v50  ;;  %v5935_v18 = vadd.f32 1.0, %v3893_v0 }
 0x31e   : > { %v2747_v60 = vsel %vm5904_vm4, %v2746_v26, %v2742_v49  ;;  %vm2904_vm10 = vweird.f32 %v5898_v29  ;;  %v3060_v44 = vand.u32 2147483648, %v5920_v50  ;;  %3902 = vpow2.f32 %v3511_v7 }
 0x31f   : > { %3196 = vmatmul.f32.gmra.mxu1 %v2747_v60  ;;  %v3482_v12 = vmul.f32 -1.442695, %v2369_v56  ;;  %vm5939_vm6 = vcmp.eq.f32.partialorder %v2908_v54, 8.507059e+37  ;;  %v2911_v15 = vor.u32 1.1754944e-38, %v2910_v42  ;;  %3904 = vrcp.f32 %v5935_v18 }
 0x320   : > { %v3895_v21 = vpop.eup %3894  ;;  %v2378_v8 = vadd.f32 %v5923_v47, %v2336_v24  ;;  %vm3054_vm7 = vweird.f32 %v5920_v50  ;;  %v2623_v6 = vand.u32 2147483647, %v5935_v18  ;;  %v2347_v39 = vmul.f32 %v5926_v61, %v2305_v3 }
 0x321   : > { %v3897_v36 = vpop.eup %3896  ;;  %v2900_v58 = vmul.f32 %v3895_v21, %v5898_v29  ;;  %vm5949_vm8 = vcmp.eq.f32.partialorder %v3058_v51, 8.507059e+37  ;;  %v2625_v57 = vand.u32 2147483648, %v5935_v18  ;;  %3906 = vpow2.f32 %v3482_v12 }
 0x322   : > { %v3899_v55 = vpop.eup %3898  ;;  %v5954_v27 = vadd.f32 1.0, %v3897_v36  ;;  %vm2905_vm9 = vweird.f32 %v3895_v21  ;;  %v3061_v2 = vor.u32 1.1754944e-38, %v3060_v44  ;;  %vm2619_vm11 = vweird.f32 %v5935_v18 }
 0x323   : > { %v3901_v52 = vpop.eup %3900  ;;  %v2901_v11 = vsub.f32 1.0, %v2900_v58  ;;  %v5956_v62 = vadd.f32 1.0, %v3899_v55  ;;  %v3491_v16 = vmul.f32 -1.442695, %v2378_v8  ;;  %vm5961_vm12 = vcmp.eq.f32.partialorder %v2623_v6, 8.507059e+37  ;;  %vm5969_vm13 = vmor %vm2904_vm10, %vm2905_vm9 }
 0x324   : > { %v3050_v5 = vmul.f32 %v3901_v52, %v5920_v50  ;;  %3908 = vrcp.f32 %v5954_v27  ;;  %v3903_v10 = vpop.eup %3902  ;;  %v2389_v23 = vadd.f32 %v5923_v47, %v2347_v39  ;;  %vm3055_vm0 = vweird.f32 %v3901_v52 }
 0x325   : > { %v2902_v59 = vmul.f32 %v3895_v21, %v2901_v11  ;;  %3910 = vrcp.f32 %v5956_v62  ;;  %v3905_v19 = vpop.eup %3904  ;;  %v2626_v63 = vor.u32 1.1754944e-38, %v2625_v57  ;;  %vm2754_vm14 = vweird.f32 %v5954_v27  ;;  %vm5984_vm2 = vmor %vm3054_vm7, %vm3055_vm0 }
 0x326   : > { %v3051_v17 = vsub.f32 1.0, %v3050_v5  ;;  %v2615_v25 = vmul.f32 %v3905_v19, %v5935_v18  ;;  %v2758_v30 = vand.u32 2147483647, %v5954_v27  ;;  %v2760_v1 = vand.u32 2147483648, %v5954_v27 }
 0x327   : > { %v2903_v35 = vadd.f32 %v3895_v21, %v2902_v59  ;;  %v3907_v32 = vpop.eup %3906  ;;  %vm2919_vm15 = vweird.f32 %v5956_v62  ;;  %v2923_v41 = vand.u32 2147483647, %v5956_v62  ;;  %v2925_v38 = vand.u32 2147483648, %v5956_v62 }
 0x328   : > { %v3052_v14 = vmul.f32 %v3901_v52, %v3051_v17  ;;  %v2616_v43 = vsub.f32 1.0, %v2615_v25  ;;  %vm2620_vm1 = vweird.f32 %v3905_v19  ;;  %v5988_v34 = vadd.f32 1.0, %v3903_v10 }
 0x329   : > { %v2907_v45 = vsel %vm5969_vm13, %v3895_v21, %v2903_v35  ;;  %v5992_v53 = vadd.f32 1.0, %v3907_v32  ;;  %3912 = vpow2.f32 %v3491_v16  ;;  %vm5995_vm3 = vcmp.eq.f32.partialorder %v2758_v30, 8.507059e+37  ;;  %vm6004_vm4 = vmor %vm2619_vm11, %vm2620_vm1  ;;  %v2317_v21 = vld [vmem:[#allocation2 + $0xb8] sm:$0xff] }
 0x32a   : > { %v3909_v37 = vpop.eup %3908  ;;  %v2912_v22 = vsel %vm5939_vm6, %v2911_v15, %v2907_v45  ;;  %v3053_v46 = vadd.f32 %v3901_v52, %v3052_v14  ;;  %v2617_v13 = vmul.f32 %v3905_v19, %v2616_v43  ;;  %3914 = vrcp.f32 %v5988_v34 }
 0x32b   : > { %v3911_v9 = vpop.eup %3910  ;;  %3229 = vmatmul.f32.gmra.mxu2 %v2912_v22  ;;  %v2750_v28 = vmul.f32 %v3909_v37, %v5954_v27  ;;  %v2761_v48 = vor.u32 1.1754944e-38, %v2760_v1  ;;  %v3502_v50 = vmul.f32 -1.442695, %v2389_v23  ;;  %vm2755_vm5 = vweird.f32 %v3909_v37  ;;  %v2306_v23 = vld [vmem:[#allocation2 + $0xc0] sm:$0xff] }
 0x32c   : > { %v3057_v26 = vsel %vm5984_vm2, %v3901_v52, %v3053_v46  ;;  %v2915_v54 = vmul.f32 %v3911_v9, %v5956_v62  ;;  %v2618_v42 = vadd.f32 %v3905_v19, %v2617_v13  ;;  %vm2920_vm10 = vweird.f32 %v3911_v9  ;;  %vm6024_vm7 = vmor %vm2754_vm14, %vm2755_vm5  ;;  %v2286_v62 = vld [vmem:[#allocation2 + $0x70] sm:$0xff] }
 0x32d   : > { %v3062_v0 = vsel %vm5949_vm8, %v3061_v2, %v3057_v26  ;;  %v2751_v56 = vsub.f32 1.0, %v2750_v28  ;;  %vm6011_vm6 = vcmp.eq.f32.partialorder %v2923_v41, 8.507059e+37  ;;  %3916 = vrcp.f32 %v5992_v53  ;;  %vm6032_vm8 = vmor %vm2919_vm15, %vm2920_vm10  ;;  %v2315_v2 = vld [vmem:[#allocation2 + $0x58] sm:$0xff] }
 0x32e   : > { %3259 = vmatmul.f32.gmra.mxu3 %v3062_v0  ;;  %v2916_v24 = vsub.f32 1.0, %v2915_v54  ;;  %v2622_v60 = vsel %vm6004_vm4, %v3905_v19, %v2618_v42  ;;  %v3073_v18 = vand.u32 2147483647, %v5988_v34  ;;  %v3075_v3 = vand.u32 2147483648, %v5988_v34  ;;  %v2316_v19 = vld [vmem:[#allocation2 + $0x118] sm:$0xff] }
 0x32f   : > { %v2752_v51 = vmul.f32 %v3909_v37, %v2751_v56  ;;  %v3913_v44 = vpop.eup %3912  ;;  %v2627_v12 = vsel %vm5961_vm12, %v2626_v63, %v2622_v60  ;;  %v2926_v15 = vor.u32 1.1754944e-38, %v2925_v38  ;;  %v2638_v8 = vand.u32 2147483647, %v5992_v53  ;;  %v2287_v56 = vld [vmem:[#allocation2 + $0x100] sm:$0xff] }
 0x330   : > { %v2917_v31 = vmul.f32 %v3911_v9, %v2916_v24  ;;  %v3915_v36 = vpop.eup %3914  ;;  %3172 = vmatmul.f32.gmra.mxu0 %v2627_v12  ;;  %v2640_v39 = vand.u32 2147483648, %v5992_v53  ;;  %v6037_v55 = vadd.f32 1.0, %v3913_v44  ;;  %3918 = vpow2.f32 %v3502_v50 }
 0x331   : > { %v2753_v58 = vadd.f32 %v3909_v37, %v2752_v51  ;;  %v3065_v57 = vmul.f32 %v3915_v36, %v5988_v34  ;;  %vm3069_vm9 = vweird.f32 %v5988_v34  ;;  %vm2634_vm11 = vweird.f32 %v5992_v53  ;;  %v2307_v51 = vld [vmem:[#allocation2 + $0x80] sm:$0xff] }
 0x332   : > { %v2918_v4 = vadd.f32 %v3911_v9, %v2917_v31  ;;  %vm6044_vm12 = vcmp.eq.f32.partialorder %v3073_v18, 8.507059e+37  ;;  %v3076_v11 = vor.u32 1.1754944e-38, %v3075_v3  ;;  %3920 = vrcp.f32 %v6037_v55 }
 0x333   : > { %v2757_v27 = vsel %vm6024_vm7, %v3909_v37, %v2753_v58  ;;  %v3917_v5 = vpop.eup %3916  ;;  %v3066_v59 = vsub.f32 1.0, %v3065_v57  ;;  %vm3070_vm13 = vweird.f32 %v3915_v36  ;;  %vm6056_vm0 = vcmp.eq.f32.partialorder %v2638_v8, 8.507059e+37 }
 0x334   : > { %v2762_v16 = vsel %vm5995_vm3, %v2761_v48, %v2757_v27  ;;  %v2922_v10 = vsel %vm6032_vm8, %v3911_v9, %v2918_v4  ;;  %v2630_v17 = vmul.f32 %v3917_v5, %v5992_v53  ;;  %v2641_v35 = vor.u32 1.1754944e-38, %v2640_v39  ;;  %vm6065_vm15 = vmor %vm3069_vm9, %vm3070_vm13  ;;  %v2296_v53 = vld [vmem:[#allocation2 + $0x128] sm:$0xff] }
 0x335   : > { %3199 = vmatmul.f32.gmra.mxu1 %v2762_v16  ;;  %v2927_v20 = vsel %vm6011_vm6, %v2926_v15, %v2922_v10  ;;  %v3067_v25 = vmul.f32 %v3915_v36, %v3066_v59  ;;  %vm2635_vm14 = vweird.f32 %v3917_v5  ;;  %v2357_v30 = vmul.f32 %v5926_v61, %v2315_v2  ;;  %v2288_v10 = vld [vmem:[#allocation2 + $0x108] sm:$0xff] }
 0x336   : > { %3232 = vmatmul.f32.gmra.mxu2 %v2927_v20  ;;  %v2328_v1 = vmul.f32 %v5926_v61, %v2286_v62  ;;  %v3919_v32 = vpop.eup %3918  ;;  %v2631_v41 = vsub.f32 1.0, %v2630_v17  ;;  %v2337_v38 = vmul.f32 %v5926_v61, %v2295_v33  ;;  %v2348_v45 = vmul.f32 %v5926_v61, %v2306_v23  ;;  %vm6084_vm2 = vmor %vm2634_vm11, %vm2635_vm14 }
 0x337   : > { %v2358_v29 = vmul.f32 %v5926_v61, %v2316_v19  ;;  %v3068_v43 = vadd.f32 %v3915_v36, %v3067_v25  ;;  %v6072_v37 = vadd.f32 1.0, %v3919_v32  ;;  %v2399_v22 = vadd.f32 %v5923_v47, %v2357_v30 }
 0x338   : > { %v2370_v46 = vadd.f32 %v5923_v47, %v2328_v1  ;;  %v3921_v9 = vpop.eup %3920  ;;  %v2632_v34 = vmul.f32 %v3917_v5, %v2631_v41  ;;  %v2773_v13 = vand.u32 2147483647, %v6037_v55  ;;  %v2379_v28 = vadd.f32 %v5923_v47, %v2337_v38 }
 0x339   : > { %v2390_v40 = vadd.f32 %v5923_v47, %v2348_v45  ;;  %v3072_v26 = vsel %vm6065_vm15, %v3915_v36, %v3068_v43  ;;  %v2765_v48 = vmul.f32 %v3921_v9, %v6037_v55  ;;  %v2775_v54 = vand.u32 2147483648, %v6037_v55 }
 0x33a   : > { %3922 = vrcp.f32 %v6072_v37  ;;  %v3077_v50 = vsel %vm6044_vm12, %v3076_v11, %v3072_v26  ;;  %v2633_v0 = vadd.f32 %v3917_v5, %v2632_v34  ;;  %vm2769_vm1 = vweird.f32 %v6037_v55 }
 0x33b   : > { %v2400_v42 = vadd.f32 %v5923_v47, %v2358_v29  ;;  %3262 = vmatmul.f32.gmra.mxu3 %v3077_v50  ;;  %v2766_v24 = vsub.f32 1.0, %v2765_v48  ;;  %vm2770_vm3 = vweird.f32 %v3921_v9  ;;  %v3512_v49 = vmul.f32 -1.442695, %v2399_v22 }
 0x33c   : > { %v3483_v60 = vmul.f32 -1.442695, %v2370_v46  ;;  %v2637_v18 = vsel %vm6084_vm2, %v3917_v5, %v2633_v0  ;;  %vm6097_vm4 = vcmp.eq.f32.partialorder %v2773_v13, 8.507059e+37  ;;  %v3492_v44 = vmul.f32 -1.442695, %v2379_v28  ;;  %vm6105_vm5 = vmor %vm2769_vm1, %vm2770_vm3 }
 0x33d   : > { %v3503_v12 = vmul.f32 -1.442695, %v2390_v40  ;;  %v2642_v31 = vsel %vm6056_vm0, %v2641_v35, %v2637_v18  ;;  %v2767_v15 = vmul.f32 %v3921_v9, %v2766_v24  ;;  %v2776_v8 = vor.u32 1.1754944e-38, %v2775_v54  ;;  %v2297_v35 = vld [vmem:[#allocation2 + $0x50] sm:$0xff] }
 0x33e   : > { %3924 = vpow2.f32 %v3512_v49  ;;  %3175 = vmatmul.f32.gmra.mxu0 %v2642_v31  ;;  %v3513_v58 = vmul.f32 -1.442695, %v2400_v42  ;;  %v2329_v6 = vmul.f32 %v5926_v61, %v2287_v56  ;;  %v2338_v39 = vmul.f32 %v5926_v61, %v2296_v53 }
 0x33f   : > { %3926 = vpow2.f32 %v3483_v60  ;;  %v2768_v57 = vadd.f32 %v3921_v9, %v2767_v15  ;;  %v2349_v27 = vmul.f32 %v5926_v61, %v2307_v51  ;;  %v2359_v52 = vmul.f32 %v5926_v61, %v2317_v21 }
 0x340   : > { %v3923_v4 = vpop.eup %3922  ;;  %3928 = vpow2.f32 %v3492_v44  ;;  %vm2934_vm10 = vweird.f32 %v6072_v37  ;;  %v2371_v55 = vadd.f32 %v5923_v47, %v2329_v6  ;;  %v2938_v62 = vand.u32 2147483647, %v6072_v37 }
 0x341   : > { %v2930_v11 = vmul.f32 %v3923_v4, %v6072_v37  ;;  %3930 = vpow2.f32 %v3503_v12  ;;  %v2772_v2 = vsel %vm6105_vm5, %v3921_v9, %v2768_v57  ;;  %v2940_v5 = vand.u32 2147483648, %v6072_v37 }
 0x342   : > { %v2380_v16 = vadd.f32 %v5923_v47, %v2338_v39  ;;  %v2777_v59 = vsel %vm6097_vm4, %v2776_v8, %v2772_v2  ;;  %vm2935_vm6 = vweird.f32 %v3923_v4  ;;  %v3484_v23 = vmul.f32 -1.442695, %v2371_v55 }
 0x343   : > { %v2931_v33 = vsub.f32 1.0, %v2930_v11  ;;  %3202 = vmatmul.f32.gmra.mxu1 %v2777_v59  ;;  %3932 = vpow2.f32 %v3513_v58  ;;  %v2391_v17 = vadd.f32 %v5923_v47, %v2349_v27  ;;  %v2401_v63 = vadd.f32 %v5923_v47, %v2359_v52  ;;  %vm6131_vm7 = vmor %vm2934_vm10, %vm2935_vm6 }
 0x344   : > { %v3925_v19 = vpop.eup %3924  ;;  %v3493_v20 = vmul.f32 -1.442695, %v2380_v16  ;;  %3934 = vpow2.f32 %v3484_v23  ;;  %v2330_v32 = vmul.f32 %v5926_v61, %v2288_v10  ;;  %v2941_v38 = vor.u32 1.1754944e-38, %v2940_v5 }
 0x345   : > { %v3927_v25 = vpop.eup %3926  ;;  %v2932_v30 = vmul.f32 %v3923_v4, %v2931_v33  ;;  %v6125_v1 = vadd.f32 1.0, %v3925_v19  ;;  %vm2939_vm8 = vcmp.eq.f32.partialorder %v2938_v62, 8.507059e+37  ;;  %v2339_v22 = vmul.f32 %v5926_v61, %v2297_v35 }
 0x346   : > { %v3929_v14 = vpop.eup %3928  ;;  %v6135_v45 = vadd.f32 1.0, %v3927_v25  ;;  %3936 = vpow2.f32 %v3493_v20  ;;  %v6141_v37 = vmul.f32 -1.442695, %v2391_v17  ;;  %v6143_v9 = vmul.f32 -1.442695, %v2401_v63 }
 0x347   : > { %v3931_v29 = vpop.eup %3930  ;;  %v2933_v43 = vadd.f32 %v3923_v4, %v2932_v30  ;;  %3938 = vrcp.f32 %v6125_v1  ;;  %v3088_v46 = vand.u32 2147483647, %v6125_v1  ;;  %v3090_v13 = vand.u32 2147483648, %v6125_v1 }
 0x348   : > { %3940 = vrcp.f32 %v6135_v45  ;;  %v6148_v28 = vadd.f32 1.0, %v3929_v14  ;;  %v6151_v40 = vadd.f32 %v5923_v47, %v2330_v32  ;;  %v2653_v7 = vand.u32 2147483647, %v6135_v45 }
 0x349   : > { %v2937_v34 = vsel %vm6131_vm7, %v3923_v4, %v2933_v43  ;;  %v3933_v26 = vpop.eup %3932  ;;  %v2655_v48 = vand.u32 2147483648, %v6135_v45  ;;  %v6155_v54 = vadd.f32 1.0, %v3931_v29  ;;  %vm3084_vm9 = vweird.f32 %v6125_v1 }
 0x34a   : > { %v2942_v61 = vsel %vm2939_vm8, %v2941_v38, %v2937_v34  ;;  %v3935_v50 = vpop.eup %3934  ;;  %vm2649_vm11 = vweird.f32 %v6135_v45  ;;  %3942 = vrcp.f32 %v6148_v28  ;;  %v6161_v0 = vadd.f32 %v5923_v47, %v2339_v22 }
 0x34b   : > { %3235 = vmatmul.f32.gmra.mxu2 %v2942_v61  ;;  %vm6163_vm12 = vcmp.eq.f32.partialorder %v3088_v46, 8.507059e+37  ;;  %v2788_v53 = vand.u32 2147483647, %v6148_v28  ;;  %v2790_v24 = vand.u32 2147483648, %v6148_v28  ;;  %3944 = vrcp.f32 %v6155_v54 }
 0x34c   : > { %v3937_v42 = vpop.eup %3936  ;;  %v3091_v60 = vor.u32 1.1754944e-38, %v3090_v13  ;;  %v2953_v51 = vand.u32 2147483647, %v6155_v54  ;;  %v6171_v18 = vadd.f32 1.0, %v3933_v26  ;;  %v6173_v3 = vadd.f32 1.0, %v3935_v50 }
 0x34d   : > { %v3939_v49 = vpop.eup %3938  ;;  %vm6176_vm13 = vcmp.eq.f32.partialorder %v2653_v7, 8.507059e+37  ;;  %v2656_v21 = vor.u32 1.1754944e-38, %v2655_v48  ;;  %v2955_v31 = vand.u32 2147483648, %v6155_v54  ;;  %vm2784_vm0 = vweird.f32 %v6148_v28 }
 0x34e   : > { %v3941_v47 = vpop.eup %3940  ;;  %v3080_v44 = vmul.f32 %v3939_v49, %v6125_v1  ;;  %vm2949_vm14 = vweird.f32 %v6155_v54  ;;  %3946 = vrcp.f32 %v6171_v18  ;;  %vm3085_vm15 = vweird.f32 %v3939_v49 }
 0x34f   : > { %v2645_v15 = vmul.f32 %v3941_v47, %v6135_v45  ;;  %vm6185_vm2 = vcmp.eq.f32.partialorder %v2788_v53, 8.507059e+37  ;;  %v2791_v58 = vor.u32 1.1754944e-38, %v2790_v24  ;;  %vm2650_vm1 = vweird.f32 %v3941_v47  ;;  %vm6198_vm5 = vmor %vm3084_vm9, %vm3085_vm15 }
 0x350   : > { %v3081_v8 = vsub.f32 1.0, %v3080_v44  ;;  %v3943_v6 = vpop.eup %3942  ;;  %vm6189_vm3 = vcmp.eq.f32.partialorder %v2953_v51, 8.507059e+37  ;;  %3948 = vrcp.f32 %v6173_v3  ;;  %v2956_v11 = vor.u32 1.1754944e-38, %v2955_v31  ;;  %vm6207_vm10 = vmor %vm2649_vm11, %vm2650_vm1 }
 0x351   : > { %v2646_v39 = vsub.f32 1.0, %v2645_v15  ;;  %v3945_v57 = vpop.eup %3944  ;;  %v2780_v52 = vmul.f32 %v3943_v6, %v6148_v28  ;;  %vm3099_vm4 = vweird.f32 %v6171_v18  ;;  %v3103_v5 = vand.u32 2147483647, %v6171_v18 }
 0x352   : > { %v3082_v27 = vmul.f32 %v3939_v49, %v3081_v8  ;;  %v2945_v62 = vmul.f32 %v3945_v57, %v6155_v54  ;;  %v3105_v16 = vand.u32 2147483648, %v6171_v18  ;;  %vm2785_vm6 = vweird.f32 %v3943_v6 }
 0x353   : > { %v2647_v2 = vmul.f32 %v3941_v47, %v2646_v39  ;;  %v2781_v33 = vsub.f32 1.0, %v2780_v52  ;;  %vm2950_vm7 = vweird.f32 %v3945_v57  ;;  %v6211_v17 = vadd.f32 1.0, %v3937_v42  ;;  %vm6224_vm9 = vmor %vm2784_vm0, %vm2785_vm6 }
 0x354   : > { %v3083_v10 = vadd.f32 %v3939_v49, %v3082_v27  ;;  %v3947_v23 = vpop.eup %3946  ;;  %v2946_v20 = vsub.f32 1.0, %v2945_v62  ;;  %3950 = vpow2.f32 %v6141_v37  ;;  %vm2664_vm8 = vweird.f32 %v6173_v3 }
 0x355   : > { %v2648_v19 = vadd.f32 %v3941_v47, %v2647_v2  ;;  %v2782_v35 = vmul.f32 %v3943_v6, %v2781_v33  ;;  %v3095_v25 = vmul.f32 %v3947_v23, %v6171_v18  ;;  %vm3100_vm11 = vweird.f32 %v3947_v23 }
 0x356   : > { %v3087_v63 = vsel %vm6198_vm5, %v3939_v49, %v3083_v10  ;;  %v3949_v30 = vpop.eup %3948  ;;  %v2947_v41 = vmul.f32 %v3945_v57, %v2946_v20  ;;  %v2668_v37 = vand.u32 2147483647, %v6173_v3  ;;  %v2670_v34 = vand.u32 2147483648, %v6173_v3  ;;  %vm6250_vm0 = vmor %vm3099_vm4, %vm3100_vm11 }
 0x357   : > { %v3092_v1 = vsel %vm6163_vm12, %v3091_v60, %v3087_v63  ;;  %v2652_v32 = vsel %vm6207_vm10, %v3941_v47, %v2648_v19  ;;  %v2783_v45 = vadd.f32 %v3943_v6, %v2782_v35  ;;  %vm6233_vm12 = vmor %vm2949_vm14, %vm2950_vm7  ;;  %v3096_v43 = vsub.f32 1.0, %v3095_v25 }
 0x358   : > { %3265 = vmatmul.f32.gmra.mxu3 %v3092_v1  ;;  %v2657_v38 = vsel %vm6176_vm13, %v2656_v21, %v2652_v32  ;;  %v2660_v22 = vmul.f32 %v3949_v30, %v6173_v3  ;;  %v2948_v46 = vadd.f32 %v3945_v57, %v2947_v41  ;;  %3952 = vrcp.f32 %v6211_v17 }
 0x359   : > { %3178 = vmatmul.f32.gmra.mxu0 %v2657_v38  ;;  %v2787_v13 = vsel %vm6224_vm9, %v3943_v6, %v2783_v45  ;;  %v3097_v28 = vmul.f32 %v3947_v23, %v3096_v43  ;;  %vm2665_vm13 = vweird.f32 %v3949_v30  ;;  %v3106_v50 = vor.u32 1.1754944e-38, %v3105_v16 }
 0x35a   : > { %v2661_v26 = vsub.f32 1.0, %v2660_v22  ;;  %v3951_v61 = vpop.eup %3950  ;;  %v2792_v7 = vsel %vm6185_vm2, %v2791_v58, %v2787_v13  ;;  %v2952_v48 = vsel %vm6233_vm12, %v3945_v57, %v2948_v46  ;;  %3954 = vpow2.f32 %v6143_v9  ;;  %vm6259_vm15 = vmor %vm2664_vm8, %vm2665_vm13  ;;  %v6281_v58 = vld [vmem:[%s6507_s4] ss:$0 sm:$0xff] }
 0x35b   : > { %3205 = vmatmul.f32.gmra.mxu1 %v2792_v7  ;;  %v2957_v42 = vsel %vm6189_vm3, %v2956_v11, %v2952_v48  ;;  %v3098_v56 = vadd.f32 %v3947_v23, %v3097_v28  ;;  %vm3104_vm14 = vcmp.eq.f32.partialorder %v3103_v5, 8.507059e+37  ;;  %v2671_v49 = vor.u32 1.1754944e-38, %v2670_v34 }
 0x35c   : > { %v2662_v53 = vmul.f32 %v3949_v30, %v2661_v26  ;;  %3238 = vmatmul.f32.gmra.mxu2 %v2957_v42  ;;  %v6263_v60 = vadd.f32 1.0, %v3951_v61  ;;  %v3485_v51 = vmul.f32 -1.442695, %v6151_v40  ;;  %vm2669_vm2 = vcmp.eq.f32.partialorder %v2668_v37, 8.507059e+37 }
 0x35d   : > { %v3102_v9 = vsel %vm6250_vm0, %v3947_v23, %v3098_v56  ;;  %v3494_v47 = vmul.f32 -1.442695, %v6161_v0  ;;  %vm2799_vm1 = vweird.f32 %v6211_v17  ;;  %v2803_v15 = vand.u32 2147483647, %v6211_v17 }
 0x35e   : > { %v2663_v18 = vadd.f32 %v3949_v30, %v2662_v53  ;;  %v3953_v44 = vpop.eup %3952  ;;  %v3107_v12 = vsel %vm3104_vm14, %v3106_v50, %v3102_v9  ;;  %3956 = vrcp.f32 %v6263_v60  ;;  %v2805_v8 = vand.u32 2147483648, %v6211_v17 }
 0x35f   : > { %v2795_v21 = vmul.f32 %v3953_v44, %v6211_v17  ;;  %3958 = vpow2.f32 %v3485_v51  ;;  %vm2800_vm3 = vweird.f32 %v3953_v44  ;;  %vm6290_vm5 = vcmp.eq.f32.partialorder %v2803_v15, 8.507059e+37 }
 0x360   : > { %3268 = vmatmul.f32.gmra.mxu3 %v3107_v12  ;;  %v2667_v3 = vsel %vm6259_vm15, %v3949_v30, %v2663_v18  ;;  %v3955_v40 = vpop.eup %3954  ;;  %3960 = vpow2.f32 %v3494_v47  ;;  %vm6286_vm4 = vmor %vm2799_vm1, %vm2800_vm3  ;;  %v2806_v27 = vor.u32 1.1754944e-38, %v2805_v8  ;;  %vm2964_vm10 = vweird.f32 %v6263_v60 }
 0x361   : > { %v2672_v31 = vsel %vm2669_vm2, %v2671_v49, %v2667_v3  ;;  %v2796_v0 = vsub.f32 1.0, %v2795_v21  ;;  %v6276_v36 = vadd.f32 1.0, %v3955_v40  ;;  %v2968_v62 = vand.u32 2147483647, %v6263_v60 }
 0x362   : > { %3181 = vmatmul.f32.gmra.mxu0 %v2672_v31  ;;  %v2970_v10 = vand.u32 2147483648, %v6263_v60 }
 0x363   : > { %v2797_v6 = vmul.f32 %v3953_v44, %v2796_v0  ;;  %3962 = vrcp.f32 %v6276_v36  ;;  %vm2969_vm8 = vcmp.eq.f32.partialorder %v2968_v62, 8.507059e+37  ;;  %v3120_v43 = vand.u32 2147483648, %v6276_v36 }
 0x364   : > { %v3957_v39 = vpop.eup %3956  ;;  %v3161_v11 = vpop.f32.mrf.mxu0  ;;  %v2971_v38 = vor.u32 1.1754944e-38, %v2970_v10  ;;  %vm3114_vm9 = vweird.f32 %v6276_v36  ;;  %v3118_v46 = vand.u32 2147483647, %v6276_v36 }
 0x365   : > { %v3215_v52 = vpop.f32.mrf.mxu2  ;;  %v2798_v55 = vadd.f32 %v3953_v44, %v2797_v6  ;;  %v2960_v2 = vmul.f32 %v3957_v39, %v6263_v60  ;;  %v3959_v16 = vpop.eup %3958  ;;  %v3162_v23 = vadd.f32 %v6281_v58, %v3161_v11  ;;  %vm2965_vm6 = vweird.f32 %v3957_v39 }
 0x366   : > { %v3245_v5 = vpop.f32.mrf.mxu3  ;;  %v3216_v59 = vadd.f32 %v6281_v58, %v3215_v52  ;;  %v3961_v19 = vpop.eup %3960  ;;  %v2524_v63 = vadd.f32 1.0, %v3959_v16  ;;  %vm6316_vm7 = vmor %vm2964_vm10, %vm2965_vm6  ;;  %v3121_v50 = vor.u32 1.1754944e-38, %v3120_v43  ;;  %vm3119_vm13 = vcmp.eq.f32.partialorder %v3118_v46, 8.507059e+37 }
 0x367   : > { %v3246_v33 = vadd.f32 %v6281_v58, %v3245_v5  ;;  %v2802_v20 = vsel %vm6286_vm4, %v3953_v44, %v2798_v55  ;;  %v2961_v17 = vsub.f32 1.0, %v2960_v2  ;;  %v3188_v35 = vpop.f32.mrf.mxu1  ;;  %v6305_v30 = vadd.f32 1.0, %v3961_v19  ;;  %3275 = vst [vmem:[%s6512_s9] sm:$0xff] %v3162_v23 }
 0x368   : > { %v2807_v25 = vsel %vm6290_vm5, %v2806_v27, %v2802_v20  ;;  %3293 = vst [vmem:[%s6512_s9 + $0x90] sm:$0xff] %v3216_v59  ;;  %v3189_v1 = vadd.f32 %v6281_v58, %v3188_v35  ;;  %3964 = vrcp.f32 %v2524_v63  ;;  %vm2679_vm0 = vweird.f32 %v2524_v63 }
 0x369   : > { %v3963_v32 = vpop.eup %3962  ;;  %3208 = vmatmul.f32.gmra.mxu1 %v2807_v25  ;;  %v2962_v14 = vmul.f32 %v3957_v39, %v2961_v17  ;;  %3303 = vst [vmem:[%s6512_s9 + $0xe0] sm:$0xff] %v3246_v33  ;;  %3966 = vrcp.f32 %v6305_v30  ;;  %v2683_v24 = vand.u32 2147483647, %v2524_v63  ;;  %v2685_v49 = vand.u32 2147483648, %v2524_v63 }
 0x36a   : > { %v3110_v45 = vmul.f32 %v3963_v32, %v6276_v36  ;;  %3284 = vst [vmem:[%s6512_s9 + $0x48] sm:$0xff] %v3189_v1  ;;  %vm3115_vm11 = vweird.f32 %v3963_v32  ;;  %vm2814_vm14 = vweird.f32 %v6305_v30  ;;  %v2820_v18 = vand.u32 2147483648, %v6305_v30 }
 0x36b   : > { %v2963_v29 = vadd.f32 %v3957_v39, %v2962_v14  ;;  %vm6335_vm12 = vmor %vm3114_vm9, %vm3115_vm11  ;;  %v2818_v12 = vand.u32 2147483647, %v6305_v30  ;;  %v2686_v40 = vor.u32 1.1754944e-38, %v2685_v49  ;;  %vm2684_vm3 = vcmp.eq.f32.partialorder %v2683_v24, 8.507059e+37 }
 0x36c   : > { %v3111_v22 = vsub.f32 1.0, %v3110_v45  ;;  %v2821_v36 = vor.u32 1.1754944e-38, %v2820_v18 }
 0x36d   : > { %v3218_v37 = vpop.f32.mrf.mxu2  ;;  %v2967_v34 = vsel %vm6316_vm7, %v3957_v39, %v2963_v29  ;;  %vm2819_vm5 = vcmp.eq.f32.partialorder %v2818_v12, 8.507059e+37 }
 0x36e   : > { %v3219_v13 = vadd.f32 %v6281_v58, %v3218_v37  ;;  %v3248_v28 = vpop.f32.mrf.mxu3  ;;  %v2972_v26 = vsel %vm2969_vm8, %v2971_v38, %v2967_v34  ;;  %v3112_v61 = vmul.f32 %v3963_v32, %v3111_v22  ;;  %v3965_v48 = vpop.eup %3964 }
 0x36f   : > { %v3249_v7 = vadd.f32 %v6281_v58, %v3248_v28  ;;  %3241 = vmatmul.f32.gmra.mxu2 %v2972_v26  ;;  %v3967_v42 = vpop.eup %3966  ;;  %v2675_v53 = vmul.f32 %v3965_v48, %v2524_v63  ;;  %vm2680_vm15 = vweird.f32 %v3965_v48 }
 0x370   : > { %3294 = vst [vmem:[%s6512_s9 + $0x98] sm:$0xff] %v3219_v13  ;;  %v3113_v56 = vadd.f32 %v3963_v32, %v3112_v61  ;;  %v2810_v60 = vmul.f32 %v3967_v42, %v6305_v30  ;;  %vm2815_vm2 = vweird.f32 %v3967_v42  ;;  %vm6352_vm1 = vmor %vm2679_vm0, %vm2680_vm15 }
 0x371   : > { %3304 = vst [vmem:[%s6512_s9 + $0xe8] sm:$0xff] %v3249_v7  ;;  %v2676_v9 = vsub.f32 1.0, %v2675_v53  ;;  %vm6358_vm4 = vmor %vm2814_vm14, %vm2815_vm2 }
 0x372   : > { %v3117_v51 = vsel %vm6335_vm12, %v3963_v32, %v3113_v56  ;;  %v2811_v44 = vsub.f32 1.0, %v2810_v60 }
 0x373   : > { %v3122_v47 = vsel %vm3119_vm13, %v3121_v50, %v3117_v51  ;;  %v2677_v3 = vmul.f32 %v3965_v48, %v2676_v9 }
 0x374   : > { %3271 = vmatmul.f32.gmra.mxu3 %v3122_v47  ;;  %v2812_v31 = vmul.f32 %v3967_v42, %v2811_v44 }
 0x375   : > { %v2678_v8 = vadd.f32 %v3965_v48, %v2677_v3 }
 0x376   : > { %v3164_v15 = vpop.f32.mrf.mxu0  ;;  %v2813_v4 = vadd.f32 %v3967_v42, %v2812_v31 }
 0x377   : > { %v3165_v6 = vadd.f32 %v6281_v58, %v3164_v15  ;;  %v3221_v39 = vpop.f32.mrf.mxu2  ;;  %v2682_v27 = vsel %vm6352_vm1, %v3965_v48, %v2678_v8 }
 0x378   : > { %v3222_v57 = vadd.f32 %v6281_v58, %v3221_v39  ;;  %v2687_v11 = vsel %vm2684_vm3, %v2686_v40, %v2682_v27  ;;  %v2817_v55 = vsel %vm6358_vm4, %v3967_v42, %v2813_v4 }
 0x379   : > { %3276 = vst [vmem:[%s6512_s9 + $0x8] sm:$0xff] %v3165_v6  ;;  %v3251_v52 = vpop.f32.mrf.mxu3  ;;  %3184 = vmatmul.f32.gmra.mxu0 %v2687_v11  ;;  %v2822_v62 = vsel %vm2819_vm5, %v2821_v36, %v2817_v55 }
 0x37a   : > { %3295 = vst [vmem:[%s6512_s9 + $0xa0] sm:$0xff] %v3222_v57  ;;  %v3252_v2 = vadd.f32 %v6281_v58, %v3251_v52  ;;  %3211 = vmatmul.f32.gmra.mxu1 %v2822_v62 }
 0x37c   : > { %3305 = vst [vmem:[%s6512_s9 + $0xf0] sm:$0xff] %v3252_v2 }
 0x380   : > { %v3191_v5 = vpop.f32.mrf.mxu1 }
 0x381   : > { %v3192_v16 = vadd.f32 %v6281_v58, %v3191_v5 }
 0x383   : > { %3285 = vst [vmem:[%s6512_s9 + $0x50] sm:$0xff] %v3192_v16 }
 0x387   : > { %v3167_v10 = vpop.f32.mrf.mxu0 }
 0x388   : > { %v3168_v59 = vadd.f32 %v6281_v58, %v3167_v10 }
 0x389   : > { %v3224_v33 = vpop.f32.mrf.mxu2 }
 0x38a   : > { %3277 = vst [vmem:[%s6512_s9 + $0x10] sm:$0xff] %v3168_v59  ;;  %v3225_v19 = vadd.f32 %v6281_v58, %v3224_v33  ;;  %v3254_v20 = vpop.f32.mrf.mxu3 }
 0x38b   : > { %v3194_v23 = vpop.f32.mrf.mxu1  ;;  %v3255_v63 = vadd.f32 %v6281_v58, %v3254_v20 }
 0x38c   : > { %v3195_v17 = vadd.f32 %v6281_v58, %v3194_v23  ;;  %3296 = vst [vmem:[%s6512_s9 + $0xa8] sm:$0xff] %v3225_v19 }
 0x38d   : > { %3306 = vst [vmem:[%s6512_s9 + $0xf8] sm:$0xff] %v3255_v63 }
 0x38e   : > { %3286 = vst [vmem:[%s6512_s9 + $0x58] sm:$0xff] %v3195_v17 }
 0x398   : > { %v3170_v35 = vpop.f32.mrf.mxu0 }
 0x399   : > { %v3171_v25 = vadd.f32 %v6281_v58, %v3170_v35  ;;  %v3227_v30 = vpop.f32.mrf.mxu2 }
 0x39a   : > { %v3228_v1 = vadd.f32 %v6281_v58, %v3227_v30 }
 0x39b   : > { %3278 = vst [vmem:[%s6512_s9 + $0x18] sm:$0xff] %v3171_v25 }
 0x39c   : > { %v3197_v32 = vpop.f32.mrf.mxu1  ;;  %3297 = vst [vmem:[%s6512_s9 + $0xb0] sm:$0xff] %v3228_v1 }
 0x39d   : > { %v3198_v14 = vadd.f32 %v6281_v58, %v3197_v32  ;;  %v3257_v41 = vpop.f32.mrf.mxu3 }
 0x39e   : > { %v3258_v38 = vadd.f32 %v6281_v58, %v3257_v41 }
 0x39f   : > { %3287 = vst [vmem:[%s6512_s9 + $0x60] sm:$0xff] %v3198_v14 }
 0x3a0   : > { %3307 = vst [vmem:[%s6512_s9 + $0x100] sm:$0xff] %v3258_v38 }
 0x3ad   : > { %v3173_v45 = vpop.f32.mrf.mxu0 }
 0x3ae   : > { %v3230_v29 = vpop.f32.mrf.mxu2  ;;  %v3174_v43 = vadd.f32 %v6281_v58, %v3173_v45 }
 0x3af   : > { %v3231_v22 = vadd.f32 %v6281_v58, %v3230_v29 }
 0x3b0   : > { %3279 = vst [vmem:[%s6512_s9 + $0x20] sm:$0xff] %v3174_v43 }
 0x3b1   : > { %v3260_v46 = vpop.f32.mrf.mxu3  ;;  %3298 = vst [vmem:[%s6512_s9 + $0xb8] sm:$0xff] %v3231_v22 }
 0x3b2   : > { %v3200_v37 = vpop.f32.mrf.mxu1  ;;  %v3261_v34 = vadd.f32 %v6281_v58, %v3260_v46 }
 0x3b3   : > { %v3201_v13 = vadd.f32 %v6281_v58, %v3200_v37 }
 0x3b4   : > { %3308 = vst [vmem:[%s6512_s9 + $0x108] sm:$0xff] %v3261_v34 }
 0x3b5   : > { %3288 = vst [vmem:[%s6512_s9 + $0x68] sm:$0xff] %v3201_v13 }
 0x3b9   : > { %v3233_v28 = vpop.f32.mrf.mxu2 }
 0x3ba   : > { %v3234_v26 = vadd.f32 %v6281_v58, %v3233_v28 }
 0x3bb   : > { %v3176_v61 = vpop.f32.mrf.mxu0 }
 0x3bc   : > { %3299 = vst [vmem:[%s6512_s9 + $0xc0] sm:$0xff] %v3234_v26  ;;  %v3177_v7 = vadd.f32 %v6281_v58, %v3176_v61 }
 0x3be   : > { %3280 = vst [vmem:[%s6512_s9 + $0x28] sm:$0xff] %v3177_v7  ;;  %v3263_v48 = vpop.f32.mrf.mxu3 }
 0x3bf   : > { %v3264_v54 = vadd.f32 %v6281_v58, %v3263_v48 }
 0x3c0   : > { %v3203_v50 = vpop.f32.mrf.mxu1 }
 0x3c1   : > { %v3204_v42 = vadd.f32 %v6281_v58, %v3203_v50  ;;  %3309 = vst [vmem:[%s6512_s9 + $0x110] sm:$0xff] %v3264_v54 }
 0x3c3   : > { %3289 = vst [vmem:[%s6512_s9 + $0x70] sm:$0xff] %v3204_v42 }
 0x3ce   : > { %v3236_v56 = vpop.f32.mrf.mxu2 }
 0x3cf   : > { %v3237_v53 = vadd.f32 %v6281_v58, %v3236_v56 }
 0x3d1   : > { %3300 = vst [vmem:[%s6512_s9 + $0xc8] sm:$0xff] %v3237_v53 }
 0x3d6   : > { %v3179_v24 = vpop.f32.mrf.mxu0 }
 0x3d7   : > { %v3180_v49 = vadd.f32 %v6281_v58, %v3179_v24 }
 0x3d8   : > { %v3206_v60 = vpop.f32.mrf.mxu1 }
 0x3d9   : > { %3281 = vst [vmem:[%s6512_s9 + $0x30] sm:$0xff] %v3180_v49  ;;  %v3207_v51 = vadd.f32 %v6281_v58, %v3206_v60 }
 0x3db   : > { %v3266_v9 = vpop.f32.mrf.mxu3  ;;  %3290 = vst [vmem:[%s6512_s9 + $0x78] sm:$0xff] %v3207_v51 }
 0x3dc   : > { %v3267_v18 = vadd.f32 %v6281_v58, %v3266_v9 }
 0x3de   : > { %3310 = vst [vmem:[%s6512_s9 + $0x118] sm:$0xff] %v3267_v18 }
 0x3df   : > { %v3182_v47 = vpop.f32.mrf.mxu0  ;;  %v3239_v12 = vpop.f32.mrf.mxu2 }
 0x3e0   : > { %v3183_v44 = vadd.f32 %v6281_v58, %v3182_v47  ;;  %v3240_v3 = vadd.f32 %v6281_v58, %v3239_v12 }
 0x3e2   : > { %3282 = vst [vmem:[%s6512_s9 + $0x38] sm:$0xff] %v3183_v44 }
 0x3e3   : > { %3301 = vst [vmem:[%s6512_s9 + $0xd0] sm:$0xff] %v3240_v3  ;;  %v3269_v21 = vpop.f32.mrf.mxu3 }
 0x3e4   : > { %v3270_v40 = vadd.f32 %v6281_v58, %v3269_v21 }
 0x3e6   : > { %3311 = vst [vmem:[%s6512_s9 + $0x120] sm:$0xff] %v3270_v40  ;;  %v3209_v31 = vpop.f32.mrf.mxu1 }
 0x3e7   : > { %v3210_v15 = vadd.f32 %v6281_v58, %v3209_v31 }
 0x3e9   : > { %3291 = vst [vmem:[%s6512_s9 + $0x80] sm:$0xff] %v3210_v15 }
 0x3f2   : > { %v3242_v8 = vpop.f32.mrf.mxu2 }
 0x3f3   : > { %v3243_v0 = vadd.f32 %v6281_v58, %v3242_v8 }
 0x3f5   : > { %3302 = vst [vmem:[%s6512_s9 + $0xd8] sm:$0xff] %v3243_v0 }
 0x3f6   : > { %v3185_v36 = vpop.f32.mrf.mxu0 }
 0x3f7   : > { %v3272_v6 = vpop.f32.mrf.mxu3  ;;  %v3186_v39 = vadd.f32 %v6281_v58, %v3185_v36  ;;  %v3212_v4 = vpop.f32.mrf.mxu1 }
 0x3f8   : > { %v3273_v57 = vadd.f32 %v6281_v58, %v3272_v6  ;;  %v3213_v27 = vadd.f32 %v6281_v58, %v3212_v4 }
 0x3f9   : > { %3283 = vst [vmem:[%s6512_s9 + $0x40] sm:$0xff] %v3186_v39 }
 0x3fa   : > { %3292 = vst [vmem:[%s6512_s9 + $0x88] sm:$0xff] %v3213_v27 }
 0x3fb   : > { %3312 = vst [vmem:[%s6512_s9 + $0x128] sm:$0xff] %v3273_v57 }
 0x3fc PF: > { %s19_s11 = sadd.s32 1, %s3992_s11   ;;  %s6779_s30 = smov %s3988_s10 }
 0x3fd   : > { %p16_p10 = scmp.ge.s32.totalorder %s19_s11, 5   ;;  %s6780_s10 = smov %s6782_s12 }
 0x3ff   :  { %18 = sbr.rel (!%p16_p10) target bundleno = 2 (0x2), region = 109 }

</bundles_post_ra>
